<compile_context>
chip_gen: v6e
topology: v6e:2x2x1
jax: 0.10.0
libtpu: 0.0.40
codegen_flags: <defaults>
</compile_context>

<pallas_src>
import functools
import numpy as np
import jax
import jax.numpy as jnp
from jax.experimental import pallas as pl
from jax.experimental.pallas import tpu as pltpu


# ----------------------------------------------------------------------------
# Packed-weight-slab layout helpers
# ----------------------------------------------------------------------------
def _round_up(x, m):
    return ((x + m - 1) // m) * m


def _slab_offsets(num_layers, embed_size, hidden_size):
    """Row offsets of each pre-transposed LSTM weight block inside the packed
    bf16 weight slab. Block order: [enc W_ih, enc W_hh] per layer, then
    [dec W_ih, dec W_hh] per layer. Offsets are sublane (8)-aligned."""
    H = hidden_size
    offs = []
    cur = 0

    def add(rows):
        nonlocal cur
        offs.append((cur, rows))
        cur += _round_up(rows, 8)

    for l in range(num_layers):
        add(2 * embed_size if l == 0 else H)    # enc W_ih
        add(H)                                   # enc W_hh
    for _ in range(num_layers):
        add(H)                                   # dec W_ih
        add(H)                                   # dec W_hh
    return offs, _round_up(cur, 8)


# ----------------------------------------------------------------------------
# Fused Pallas kernel (built per static configuration)
# ----------------------------------------------------------------------------
def _build_kernel(L, T_enc, T_dec, B, H, E, Vp, enc_valid):
    offs, _ = _slab_offsets(L, E, H)
    H4 = 4 * H
    f32, bf16 = jnp.float32, jnp.bfloat16

    def kernel(x_ref, w_ref, wlog_ref, b_ref, blog_ref, out_ref):
        # ---- packed weights: one slab, static row slices, read once ----
        def wblk(idx):
            off, rows = offs[idx]
            return w_ref[pl.ds(off, rows), :]            # (rows, 4H) bf16

        enc_wih = [wblk(2 * l) for l in range(L)]
        enc_whh = [wblk(2 * l + 1) for l in range(L)]
        dec_wih = [wblk(2 * L + 2 * l) for l in range(L)]
        dec_whh = [wblk(2 * L + 2 * l + 1) for l in range(L)]

        b_all = b_ref[...]                               # (2L, 4H) f32
        # pre-broadcast biases once per layer (no per-step broadcast_in_dim)
        enc_b = [None] + [jnp.broadcast_to(b_all[l:l + 1, :], (B, H4))
                          for l in range(1, L)]
        dec_b = [jnp.broadcast_to(b_all[L + l:L + l + 1, :], (B, H4))
                 for l in range(L)]

        # ---- hoisted constants ----
        lane = jax.lax.broadcasted_iota(jnp.int32, (B, H4), 1)
        tanh_lane = (lane >= 2 * H) & (lane < 3 * H)     # cell-candidate block
        row = jax.lax.broadcasted_iota(jnp.int32, (B, H), 0)

        def dot(a, w):                                   # bf16 MXU, f32 accumulate
            return jnp.dot(a.astype(bf16), w, preferred_element_type=f32)

        def cell(g, h, c):
            # whole-vreg activations: 2 transcendentals per step instead of 4
            act = jnp.where(tanh_lane, jnp.tanh(g), jax.nn.sigmoid(g))
            i_g = act[:, 0 * H:1 * H]
            f_g = act[:, 1 * H:2 * H]
            g_g = act[:, 2 * H:3 * H]
            o_g = act[:, 3 * H:4 * H]
            c_new = f_g * c + i_g * g_g
            h_new = o_g * jnp.tanh(c_new)
            return h_new, c_new

        # ---- encoder: layer-0 input projection hoisted; wavefront recurrence ----
        x_all = x_ref[...]                               # (T_enc*B, 2E) bf16
        gx0 = (jnp.dot(x_all, enc_wih[0], preferred_element_type=f32)
               + jnp.broadcast_to(b_all[0:1, :], (T_enc * B, H4)))

        h = [jnp.zeros((B, H), f32) for _ in range(L)]
        c = [jnp.zeros((B, H), f32) for _ in range(L)]
        for t in range(T_enc):                           # static unroll
            k_t = enc_valid[t]                           # python int (lens sorted desc)
            if k_t == 0:                                 # no valid rows from here on
                break
            for l in range(L):
                if l == 0:
                    g = gx0[t * B:(t + 1) * B, :] + dot(h[0], enc_whh[0])
                else:
                    g = dot(h[l - 1], enc_wih[l]) + dot(h[l], enc_whh[l]) + enc_b[l]
                h_new, c_new = cell(g, h[l], c[l])
                if k_t == B:                             # all rows valid: no blend
                    h[l], c[l] = h_new, c_new
                else:                                    # packed-seq state holding
                    valid = row < k_t
                    h[l] = jnp.where(valid, h_new, h[l])
                    c[l] = jnp.where(valid, c_new, c[l])

        hT = h[L - 1]                                    # hn[-1]

        # ---- decoder: constant input hn[-1], zero init states, wavefront ----
        # Padded decoder positions are never gathered and recurrence is causal,
        # so no masking is needed here.
        gd0 = dot(hT, dec_wih[0]) + dec_b[0]             # constant over time
        hd = [jnp.zeros((B, H), f32) for _ in range(L)]
        cd = [jnp.zeros((B, H), f32) for _ in range(L)]
        dseq = []
        for t in range(T_dec):
            for l in range(L):
                if l == 0:
                    g = gd0 + dot(hd[0], dec_whh[0])
                else:
                    g = dot(hd[l - 1], dec_wih[l]) + dot(hd[l], dec_whh[l]) + dec_b[l]
                hd[l], cd[l] = cell(g, hd[l], cd[l])
            dseq.append(hd[L - 1])

        # ---- logits over all decoder positions (lane-dense, V padded to 128) ----
        dcat = jnp.concatenate(dseq, axis=0)             # (T_dec*B, H) f32
        out_ref[...] = (dot(dcat, wlog_ref[...])
                        + jnp.broadcast_to(blog_ref[...], (T_dec * B, Vp)))

    return kernel


# ----------------------------------------------------------------------------
# Cached, jitted forward per static (shape, length-pattern) configuration
# ----------------------------------------------------------------------------
@functools.lru_cache(maxsize=None)
def _build_forward(L, H, E, V, Vp, B, T_enc, T_dec, enc_len, dec_len):
    enc_valid = tuple(int(sum(1 for el in enc_len if el > t)) for t in range(T_enc))
    kernel = _build_kernel(L, T_enc, T_dec, B, H, E, Vp, enc_valid)

    # pack_padded_sequence(...).data ordering (time-major, batch sorted by len desc)
    idx = np.asarray([t * B + b for t in range(T_dec) for b in range(B)
                      if dec_len[b] > t], dtype=np.int32)

    pcall = pl.pallas_call(
        kernel,
        out_shape=jax.ShapeDtypeStruct((T_dec * B, Vp), jnp.float32),
        compiler_params=pltpu.CompilerParams(vmem_limit_bytes=32 * 1024 * 1024),
    )

    def fwd(weights, input_a, input_b):
        # Embedding lookup / concat / packed gather stay in XLA (glue ops).
        emb = weights["embed_weight"]
        a_e = jnp.take(emb, input_a, axis=0)             # (B, T, E)
        b_e = jnp.take(emb, input_b, axis=0)             # (B, T, E)
        x = jnp.concatenate((a_e, b_e), axis=2)          # (B, T, 2E)
        x2d = (jnp.transpose(x, (1, 0, 2))
               .reshape(T_enc * B, 2 * E).astype(jnp.bfloat16))
        logits_all = pcall(x2d, weights["w_slab"], weights["logit_w"],
                           weights["b_slab"], weights["logit_b"])
        return logits_all[idx, :V]                       # packed order, drop pad lanes

    return jax.jit(fwd)


def add_model_forward(params, input_a, input_b, encode_length, decode_length):
    """Reproduces AddModel.forward.

    input_a, input_b : (B, T_enc) int32 token ids
    encode_length    : lengths sorted descending (pack_padded_sequence)
    decode_length    : lengths sorted descending, each <= 5
    returns          : (sum(decode_length), vocab_size) f32 logits in
                       pack_padded_sequence data order.
    """
    enc_len = tuple(int(v) for v in np.asarray(encode_length))
    dec_len = tuple(int(v) for v in np.asarray(decode_length))
    B, T_enc = input_a.shape
    fwd = _build_forward(params["num_layers"], params["hidden_size"],
                         params["embed_size"], params["vocab_size"],
                         params["vocab_pad"], B, T_enc, 5, enc_len, dec_len)
    return fwd(params["weights"], input_a, input_b)


# ----------------------------------------------------------------------------
# Deterministic synthetic parameters in kernel-ready layout:
# one bf16 weight slab (pre-transposed), pre-combined f32 biases,
# lane-padded bf16 logit weights.
# ----------------------------------------------------------------------------
def make_params(key, vocab_size, embed_size, hidden_size, num_layers):
    H = hidden_size
    H4 = 4 * H
    k = 1.0 / np.sqrt(H)
    Vp = _round_up(vocab_size, 128)
    offs, total_rows = _slab_offsets(num_layers, embed_size, hidden_size)

    keys = iter(jax.random.split(key, 2 + 8 * num_layers))

    def unif(shape, scale):
        return jax.random.uniform(next(keys), shape, jnp.float32, -scale, scale)

    w_slab = jnp.zeros((total_rows, H4), jnp.float32)
    enc_bias, dec_bias = [], []
    blk = 0
    for l in range(num_layers):
        enc_in = 2 * embed_size if l == 0 else H
        wih = unif((H4, enc_in), k)
        whh = unif((H4, H), k)
        enc_bias.append(unif((H4,), k) + unif((H4,), k))        # b_ih + b_hh
        off, rows = offs[blk]; w_slab = w_slab.at[off:off + rows, :].set(wih.T); blk += 1
        off, rows = offs[blk]; w_slab = w_slab.at[off:off + rows, :].set(whh.T); blk += 1
    for l in range(num_layers):
        wih = unif((H4, H), k)
        whh = unif((H4, H), k)
        dec_bias.append(unif((H4,), k) + unif((H4,), k))
        off, rows = offs[blk]; w_slab = w_slab.at[off:off + rows, :].set(wih.T); blk += 1
        off, rows = offs[blk]; w_slab = w_slab.at[off:off + rows, :].set(whh.T); blk += 1

    embed_w = unif((vocab_size, embed_size), 0.1)
    logit_w = unif((vocab_size, hidden_size), 0.1)               # PyTorch (V, H)
    logit_w_pad = (jnp.zeros((hidden_size, Vp), jnp.float32)
                   .at[:, :vocab_size].set(logit_w.T))
    logit_b_pad = jnp.zeros((1, Vp), jnp.float32)                # bias init = 0

    weights = {
        "embed_weight": embed_w,                                  # f32 (V, E)
        "w_slab": w_slab.astype(jnp.bfloat16),                    # bf16 (R, 4H)
        "logit_w": logit_w_pad.astype(jnp.bfloat16),              # bf16 (H, Vp)
        "b_slab": jnp.stack(enc_bias + dec_bias, axis=0),         # f32 (2L, 4H)
        "logit_b": logit_b_pad,                                   # f32 (1, Vp)
    }
    return {"num_layers": num_layers, "hidden_size": H, "embed_size": embed_size,
            "vocab_size": vocab_size, "vocab_pad": Vp, "weights": weights}


if __name__ == "__main__":
    vocab_size, embed_size, hidden_size, num_layers = 64, 16, 32, 2
    B, T_enc = 4, 8

    key = jax.random.PRNGKey(0)
    pkey, akey, bkey = jax.random.split(key, 3)
    params = make_params(pkey, vocab_size, embed_size, hidden_size, num_layers)

    input_a = jax.random.randint(akey, (B, T_enc), 0, vocab_size, jnp.int32)
    input_b = jax.random.randint(bkey, (B, T_enc), 0, vocab_size, jnp.int32)
    encode_length = [8, 7, 5, 3]   # sorted descending (pack_padded_sequence)
    decode_length = [5, 4, 3, 2]   # sorted descending, each <= 5

    out = add_model_forward(params, input_a, input_b,
                            encode_length, decode_length)
    out = jax.block_until_ready(out)
    assert out.shape == (sum(decode_length), vocab_size)
    assert bool(jnp.all(jnp.isfinite(out)))
    print("KERNEL_OK")
</pallas_src>

<mosaic_0001>
module attributes {stable_mosaic.version = 11 : i64} {
  func.func @kernel(%arg0: memref<32x32xbf16, #tpu.memory_space<vmem>>, %arg1: memref<256x128xbf16, #tpu.memory_space<vmem>>, %arg2: memref<32x128xbf16, #tpu.memory_space<vmem>>, %arg3: memref<4x128xf32, #tpu.memory_space<vmem>>, %arg4: memref<1x128xf32, #tpu.memory_space<vmem>>, %arg5: memref<20x128xf32, #tpu.memory_space<vmem>>) attributes {dimension_semantics = [], scalar_prefetch = 0 : i64, scratch_operands = 0 : i64, tpu.core_type = #tpu.core_type<tc>} {
    %c0 = arith.constant 0 : index
    %c0_0 = arith.constant 0 : index
    %0 = vector.load %arg1[%c0, %c0_0] : memref<256x128xbf16, #tpu.memory_space<vmem>>, vector<32x128xbf16>
    %c64 = arith.constant 64 : index
    %c0_1 = arith.constant 0 : index
    %1 = vector.load %arg1[%c64, %c0_1] : memref<256x128xbf16, #tpu.memory_space<vmem>>, vector<32x128xbf16>
    %c32 = arith.constant 32 : index
    %c0_2 = arith.constant 0 : index
    %2 = vector.load %arg1[%c32, %c0_2] : memref<256x128xbf16, #tpu.memory_space<vmem>>, vector<32x128xbf16>
    %c96 = arith.constant 96 : index
    %c0_3 = arith.constant 0 : index
    %3 = vector.load %arg1[%c96, %c0_3] : memref<256x128xbf16, #tpu.memory_space<vmem>>, vector<32x128xbf16>
    %c128 = arith.constant 128 : index
    %c0_4 = arith.constant 0 : index
    %4 = vector.load %arg1[%c128, %c0_4] : memref<256x128xbf16, #tpu.memory_space<vmem>>, vector<32x128xbf16>
    %c192 = arith.constant 192 : index
    %c0_5 = arith.constant 0 : index
    %5 = vector.load %arg1[%c192, %c0_5] : memref<256x128xbf16, #tpu.memory_space<vmem>>, vector<32x128xbf16>
    %c160 = arith.constant 160 : index
    %c0_6 = arith.constant 0 : index
    %6 = vector.load %arg1[%c160, %c0_6] : memref<256x128xbf16, #tpu.memory_space<vmem>>, vector<32x128xbf16>
    %c224 = arith.constant 224 : index
    %c0_7 = arith.constant 0 : index
    %7 = vector.load %arg1[%c224, %c0_7] : memref<256x128xbf16, #tpu.memory_space<vmem>>, vector<32x128xbf16>
    %c0_8 = arith.constant 0 : index
    %c0_9 = arith.constant 0 : index
    %8 = vector.load %arg3[%c0_8, %c0_9] : memref<4x128xf32, #tpu.memory_space<vmem>>, vector<4x128xf32>
    %9 = vector.extract_strided_slice %8 {offsets = [1, 0], sizes = [1, 128], strides = [1, 1]} : vector<4x128xf32> to vector<1x128xf32>
    %10 = vector.shape_cast %9 : vector<1x128xf32> to vector<1x128xf32>
    %11 = vector.broadcast %10 : vector<1x128xf32> to vector<4x128xf32>
    %12 = vector.extract_strided_slice %8 {offsets = [2, 0], sizes = [1, 128], strides = [1, 1]} : vector<4x128xf32> to vector<1x128xf32>
    %13 = vector.shape_cast %12 : vector<1x128xf32> to vector<1x128xf32>
    %14 = vector.broadcast %13 : vector<1x128xf32> to vector<4x128xf32>
    %15 = vector.extract_strided_slice %8 {offsets = [3, 0], sizes = [1, 128], strides = [1, 1]} : vector<4x128xf32> to vector<1x128xf32>
    %16 = vector.shape_cast %15 : vector<1x128xf32> to vector<1x128xf32>
    %17 = vector.broadcast %16 : vector<1x128xf32> to vector<4x128xf32>
    %18 = tpu.iota {dimensions = array<i32: 1>} : vector<4x128xi32>
    %c64_i32 = arith.constant 64 : i32
    %19 = vector.broadcast %c64_i32 : i32 to vector<4x128xi32>
    %20 = arith.cmpi sge, %18, %19 : vector<4x128xi32>
    %c96_i32 = arith.constant 96 : i32
    %21 = vector.broadcast %c96_i32 : i32 to vector<4x128xi32>
    %22 = arith.cmpi slt, %18, %21 : vector<4x128xi32>
    %23 = arith.andi %20, %22 : vector<4x128xi1>
    %24 = tpu.iota {dimensions = array<i32: 0>} : vector<4x32xi32>
    %c0_10 = arith.constant 0 : index
    %c0_11 = arith.constant 0 : index
    %25 = vector.load %arg0[%c0_10, %c0_11] : memref<32x32xbf16, #tpu.memory_space<vmem>>, vector<32x32xbf16>
    %cst = arith.constant dense<0.000000e+00> : vector<32x128xf32>
    %26 = tpu.matmul %25, %0, %cst {dimension_numbers = #tpu.dot_dimension_numbers<[1], [0], [0], [1], [0, 0, 1, 1], [], []>} : vector<32x32xbf16>, vector<32x128xbf16>, vector<32x128xf32> -> vector<32x128xf32>
    %27 = vector.extract_strided_slice %8 {offsets = [0, 0], sizes = [1, 128], strides = [1, 1]} : vector<4x128xf32> to vector<1x128xf32>
    %28 = vector.shape_cast %27 : vector<1x128xf32> to vector<1x128xf32>
    %29 = vector.broadcast %28 : vector<1x128xf32> to vector<32x128xf32>
    %30 = arith.addf %26, %29 : vector<32x128xf32>
    %cst_12 = arith.constant 0.000000e+00 : f32
    %31 = vector.broadcast %cst_12 : f32 to vector<4x32xf32>
    %cst_13 = arith.constant 0.000000e+00 : f32
    %32 = vector.broadcast %cst_13 : f32 to vector<4x32xf32>
    %cst_14 = arith.constant 0.000000e+00 : f32
    %33 = vector.broadcast %cst_14 : f32 to vector<4x32xf32>
    %cst_15 = arith.constant 0.000000e+00 : f32
    %34 = vector.broadcast %cst_15 : f32 to vector<4x32xf32>
    %35 = vector.extract_strided_slice %30 {offsets = [0, 0], sizes = [4, 128], strides = [1, 1]} : vector<32x128xf32> to vector<4x128xf32>
    %36 = arith.truncf %31 : vector<4x32xf32> to vector<4x32xbf16>
    %cst_16 = arith.constant dense<0.000000e+00> : vector<4x128xf32>
    %37 = tpu.matmul %36, %2, %cst_16 {dimension_numbers = #tpu.dot_dimension_numbers<[1], [0], [0], [1], [0, 0, 1, 1], [], []>} : vector<4x32xbf16>, vector<32x128xbf16>, vector<4x128xf32> -> vector<4x128xf32>
    %38 = arith.addf %35, %37 : vector<4x128xf32>
    %39 = math.tanh %38 : vector<4x128xf32>
    %40 = arith.negf %38 : vector<4x128xf32>
    %41 = math.exp %40 : vector<4x128xf32>
    %cst_17 = arith.constant 1.000000e+00 : f32
    %42 = vector.broadcast %cst_17 : f32 to vector<4x128xf32>
    %43 = arith.addf %42, %41 : vector<4x128xf32>
    %44 = arith.divf %42, %43 : vector<4x128xf32>
    %45 = arith.select %23, %39, %44 : vector<4x128xi1>, vector<4x128xf32>
    %46 = vector.extract_strided_slice %45 {offsets = [0, 0], sizes = [4, 32], strides = [1, 1]} : vector<4x128xf32> to vector<4x32xf32>
    %47 = vector.extract_strided_slice %45 {offsets = [0, 32], sizes = [4, 32], strides = [1, 1]} : vector<4x128xf32> to vector<4x32xf32>
    %48 = vector.extract_strided_slice %45 {offsets = [0, 64], sizes = [4, 32], strides = [1, 1]} : vector<4x128xf32> to vector<4x32xf32>
    %49 = vector.extract_strided_slice %45 {offsets = [0, 96], sizes = [4, 32], strides = [1, 1]} : vector<4x128xf32> to vector<4x32xf32>
    %50 = arith.mulf %47, %33 : vector<4x32xf32>
    %51 = arith.mulf %46, %48 : vector<4x32xf32>
    %52 = arith.addf %50, %51 : vector<4x32xf32>
    %53 = math.tanh %52 : vector<4x32xf32>
    %54 = arith.mulf %49, %53 : vector<4x32xf32>
    %55 = arith.truncf %54 : vector<4x32xf32> to vector<4x32xbf16>
    %cst_18 = arith.constant dense<0.000000e+00> : vector<4x128xf32>
    %56 = tpu.matmul %55, %1, %cst_18 {dimension_numbers = #tpu.dot_dimension_numbers<[1], [0], [0], [1], [0, 0, 1, 1], [], []>} : vector<4x32xbf16>, vector<32x128xbf16>, vector<4x128xf32> -> vector<4x128xf32>
    %57 = arith.truncf %32 : vector<4x32xf32> to vector<4x32xbf16>
    %cst_19 = arith.constant dense<0.000000e+00> : vector<4x128xf32>
    %58 = tpu.matmul %57, %3, %cst_19 {dimension_numbers = #tpu.dot_dimension_numbers<[1], [0], [0], [1], [0, 0, 1, 1], [], []>} : vector<4x32xbf16>, vector<32x128xbf16>, vector<4x128xf32> -> vector<4x128xf32>
    %59 = arith.addf %56, %58 : vector<4x128xf32>
    %60 = arith.addf %59, %11 : vector<4x128xf32>
    %61 = math.tanh %60 : vector<4x128xf32>
    %62 = arith.negf %60 : vector<4x128xf32>
    %63 = math.exp %62 : vector<4x128xf32>
    %cst_20 = arith.constant 1.000000e+00 : f32
    %64 = vector.broadcast %cst_20 : f32 to vector<4x128xf32>
    %65 = arith.addf %64, %63 : vector<4x128xf32>
    %66 = arith.divf %64, %65 : vector<4x128xf32>
    %67 = arith.select %23, %61, %66 : vector<4x128xi1>, vector<4x128xf32>
    %68 = vector.extract_strided_slice %67 {offsets = [0, 0], sizes = [4, 32], strides = [1, 1]} : vector<4x128xf32> to vector<4x32xf32>
    %69 = vector.extract_strided_slice %67 {offsets = [0, 32], sizes = [4, 32], strides = [1, 1]} : vector<4x128xf32> to vector<4x32xf32>
    %70 = vector.extract_strided_slice %67 {offsets = [0, 64], sizes = [4, 32], strides = [1, 1]} : vector<4x128xf32> to vector<4x32xf32>
    %71 = vector.extract_strided_slice %67 {offsets = [0, 96], sizes = [4, 32], strides = [1, 1]} : vector<4x128xf32> to vector<4x32xf32>
    %72 = arith.mulf %69, %34 : vector<4x32xf32>
    %73 = arith.mulf %68, %70 : vector<4x32xf32>
    %74 = arith.addf %72, %73 : vector<4x32xf32>
    %75 = math.tanh %74 : vector<4x32xf32>
    %76 = arith.mulf %71, %75 : vector<4x32xf32>
    %77 = vector.extract_strided_slice %30 {offsets = [4, 0], sizes = [4, 128], strides = [1, 1]} : vector<32x128xf32> to vector<4x128xf32>
    %78 = arith.truncf %54 : vector<4x32xf32> to vector<4x32xbf16>
    %cst_21 = arith.constant dense<0.000000e+00> : vector<4x128xf32>
    %79 = tpu.matmul %78, %2, %cst_21 {dimension_numbers = #tpu.dot_dimension_numbers<[1], [0], [0], [1], [0, 0, 1, 1], [], []>} : vector<4x32xbf16>, vector<32x128xbf16>, vector<4x128xf32> -> vector<4x128xf32>
    %80 = arith.addf %77, %79 : vector<4x128xf32>
    %81 = math.tanh %80 : vector<4x128xf32>
    %82 = arith.negf %80 : vector<4x128xf32>
    %83 = math.exp %82 : vector<4x128xf32>
    %cst_22 = arith.constant 1.000000e+00 : f32
    %84 = vector.broadcast %cst_22 : f32 to vector<4x128xf32>
    %85 = arith.addf %84, %83 : vector<4x128xf32>
    %86 = arith.divf %84, %85 : vector<4x128xf32>
    %87 = arith.select %23, %81, %86 : vector<4x128xi1>, vector<4x128xf32>
    %88 = vector.extract_strided_slice %87 {offsets = [0, 0], sizes = [4, 32], strides = [1, 1]} : vector<4x128xf32> to vector<4x32xf32>
    %89 = vector.extract_strided_slice %87 {offsets = [0, 32], sizes = [4, 32], strides = [1, 1]} : vector<4x128xf32> to vector<4x32xf32>
    %90 = vector.extract_strided_slice %87 {offsets = [0, 64], sizes = [4, 32], strides = [1, 1]} : vector<4x128xf32> to vector<4x32xf32>
    %91 = vector.extract_strided_slice %87 {offsets = [0, 96], sizes = [4, 32], strides = [1, 1]} : vector<4x128xf32> to vector<4x32xf32>
    %92 = arith.mulf %89, %52 : vector<4x32xf32>
    %93 = arith.mulf %88, %90 : vector<4x32xf32>
    %94 = arith.addf %92, %93 : vector<4x32xf32>
    %95 = math.tanh %94 : vector<4x32xf32>
    %96 = arith.mulf %91, %95 : vector<4x32xf32>
    %97 = arith.truncf %96 : vector<4x32xf32> to vector<4x32xbf16>
    %cst_23 = arith.constant dense<0.000000e+00> : vector<4x128xf32>
    %98 = tpu.matmul %97, %1, %cst_23 {dimension_numbers = #tpu.dot_dimension_numbers<[1], [0], [0], [1], [0, 0, 1, 1], [], []>} : vector<4x32xbf16>, vector<32x128xbf16>, vector<4x128xf32> -> vector<4x128xf32>
    %99 = arith.truncf %76 : vector<4x32xf32> to vector<4x32xbf16>
    %cst_24 = arith.constant dense<0.000000e+00> : vector<4x128xf32>
    %100 = tpu.matmul %99, %3, %cst_24 {dimension_numbers = #tpu.dot_dimension_numbers<[1], [0], [0], [1], [0, 0, 1, 1], [], []>} : vector<4x32xbf16>, vector<32x128xbf16>, vector<4x128xf32> -> vector<4x128xf32>
    %101 = arith.addf %98, %100 : vector<4x128xf32>
    %102 = arith.addf %101, %11 : vector<4x128xf32>
    %103 = math.tanh %102 : vector<4x128xf32>
    %104 = arith.negf %102 : vector<4x128xf32>
    %105 = math.exp %104 : vector<4x128xf32>
    %cst_25 = arith.constant 1.000000e+00 : f32
    %106 = vector.broadcast %cst_25 : f32 to vector<4x128xf32>
    %107 = arith.addf %106, %105 : vector<4x128xf32>
    %108 = arith.divf %106, %107 : vector<4x128xf32>
    %109 = arith.select %23, %103, %108 : vector<4x128xi1>, vector<4x128xf32>
    %110 = vector.extract_strided_slice %109 {offsets = [0, 0], sizes = [4, 32], strides = [1, 1]} : vector<4x128xf32> to vector<4x32xf32>
    %111 = vector.extract_strided_slice %109 {offsets = [0, 32], sizes = [4, 32], strides = [1, 1]} : vector<4x128xf32> to vector<4x32xf32>
    %112 = vector.extract_strided_slice %109 {offsets = [0, 64], sizes = [4, 32], strides = [1, 1]} : vector<4x128xf32> to vector<4x32xf32>
    %113 = vector.extract_strided_slice %109 {offsets = [0, 96], sizes = [4, 32], strides = [1, 1]} : vector<4x128xf32> to vector<4x32xf32>
    %114 = arith.mulf %111, %74 : vector<4x32xf32>
    %115 = arith.mulf %110, %112 : vector<4x32xf32>
    %116 = arith.addf %114, %115 : vector<4x32xf32>
    %117 = math.tanh %116 : vector<4x32xf32>
    %118 = arith.mulf %113, %117 : vector<4x32xf32>
    %119 = vector.extract_strided_slice %30 {offsets = [8, 0], sizes = [4, 128], strides = [1, 1]} : vector<32x128xf32> to vector<4x128xf32>
    %120 = arith.truncf %96 : vector<4x32xf32> to vector<4x32xbf16>
    %cst_26 = arith.constant dense<0.000000e+00> : vector<4x128xf32>
    %121 = tpu.matmul %120, %2, %cst_26 {dimension_numbers = #tpu.dot_dimension_numbers<[1], [0], [0], [1], [0, 0, 1, 1], [], []>} : vector<4x32xbf16>, vector<32x128xbf16>, vector<4x128xf32> -> vector<4x128xf32>
    %122 = arith.addf %119, %121 : vector<4x128xf32>
    %123 = math.tanh %122 : vector<4x128xf32>
    %124 = arith.negf %122 : vector<4x128xf32>
    %125 = math.exp %124 : vector<4x128xf32>
    %cst_27 = arith.constant 1.000000e+00 : f32
    %126 = vector.broadcast %cst_27 : f32 to vector<4x128xf32>
    %127 = arith.addf %126, %125 : vector<4x128xf32>
    %128 = arith.divf %126, %127 : vector<4x128xf32>
    %129 = arith.select %23, %123, %128 : vector<4x128xi1>, vector<4x128xf32>
    %130 = vector.extract_strided_slice %129 {offsets = [0, 0], sizes = [4, 32], strides = [1, 1]} : vector<4x128xf32> to vector<4x32xf32>
    %131 = vector.extract_strided_slice %129 {offsets = [0, 32], sizes = [4, 32], strides = [1, 1]} : vector<4x128xf32> to vector<4x32xf32>
    %132 = vector.extract_strided_slice %129 {offsets = [0, 64], sizes = [4, 32], strides = [1, 1]} : vector<4x128xf32> to vector<4x32xf32>
    %133 = vector.extract_strided_slice %129 {offsets = [0, 96], sizes = [4, 32], strides = [1, 1]} : vector<4x128xf32> to vector<4x32xf32>
    %134 = arith.mulf %131, %94 : vector<4x32xf32>
    %135 = arith.mulf %130, %132 : vector<4x32xf32>
    %136 = arith.addf %134, %135 : vector<4x32xf32>
    %137 = math.tanh %136 : vector<4x32xf32>
    %138 = arith.mulf %133, %137 : vector<4x32xf32>
    %139 = arith.truncf %138 : vector<4x32xf32> to vector<4x32xbf16>
    %cst_28 = arith.constant dense<0.000000e+00> : vector<4x128xf32>
    %140 = tpu.matmul %139, %1, %cst_28 {dimension_numbers = #tpu.dot_dimension_numbers<[1], [0], [0], [1], [0, 0, 1, 1], [], []>} : vector<4x32xbf16>, vector<32x128xbf16>, vector<4x128xf32> -> vector<4x128xf32>
    %141 = arith.truncf %118 : vector<4x32xf32> to vector<4x32xbf16>
    %cst_29 = arith.constant dense<0.000000e+00> : vector<4x128xf32>
    %142 = tpu.matmul %141, %3, %cst_29 {dimension_numbers = #tpu.dot_dimension_numbers<[1], [0], [0], [1], [0, 0, 1, 1], [], []>} : vector<4x32xbf16>, vector<32x128xbf16>, vector<4x128xf32> -> vector<4x128xf32>
    %143 = arith.addf %140, %142 : vector<4x128xf32>
    %144 = arith.addf %143, %11 : vector<4x128xf32>
    %145 = math.tanh %144 : vector<4x128xf32>
    %146 = arith.negf %144 : vector<4x128xf32>
    %147 = math.exp %146 : vector<4x128xf32>
    %cst_30 = arith.constant 1.000000e+00 : f32
    %148 = vector.broadcast %cst_30 : f32 to vector<4x128xf32>
    %149 = arith.addf %148, %147 : vector<4x128xf32>
    %150 = arith.divf %148, %149 : vector<4x128xf32>
    %151 = arith.select %23, %145, %150 : vector<4x128xi1>, vector<4x128xf32>
    %152 = vector.extract_strided_slice %151 {offsets = [0, 0], sizes = [4, 32], strides = [1, 1]} : vector<4x128xf32> to vector<4x32xf32>
    %153 = vector.extract_strided_slice %151 {offsets = [0, 32], sizes = [4, 32], strides = [1, 1]} : vector<4x128xf32> to vector<4x32xf32>
    %154 = vector.extract_strided_slice %151 {offsets = [0, 64], sizes = [4, 32], strides = [1, 1]} : vector<4x128xf32> to vector<4x32xf32>
    %155 = vector.extract_strided_slice %151 {offsets = [0, 96], sizes = [4, 32], strides = [1, 1]} : vector<4x128xf32> to vector<4x32xf32>
    %156 = arith.mulf %153, %116 : vector<4x32xf32>
    %157 = arith.mulf %152, %154 : vector<4x32xf32>
    %158 = arith.addf %156, %157 : vector<4x32xf32>
    %159 = math.tanh %158 : vector<4x32xf32>
    %160 = arith.mulf %155, %159 : vector<4x32xf32>
    %161 = vector.extract_strided_slice %30 {offsets = [12, 0], sizes = [4, 128], strides = [1, 1]} : vector<32x128xf32> to vector<4x128xf32>
    %162 = arith.truncf %138 : vector<4x32xf32> to vector<4x32xbf16>
    %cst_31 = arith.constant dense<0.000000e+00> : vector<4x128xf32>
    %163 = tpu.matmul %162, %2, %cst_31 {dimension_numbers = #tpu.dot_dimension_numbers<[1], [0], [0], [1], [0, 0, 1, 1], [], []>} : vector<4x32xbf16>, vector<32x128xbf16>, vector<4x128xf32> -> vector<4x128xf32>
    %164 = arith.addf %161, %163 : vector<4x128xf32>
    %165 = math.tanh %164 : vector<4x128xf32>
    %166 = arith.negf %164 : vector<4x128xf32>
    %167 = math.exp %166 : vector<4x128xf32>
    %cst_32 = arith.constant 1.000000e+00 : f32
    %168 = vector.broadcast %cst_32 : f32 to vector<4x128xf32>
    %169 = arith.addf %168, %167 : vector<4x128xf32>
    %170 = arith.divf %168, %169 : vector<4x128xf32>
    %171 = arith.select %23, %165, %170 : vector<4x128xi1>, vector<4x128xf32>
    %172 = vector.extract_strided_slice %171 {offsets = [0, 0], sizes = [4, 32], strides = [1, 1]} : vector<4x128xf32> to vector<4x32xf32>
    %173 = vector.extract_strided_slice %171 {offsets = [0, 32], sizes = [4, 32], strides = [1, 1]} : vector<4x128xf32> to vector<4x32xf32>
    %174 = vector.extract_strided_slice %171 {offsets = [0, 64], sizes = [4, 32], strides = [1, 1]} : vector<4x128xf32> to vector<4x32xf32>
    %175 = vector.extract_strided_slice %171 {offsets = [0, 96], sizes = [4, 32], strides = [1, 1]} : vector<4x128xf32> to vector<4x32xf32>
    %176 = arith.mulf %173, %136 : vector<4x32xf32>
    %177 = arith.mulf %172, %174 : vector<4x32xf32>
    %178 = arith.addf %176, %177 : vector<4x32xf32>
    %179 = math.tanh %178 : vector<4x32xf32>
    %180 = arith.mulf %175, %179 : vector<4x32xf32>
    %c3_i32 = arith.constant 3 : i32
    %181 = vector.broadcast %c3_i32 : i32 to vector<4x32xi32>
    %182 = arith.cmpi slt, %24, %181 : vector<4x32xi32>
    %183 = arith.select %182, %180, %138 : vector<4x32xi1>, vector<4x32xf32>
    %184 = arith.select %182, %178, %136 : vector<4x32xi1>, vector<4x32xf32>
    %185 = arith.truncf %183 : vector<4x32xf32> to vector<4x32xbf16>
    %cst_33 = arith.constant dense<0.000000e+00> : vector<4x128xf32>
    %186 = tpu.matmul %185, %1, %cst_33 {dimension_numbers = #tpu.dot_dimension_numbers<[1], [0], [0], [1], [0, 0, 1, 1], [], []>} : vector<4x32xbf16>, vector<32x128xbf16>, vector<4x128xf32> -> vector<4x128xf32>
    %187 = arith.truncf %160 : vector<4x32xf32> to vector<4x32xbf16>
    %cst_34 = arith.constant dense<0.000000e+00> : vector<4x128xf32>
    %188 = tpu.matmul %187, %3, %cst_34 {dimension_numbers = #tpu.dot_dimension_numbers<[1], [0], [0], [1], [0, 0, 1, 1], [], []>} : vector<4x32xbf16>, vector<32x128xbf16>, vector<4x128xf32> -> vector<4x128xf32>
    %189 = arith.addf %186, %188 : vector<4x128xf32>
    %190 = arith.addf %189, %11 : vector<4x128xf32>
    %191 = math.tanh %190 : vector<4x128xf32>
    %192 = arith.negf %190 : vector<4x128xf32>
    %193 = math.exp %192 : vector<4x128xf32>
    %cst_35 = arith.constant 1.000000e+00 : f32
    %194 = vector.broadcast %cst_35 : f32 to vector<4x128xf32>
    %195 = arith.addf %194, %193 : vector<4x128xf32>
    %196 = arith.divf %194, %195 : vector<4x128xf32>
    %197 = arith.select %23, %191, %196 : vector<4x128xi1>, vector<4x128xf32>
    %198 = vector.extract_strided_slice %197 {offsets = [0, 0], sizes = [4, 32], strides = [1, 1]} : vector<4x128xf32> to vector<4x32xf32>
    %199 = vector.extract_strided_slice %197 {offsets = [0, 32], sizes = [4, 32], strides = [1, 1]} : vector<4x128xf32> to vector<4x32xf32>
    %200 = vector.extract_strided_slice %197 {offsets = [0, 64], sizes = [4, 32], strides = [1, 1]} : vector<4x128xf32> to vector<4x32xf32>
    %201 = vector.extract_strided_slice %197 {offsets = [0, 96], sizes = [4, 32], strides = [1, 1]} : vector<4x128xf32> to vector<4x32xf32>
    %202 = arith.mulf %199, %158 : vector<4x32xf32>
    %203 = arith.mulf %198, %200 : vector<4x32xf32>
    %204 = arith.addf %202, %203 : vector<4x32xf32>
    %205 = math.tanh %204 : vector<4x32xf32>
    %206 = arith.mulf %201, %205 : vector<4x32xf32>
    %c3_i32_36 = arith.constant 3 : i32
    %207 = vector.broadcast %c3_i32_36 : i32 to vector<4x32xi32>
    %208 = arith.cmpi slt, %24, %207 : vector<4x32xi32>
    %209 = arith.select %208, %206, %160 : vector<4x32xi1>, vector<4x32xf32>
    %210 = arith.select %208, %204, %158 : vector<4x32xi1>, vector<4x32xf32>
    %211 = vector.extract_strided_slice %30 {offsets = [16, 0], sizes = [4, 128], strides = [1, 1]} : vector<32x128xf32> to vector<4x128xf32>
    %212 = arith.truncf %183 : vector<4x32xf32> to vector<4x32xbf16>
    %cst_37 = arith.constant dense<0.000000e+00> : vector<4x128xf32>
    %213 = tpu.matmul %212, %2, %cst_37 {dimension_numbers = #tpu.dot_dimension_numbers<[1], [0], [0], [1], [0, 0, 1, 1], [], []>} : vector<4x32xbf16>, vector<32x128xbf16>, vector<4x128xf32> -> vector<4x128xf32>
    %214 = arith.addf %211, %213 : vector<4x128xf32>
    %215 = math.tanh %214 : vector<4x128xf32>
    %216 = arith.negf %214 : vector<4x128xf32>
    %217 = math.exp %216 : vector<4x128xf32>
    %cst_38 = arith.constant 1.000000e+00 : f32
    %218 = vector.broadcast %cst_38 : f32 to vector<4x128xf32>
    %219 = arith.addf %218, %217 : vector<4x128xf32>
    %220 = arith.divf %218, %219 : vector<4x128xf32>
    %221 = arith.select %23, %215, %220 : vector<4x128xi1>, vector<4x128xf32>
    %222 = vector.extract_strided_slice %221 {offsets = [0, 0], sizes = [4, 32], strides = [1, 1]} : vector<4x128xf32> to vector<4x32xf32>
    %223 = vector.extract_strided_slice %221 {offsets = [0, 32], sizes = [4, 32], strides = [1, 1]} : vector<4x128xf32> to vector<4x32xf32>
    %224 = vector.extract_strided_slice %221 {offsets = [0, 64], sizes = [4, 32], strides = [1, 1]} : vector<4x128xf32> to vector<4x32xf32>
    %225 = vector.extract_strided_slice %221 {offsets = [0, 96], sizes = [4, 32], strides = [1, 1]} : vector<4x128xf32> to vector<4x32xf32>
    %226 = arith.mulf %223, %184 : vector<4x32xf32>
    %227 = arith.mulf %222, %224 : vector<4x32xf32>
    %228 = arith.addf %226, %227 : vector<4x32xf32>
    %229 = math.tanh %228 : vector<4x32xf32>
    %230 = arith.mulf %225, %229 : vector<4x32xf32>
    %c3_i32_39 = arith.constant 3 : i32
    %231 = vector.broadcast %c3_i32_39 : i32 to vector<4x32xi32>
    %232 = arith.cmpi slt, %24, %231 : vector<4x32xi32>
    %233 = arith.select %232, %230, %183 : vector<4x32xi1>, vector<4x32xf32>
    %234 = arith.select %232, %228, %184 : vector<4x32xi1>, vector<4x32xf32>
    %235 = arith.truncf %233 : vector<4x32xf32> to vector<4x32xbf16>
    %cst_40 = arith.constant dense<0.000000e+00> : vector<4x128xf32>
    %236 = tpu.matmul %235, %1, %cst_40 {dimension_numbers = #tpu.dot_dimension_numbers<[1], [0], [0], [1], [0, 0, 1, 1], [], []>} : vector<4x32xbf16>, vector<32x128xbf16>, vector<4x128xf32> -> vector<4x128xf32>
    %237 = arith.truncf %209 : vector<4x32xf32> to vector<4x32xbf16>
    %cst_41 = arith.constant dense<0.000000e+00> : vector<4x128xf32>
    %238 = tpu.matmul %237, %3, %cst_41 {dimension_numbers = #tpu.dot_dimension_numbers<[1], [0], [0], [1], [0, 0, 1, 1], [], []>} : vector<4x32xbf16>, vector<32x128xbf16>, vector<4x128xf32> -> vector<4x128xf32>
    %239 = arith.addf %236, %238 : vector<4x128xf32>
    %240 = arith.addf %239, %11 : vector<4x128xf32>
    %241 = math.tanh %240 : vector<4x128xf32>
    %242 = arith.negf %240 : vector<4x128xf32>
    %243 = math.exp %242 : vector<4x128xf32>
    %cst_42 = arith.constant 1.000000e+00 : f32
    %244 = vector.broadcast %cst_42 : f32 to vector<4x128xf32>
    %245 = arith.addf %244, %243 : vector<4x128xf32>
    %246 = arith.divf %244, %245 : vector<4x128xf32>
    %247 = arith.select %23, %241, %246 : vector<4x128xi1>, vector<4x128xf32>
    %248 = vector.extract_strided_slice %247 {offsets = [0, 0], sizes = [4, 32], strides = [1, 1]} : vector<4x128xf32> to vector<4x32xf32>
    %249 = vector.extract_strided_slice %247 {offsets = [0, 32], sizes = [4, 32], strides = [1, 1]} : vector<4x128xf32> to vector<4x32xf32>
    %250 = vector.extract_strided_slice %247 {offsets = [0, 64], sizes = [4, 32], strides = [1, 1]} : vector<4x128xf32> to vector<4x32xf32>
    %251 = vector.extract_strided_slice %247 {offsets = [0, 96], sizes = [4, 32], strides = [1, 1]} : vector<4x128xf32> to vector<4x32xf32>
    %252 = arith.mulf %249, %210 : vector<4x32xf32>
    %253 = arith.mulf %248, %250 : vector<4x32xf32>
    %254 = arith.addf %252, %253 : vector<4x32xf32>
    %255 = math.tanh %254 : vector<4x32xf32>
    %256 = arith.mulf %251, %255 : vector<4x32xf32>
    %c3_i32_43 = arith.constant 3 : i32
    %257 = vector.broadcast %c3_i32_43 : i32 to vector<4x32xi32>
    %258 = arith.cmpi slt, %24, %257 : vector<4x32xi32>
    %259 = arith.select %258, %256, %209 : vector<4x32xi1>, vector<4x32xf32>
    %260 = arith.select %258, %254, %210 : vector<4x32xi1>, vector<4x32xf32>
    %261 = vector.extract_strided_slice %30 {offsets = [20, 0], sizes = [4, 128], strides = [1, 1]} : vector<32x128xf32> to vector<4x128xf32>
    %262 = arith.truncf %233 : vector<4x32xf32> to vector<4x32xbf16>
    %cst_44 = arith.constant dense<0.000000e+00> : vector<4x128xf32>
    %263 = tpu.matmul %262, %2, %cst_44 {dimension_numbers = #tpu.dot_dimension_numbers<[1], [0], [0], [1], [0, 0, 1, 1], [], []>} : vector<4x32xbf16>, vector<32x128xbf16>, vector<4x128xf32> -> vector<4x128xf32>
    %264 = arith.addf %261, %263 : vector<4x128xf32>
    %265 = math.tanh %264 : vector<4x128xf32>
    %266 = arith.negf %264 : vector<4x128xf32>
    %267 = math.exp %266 : vector<4x128xf32>
    %cst_45 = arith.constant 1.000000e+00 : f32
    %268 = vector.broadcast %cst_45 : f32 to vector<4x128xf32>
    %269 = arith.addf %268, %267 : vector<4x128xf32>
    %270 = arith.divf %268, %269 : vector<4x128xf32>
    %271 = arith.select %23, %265, %270 : vector<4x128xi1>, vector<4x128xf32>
    %272 = vector.extract_strided_slice %271 {offsets = [0, 0], sizes = [4, 32], strides = [1, 1]} : vector<4x128xf32> to vector<4x32xf32>
    %273 = vector.extract_strided_slice %271 {offsets = [0, 32], sizes = [4, 32], strides = [1, 1]} : vector<4x128xf32> to vector<4x32xf32>
    %274 = vector.extract_strided_slice %271 {offsets = [0, 64], sizes = [4, 32], strides = [1, 1]} : vector<4x128xf32> to vector<4x32xf32>
    %275 = vector.extract_strided_slice %271 {offsets = [0, 96], sizes = [4, 32], strides = [1, 1]} : vector<4x128xf32> to vector<4x32xf32>
    %276 = arith.mulf %273, %234 : vector<4x32xf32>
    %277 = arith.mulf %272, %274 : vector<4x32xf32>
    %278 = arith.addf %276, %277 : vector<4x32xf32>
    %279 = math.tanh %278 : vector<4x32xf32>
    %280 = arith.mulf %275, %279 : vector<4x32xf32>
    %c2_i32 = arith.constant 2 : i32
    %281 = vector.broadcast %c2_i32 : i32 to vector<4x32xi32>
    %282 = arith.cmpi slt, %24, %281 : vector<4x32xi32>
    %283 = arith.select %282, %280, %233 : vector<4x32xi1>, vector<4x32xf32>
    %284 = arith.select %282, %278, %234 : vector<4x32xi1>, vector<4x32xf32>
    %285 = arith.truncf %283 : vector<4x32xf32> to vector<4x32xbf16>
    %cst_46 = arith.constant dense<0.000000e+00> : vector<4x128xf32>
    %286 = tpu.matmul %285, %1, %cst_46 {dimension_numbers = #tpu.dot_dimension_numbers<[1], [0], [0], [1], [0, 0, 1, 1], [], []>} : vector<4x32xbf16>, vector<32x128xbf16>, vector<4x128xf32> -> vector<4x128xf32>
    %287 = arith.truncf %259 : vector<4x32xf32> to vector<4x32xbf16>
    %cst_47 = arith.constant dense<0.000000e+00> : vector<4x128xf32>
    %288 = tpu.matmul %287, %3, %cst_47 {dimension_numbers = #tpu.dot_dimension_numbers<[1], [0], [0], [1], [0, 0, 1, 1], [], []>} : vector<4x32xbf16>, vector<32x128xbf16>, vector<4x128xf32> -> vector<4x128xf32>
    %289 = arith.addf %286, %288 : vector<4x128xf32>
    %290 = arith.addf %289, %11 : vector<4x128xf32>
    %291 = math.tanh %290 : vector<4x128xf32>
    %292 = arith.negf %290 : vector<4x128xf32>
    %293 = math.exp %292 : vector<4x128xf32>
    %cst_48 = arith.constant 1.000000e+00 : f32
    %294 = vector.broadcast %cst_48 : f32 to vector<4x128xf32>
    %295 = arith.addf %294, %293 : vector<4x128xf32>
    %296 = arith.divf %294, %295 : vector<4x128xf32>
    %297 = arith.select %23, %291, %296 : vector<4x128xi1>, vector<4x128xf32>
    %298 = vector.extract_strided_slice %297 {offsets = [0, 0], sizes = [4, 32], strides = [1, 1]} : vector<4x128xf32> to vector<4x32xf32>
    %299 = vector.extract_strided_slice %297 {offsets = [0, 32], sizes = [4, 32], strides = [1, 1]} : vector<4x128xf32> to vector<4x32xf32>
    %300 = vector.extract_strided_slice %297 {offsets = [0, 64], sizes = [4, 32], strides = [1, 1]} : vector<4x128xf32> to vector<4x32xf32>
    %301 = vector.extract_strided_slice %297 {offsets = [0, 96], sizes = [4, 32], strides = [1, 1]} : vector<4x128xf32> to vector<4x32xf32>
    %302 = arith.mulf %299, %260 : vector<4x32xf32>
    %303 = arith.mulf %298, %300 : vector<4x32xf32>
    %304 = arith.addf %302, %303 : vector<4x32xf32>
    %305 = math.tanh %304 : vector<4x32xf32>
    %306 = arith.mulf %301, %305 : vector<4x32xf32>
    %c2_i32_49 = arith.constant 2 : i32
    %307 = vector.broadcast %c2_i32_49 : i32 to vector<4x32xi32>
    %308 = arith.cmpi slt, %24, %307 : vector<4x32xi32>
    %309 = arith.select %308, %306, %259 : vector<4x32xi1>, vector<4x32xf32>
    %310 = arith.select %308, %304, %260 : vector<4x32xi1>, vector<4x32xf32>
    %311 = vector.extract_strided_slice %30 {offsets = [24, 0], sizes = [4, 128], strides = [1, 1]} : vector<32x128xf32> to vector<4x128xf32>
    %312 = arith.truncf %283 : vector<4x32xf32> to vector<4x32xbf16>
    %cst_50 = arith.constant dense<0.000000e+00> : vector<4x128xf32>
    %313 = tpu.matmul %312, %2, %cst_50 {dimension_numbers = #tpu.dot_dimension_numbers<[1], [0], [0], [1], [0, 0, 1, 1], [], []>} : vector<4x32xbf16>, vector<32x128xbf16>, vector<4x128xf32> -> vector<4x128xf32>
    %314 = arith.addf %311, %313 : vector<4x128xf32>
    %315 = math.tanh %314 : vector<4x128xf32>
    %316 = arith.negf %314 : vector<4x128xf32>
    %317 = math.exp %316 : vector<4x128xf32>
    %cst_51 = arith.constant 1.000000e+00 : f32
    %318 = vector.broadcast %cst_51 : f32 to vector<4x128xf32>
    %319 = arith.addf %318, %317 : vector<4x128xf32>
    %320 = arith.divf %318, %319 : vector<4x128xf32>
    %321 = arith.select %23, %315, %320 : vector<4x128xi1>, vector<4x128xf32>
    %322 = vector.extract_strided_slice %321 {offsets = [0, 0], sizes = [4, 32], strides = [1, 1]} : vector<4x128xf32> to vector<4x32xf32>
    %323 = vector.extract_strided_slice %321 {offsets = [0, 32], sizes = [4, 32], strides = [1, 1]} : vector<4x128xf32> to vector<4x32xf32>
    %324 = vector.extract_strided_slice %321 {offsets = [0, 64], sizes = [4, 32], strides = [1, 1]} : vector<4x128xf32> to vector<4x32xf32>
    %325 = vector.extract_strided_slice %321 {offsets = [0, 96], sizes = [4, 32], strides = [1, 1]} : vector<4x128xf32> to vector<4x32xf32>
    %326 = arith.mulf %323, %284 : vector<4x32xf32>
    %327 = arith.mulf %322, %324 : vector<4x32xf32>
    %328 = arith.addf %326, %327 : vector<4x32xf32>
    %329 = math.tanh %328 : vector<4x32xf32>
    %330 = arith.mulf %325, %329 : vector<4x32xf32>
    %c2_i32_52 = arith.constant 2 : i32
    %331 = vector.broadcast %c2_i32_52 : i32 to vector<4x32xi32>
    %332 = arith.cmpi slt, %24, %331 : vector<4x32xi32>
    %333 = arith.select %332, %330, %283 : vector<4x32xi1>, vector<4x32xf32>
    %334 = arith.select %332, %328, %284 : vector<4x32xi1>, vector<4x32xf32>
    %335 = arith.truncf %333 : vector<4x32xf32> to vector<4x32xbf16>
    %cst_53 = arith.constant dense<0.000000e+00> : vector<4x128xf32>
    %336 = tpu.matmul %335, %1, %cst_53 {dimension_numbers = #tpu.dot_dimension_numbers<[1], [0], [0], [1], [0, 0, 1, 1], [], []>} : vector<4x32xbf16>, vector<32x128xbf16>, vector<4x128xf32> -> vector<4x128xf32>
    %337 = arith.truncf %309 : vector<4x32xf32> to vector<4x32xbf16>
    %cst_54 = arith.constant dense<0.000000e+00> : vector<4x128xf32>
    %338 = tpu.matmul %337, %3, %cst_54 {dimension_numbers = #tpu.dot_dimension_numbers<[1], [0], [0], [1], [0, 0, 1, 1], [], []>} : vector<4x32xbf16>, vector<32x128xbf16>, vector<4x128xf32> -> vector<4x128xf32>
    %339 = arith.addf %336, %338 : vector<4x128xf32>
    %340 = arith.addf %339, %11 : vector<4x128xf32>
    %341 = math.tanh %340 : vector<4x128xf32>
    %342 = arith.negf %340 : vector<4x128xf32>
    %343 = math.exp %342 : vector<4x128xf32>
    %cst_55 = arith.constant 1.000000e+00 : f32
    %344 = vector.broadcast %cst_55 : f32 to vector<4x128xf32>
    %345 = arith.addf %344, %343 : vector<4x128xf32>
    %346 = arith.divf %344, %345 : vector<4x128xf32>
    %347 = arith.select %23, %341, %346 : vector<4x128xi1>, vector<4x128xf32>
    %348 = vector.extract_strided_slice %347 {offsets = [0, 0], sizes = [4, 32], strides = [1, 1]} : vector<4x128xf32> to vector<4x32xf32>
    %349 = vector.extract_strided_slice %347 {offsets = [0, 32], sizes = [4, 32], strides = [1, 1]} : vector<4x128xf32> to vector<4x32xf32>
    %350 = vector.extract_strided_slice %347 {offsets = [0, 64], sizes = [4, 32], strides = [1, 1]} : vector<4x128xf32> to vector<4x32xf32>
    %351 = vector.extract_strided_slice %347 {offsets = [0, 96], sizes = [4, 32], strides = [1, 1]} : vector<4x128xf32> to vector<4x32xf32>
    %352 = arith.mulf %349, %310 : vector<4x32xf32>
    %353 = arith.mulf %348, %350 : vector<4x32xf32>
    %354 = arith.addf %352, %353 : vector<4x32xf32>
    %355 = math.tanh %354 : vector<4x32xf32>
    %356 = arith.mulf %351, %355 : vector<4x32xf32>
    %c2_i32_56 = arith.constant 2 : i32
    %357 = vector.broadcast %c2_i32_56 : i32 to vector<4x32xi32>
    %358 = arith.cmpi slt, %24, %357 : vector<4x32xi32>
    %359 = arith.select %358, %356, %309 : vector<4x32xi1>, vector<4x32xf32>
    %360 = arith.select %358, %354, %310 : vector<4x32xi1>, vector<4x32xf32>
    %361 = vector.extract_strided_slice %30 {offsets = [28, 0], sizes = [4, 128], strides = [1, 1]} : vector<32x128xf32> to vector<4x128xf32>
    %362 = arith.truncf %333 : vector<4x32xf32> to vector<4x32xbf16>
    %cst_57 = arith.constant dense<0.000000e+00> : vector<4x128xf32>
    %363 = tpu.matmul %362, %2, %cst_57 {dimension_numbers = #tpu.dot_dimension_numbers<[1], [0], [0], [1], [0, 0, 1, 1], [], []>} : vector<4x32xbf16>, vector<32x128xbf16>, vector<4x128xf32> -> vector<4x128xf32>
    %364 = arith.addf %361, %363 : vector<4x128xf32>
    %365 = math.tanh %364 : vector<4x128xf32>
    %366 = arith.negf %364 : vector<4x128xf32>
    %367 = math.exp %366 : vector<4x128xf32>
    %cst_58 = arith.constant 1.000000e+00 : f32
    %368 = vector.broadcast %cst_58 : f32 to vector<4x128xf32>
    %369 = arith.addf %368, %367 : vector<4x128xf32>
    %370 = arith.divf %368, %369 : vector<4x128xf32>
    %371 = arith.select %23, %365, %370 : vector<4x128xi1>, vector<4x128xf32>
    %372 = vector.extract_strided_slice %371 {offsets = [0, 0], sizes = [4, 32], strides = [1, 1]} : vector<4x128xf32> to vector<4x32xf32>
    %373 = vector.extract_strided_slice %371 {offsets = [0, 32], sizes = [4, 32], strides = [1, 1]} : vector<4x128xf32> to vector<4x32xf32>
    %374 = vector.extract_strided_slice %371 {offsets = [0, 64], sizes = [4, 32], strides = [1, 1]} : vector<4x128xf32> to vector<4x32xf32>
    %375 = vector.extract_strided_slice %371 {offsets = [0, 96], sizes = [4, 32], strides = [1, 1]} : vector<4x128xf32> to vector<4x32xf32>
    %376 = arith.mulf %373, %334 : vector<4x32xf32>
    %377 = arith.mulf %372, %374 : vector<4x32xf32>
    %378 = arith.addf %376, %377 : vector<4x32xf32>
    %379 = math.tanh %378 : vector<4x32xf32>
    %380 = arith.mulf %375, %379 : vector<4x32xf32>
    %c1_i32 = arith.constant 1 : i32
    %381 = vector.broadcast %c1_i32 : i32 to vector<4x32xi32>
    %382 = arith.cmpi slt, %24, %381 : vector<4x32xi32>
    %383 = arith.select %382, %380, %333 : vector<4x32xi1>, vector<4x32xf32>
    %384 = arith.truncf %383 : vector<4x32xf32> to vector<4x32xbf16>
    %cst_59 = arith.constant dense<0.000000e+00> : vector<4x128xf32>
    %385 = tpu.matmul %384, %1, %cst_59 {dimension_numbers = #tpu.dot_dimension_numbers<[1], [0], [0], [1], [0, 0, 1, 1], [], []>} : vector<4x32xbf16>, vector<32x128xbf16>, vector<4x128xf32> -> vector<4x128xf32>
    %386 = arith.truncf %359 : vector<4x32xf32> to vector<4x32xbf16>
    %cst_60 = arith.constant dense<0.000000e+00> : vector<4x128xf32>
    %387 = tpu.matmul %386, %3, %cst_60 {dimension_numbers = #tpu.dot_dimension_numbers<[1], [0], [0], [1], [0, 0, 1, 1], [], []>} : vector<4x32xbf16>, vector<32x128xbf16>, vector<4x128xf32> -> vector<4x128xf32>
    %388 = arith.addf %385, %387 : vector<4x128xf32>
    %389 = arith.addf %388, %11 : vector<4x128xf32>
    %390 = math.tanh %389 : vector<4x128xf32>
    %391 = arith.negf %389 : vector<4x128xf32>
    %392 = math.exp %391 : vector<4x128xf32>
    %cst_61 = arith.constant 1.000000e+00 : f32
    %393 = vector.broadcast %cst_61 : f32 to vector<4x128xf32>
    %394 = arith.addf %393, %392 : vector<4x128xf32>
    %395 = arith.divf %393, %394 : vector<4x128xf32>
    %396 = arith.select %23, %390, %395 : vector<4x128xi1>, vector<4x128xf32>
    %397 = vector.extract_strided_slice %396 {offsets = [0, 0], sizes = [4, 32], strides = [1, 1]} : vector<4x128xf32> to vector<4x32xf32>
    %398 = vector.extract_strided_slice %396 {offsets = [0, 32], sizes = [4, 32], strides = [1, 1]} : vector<4x128xf32> to vector<4x32xf32>
    %399 = vector.extract_strided_slice %396 {offsets = [0, 64], sizes = [4, 32], strides = [1, 1]} : vector<4x128xf32> to vector<4x32xf32>
    %400 = vector.extract_strided_slice %396 {offsets = [0, 96], sizes = [4, 32], strides = [1, 1]} : vector<4x128xf32> to vector<4x32xf32>
    %401 = arith.mulf %398, %360 : vector<4x32xf32>
    %402 = arith.mulf %397, %399 : vector<4x32xf32>
    %403 = arith.addf %401, %402 : vector<4x32xf32>
    %404 = math.tanh %403 : vector<4x32xf32>
    %405 = arith.mulf %400, %404 : vector<4x32xf32>
    %c1_i32_62 = arith.constant 1 : i32
    %406 = vector.broadcast %c1_i32_62 : i32 to vector<4x32xi32>
    %407 = arith.cmpi slt, %24, %406 : vector<4x32xi32>
    %408 = arith.select %407, %405, %359 : vector<4x32xi1>, vector<4x32xf32>
    %409 = arith.truncf %408 : vector<4x32xf32> to vector<4x32xbf16>
    %cst_63 = arith.constant dense<0.000000e+00> : vector<4x128xf32>
    %410 = tpu.matmul %409, %4, %cst_63 {dimension_numbers = #tpu.dot_dimension_numbers<[1], [0], [0], [1], [0, 0, 1, 1], [], []>} : vector<4x32xbf16>, vector<32x128xbf16>, vector<4x128xf32> -> vector<4x128xf32>
    %411 = arith.addf %410, %14 : vector<4x128xf32>
    %cst_64 = arith.constant 0.000000e+00 : f32
    %412 = vector.broadcast %cst_64 : f32 to vector<4x32xf32>
    %cst_65 = arith.constant 0.000000e+00 : f32
    %413 = vector.broadcast %cst_65 : f32 to vector<4x32xf32>
    %cst_66 = arith.constant 0.000000e+00 : f32
    %414 = vector.broadcast %cst_66 : f32 to vector<4x32xf32>
    %cst_67 = arith.constant 0.000000e+00 : f32
    %415 = vector.broadcast %cst_67 : f32 to vector<4x32xf32>
    %416 = arith.truncf %412 : vector<4x32xf32> to vector<4x32xbf16>
    %cst_68 = arith.constant dense<0.000000e+00> : vector<4x128xf32>
    %417 = tpu.matmul %416, %6, %cst_68 {dimension_numbers = #tpu.dot_dimension_numbers<[1], [0], [0], [1], [0, 0, 1, 1], [], []>} : vector<4x32xbf16>, vector<32x128xbf16>, vector<4x128xf32> -> vector<4x128xf32>
    %418 = arith.addf %411, %417 : vector<4x128xf32>
    %419 = math.tanh %418 : vector<4x128xf32>
    %420 = arith.negf %418 : vector<4x128xf32>
    %421 = math.exp %420 : vector<4x128xf32>
    %cst_69 = arith.constant 1.000000e+00 : f32
    %422 = vector.broadcast %cst_69 : f32 to vector<4x128xf32>
    %423 = arith.addf %422, %421 : vector<4x128xf32>
    %424 = arith.divf %422, %423 : vector<4x128xf32>
    %425 = arith.select %23, %419, %424 : vector<4x128xi1>, vector<4x128xf32>
    %426 = vector.extract_strided_slice %425 {offsets = [0, 0], sizes = [4, 32], strides = [1, 1]} : vector<4x128xf32> to vector<4x32xf32>
    %427 = vector.extract_strided_slice %425 {offsets = [0, 32], sizes = [4, 32], strides = [1, 1]} : vector<4x128xf32> to vector<4x32xf32>
    %428 = vector.extract_strided_slice %425 {offsets = [0, 64], sizes = [4, 32], strides = [1, 1]} : vector<4x128xf32> to vector<4x32xf32>
    %429 = vector.extract_strided_slice %425 {offsets = [0, 96], sizes = [4, 32], strides = [1, 1]} : vector<4x128xf32> to vector<4x32xf32>
    %430 = arith.mulf %427, %414 : vector<4x32xf32>
    %431 = arith.mulf %426, %428 : vector<4x32xf32>
    %432 = arith.addf %430, %431 : vector<4x32xf32>
    %433 = math.tanh %432 : vector<4x32xf32>
    %434 = arith.mulf %429, %433 : vector<4x32xf32>
    %435 = arith.truncf %434 : vector<4x32xf32> to vector<4x32xbf16>
    %cst_70 = arith.constant dense<0.000000e+00> : vector<4x128xf32>
    %436 = tpu.matmul %435, %5, %cst_70 {dimension_numbers = #tpu.dot_dimension_numbers<[1], [0], [0], [1], [0, 0, 1, 1], [], []>} : vector<4x32xbf16>, vector<32x128xbf16>, vector<4x128xf32> -> vector<4x128xf32>
    %437 = arith.truncf %413 : vector<4x32xf32> to vector<4x32xbf16>
    %cst_71 = arith.constant dense<0.000000e+00> : vector<4x128xf32>
    %438 = tpu.matmul %437, %7, %cst_71 {dimension_numbers = #tpu.dot_dimension_numbers<[1], [0], [0], [1], [0, 0, 1, 1], [], []>} : vector<4x32xbf16>, vector<32x128xbf16>, vector<4x128xf32> -> vector<4x128xf32>
    %439 = arith.addf %436, %438 : vector<4x128xf32>
    %440 = arith.addf %439, %17 : vector<4x128xf32>
    %441 = math.tanh %440 : vector<4x128xf32>
    %442 = arith.negf %440 : vector<4x128xf32>
    %443 = math.exp %442 : vector<4x128xf32>
    %cst_72 = arith.constant 1.000000e+00 : f32
    %444 = vector.broadcast %cst_72 : f32 to vector<4x128xf32>
    %445 = arith.addf %444, %443 : vector<4x128xf32>
    %446 = arith.divf %444, %445 : vector<4x128xf32>
    %447 = arith.select %23, %441, %446 : vector<4x128xi1>, vector<4x128xf32>
    %448 = vector.extract_strided_slice %447 {offsets = [0, 0], sizes = [4, 32], strides = [1, 1]} : vector<4x128xf32> to vector<4x32xf32>
    %449 = vector.extract_strided_slice %447 {offsets = [0, 32], sizes = [4, 32], strides = [1, 1]} : vector<4x128xf32> to vector<4x32xf32>
    %450 = vector.extract_strided_slice %447 {offsets = [0, 64], sizes = [4, 32], strides = [1, 1]} : vector<4x128xf32> to vector<4x32xf32>
    %451 = vector.extract_strided_slice %447 {offsets = [0, 96], sizes = [4, 32], strides = [1, 1]} : vector<4x128xf32> to vector<4x32xf32>
    %452 = arith.mulf %449, %415 : vector<4x32xf32>
    %453 = arith.mulf %448, %450 : vector<4x32xf32>
    %454 = arith.addf %452, %453 : vector<4x32xf32>
    %455 = math.tanh %454 : vector<4x32xf32>
    %456 = arith.mulf %451, %455 : vector<4x32xf32>
    %457 = arith.truncf %434 : vector<4x32xf32> to vector<4x32xbf16>
    %cst_73 = arith.constant dense<0.000000e+00> : vector<4x128xf32>
    %458 = tpu.matmul %457, %6, %cst_73 {dimension_numbers = #tpu.dot_dimension_numbers<[1], [0], [0], [1], [0, 0, 1, 1], [], []>} : vector<4x32xbf16>, vector<32x128xbf16>, vector<4x128xf32> -> vector<4x128xf32>
    %459 = arith.addf %411, %458 : vector<4x128xf32>
    %460 = math.tanh %459 : vector<4x128xf32>
    %461 = arith.negf %459 : vector<4x128xf32>
    %462 = math.exp %461 : vector<4x128xf32>
    %cst_74 = arith.constant 1.000000e+00 : f32
    %463 = vector.broadcast %cst_74 : f32 to vector<4x128xf32>
    %464 = arith.addf %463, %462 : vector<4x128xf32>
    %465 = arith.divf %463, %464 : vector<4x128xf32>
    %466 = arith.select %23, %460, %465 : vector<4x128xi1>, vector<4x128xf32>
    %467 = vector.extract_strided_slice %466 {offsets = [0, 0], sizes = [4, 32], strides = [1, 1]} : vector<4x128xf32> to vector<4x32xf32>
    %468 = vector.extract_strided_slice %466 {offsets = [0, 32], sizes = [4, 32], strides = [1, 1]} : vector<4x128xf32> to vector<4x32xf32>
    %469 = vector.extract_strided_slice %466 {offsets = [0, 64], sizes = [4, 32], strides = [1, 1]} : vector<4x128xf32> to vector<4x32xf32>
    %470 = vector.extract_strided_slice %466 {offsets = [0, 96], sizes = [4, 32], strides = [1, 1]} : vector<4x128xf32> to vector<4x32xf32>
    %471 = arith.mulf %468, %432 : vector<4x32xf32>
    %472 = arith.mulf %467, %469 : vector<4x32xf32>
    %473 = arith.addf %471, %472 : vector<4x32xf32>
    %474 = math.tanh %473 : vector<4x32xf32>
    %475 = arith.mulf %470, %474 : vector<4x32xf32>
    %476 = arith.truncf %475 : vector<4x32xf32> to vector<4x32xbf16>
    %cst_75 = arith.constant dense<0.000000e+00> : vector<4x128xf32>
    %477 = tpu.matmul %476, %5, %cst_75 {dimension_numbers = #tpu.dot_dimension_numbers<[1], [0], [0], [1], [0, 0, 1, 1], [], []>} : vector<4x32xbf16>, vector<32x128xbf16>, vector<4x128xf32> -> vector<4x128xf32>
    %478 = arith.truncf %456 : vector<4x32xf32> to vector<4x32xbf16>
    %cst_76 = arith.constant dense<0.000000e+00> : vector<4x128xf32>
    %479 = tpu.matmul %478, %7, %cst_76 {dimension_numbers = #tpu.dot_dimension_numbers<[1], [0], [0], [1], [0, 0, 1, 1], [], []>} : vector<4x32xbf16>, vector<32x128xbf16>, vector<4x128xf32> -> vector<4x128xf32>
    %480 = arith.addf %477, %479 : vector<4x128xf32>
    %481 = arith.addf %480, %17 : vector<4x128xf32>
    %482 = math.tanh %481 : vector<4x128xf32>
    %483 = arith.negf %481 : vector<4x128xf32>
    %484 = math.exp %483 : vector<4x128xf32>
    %cst_77 = arith.constant 1.000000e+00 : f32
    %485 = vector.broadcast %cst_77 : f32 to vector<4x128xf32>
    %486 = arith.addf %485, %484 : vector<4x128xf32>
    %487 = arith.divf %485, %486 : vector<4x128xf32>
    %488 = arith.select %23, %482, %487 : vector<4x128xi1>, vector<4x128xf32>
    %489 = vector.extract_strided_slice %488 {offsets = [0, 0], sizes = [4, 32], strides = [1, 1]} : vector<4x128xf32> to vector<4x32xf32>
    %490 = vector.extract_strided_slice %488 {offsets = [0, 32], sizes = [4, 32], strides = [1, 1]} : vector<4x128xf32> to vector<4x32xf32>
    %491 = vector.extract_strided_slice %488 {offsets = [0, 64], sizes = [4, 32], strides = [1, 1]} : vector<4x128xf32> to vector<4x32xf32>
    %492 = vector.extract_strided_slice %488 {offsets = [0, 96], sizes = [4, 32], strides = [1, 1]} : vector<4x128xf32> to vector<4x32xf32>
    %493 = arith.mulf %490, %454 : vector<4x32xf32>
    %494 = arith.mulf %489, %491 : vector<4x32xf32>
    %495 = arith.addf %493, %494 : vector<4x32xf32>
    %496 = math.tanh %495 : vector<4x32xf32>
    %497 = arith.mulf %492, %496 : vector<4x32xf32>
    %498 = arith.truncf %475 : vector<4x32xf32> to vector<4x32xbf16>
    %cst_78 = arith.constant dense<0.000000e+00> : vector<4x128xf32>
    %499 = tpu.matmul %498, %6, %cst_78 {dimension_numbers = #tpu.dot_dimension_numbers<[1], [0], [0], [1], [0, 0, 1, 1], [], []>} : vector<4x32xbf16>, vector<32x128xbf16>, vector<4x128xf32> -> vector<4x128xf32>
    %500 = arith.addf %411, %499 : vector<4x128xf32>
    %501 = math.tanh %500 : vector<4x128xf32>
    %502 = arith.negf %500 : vector<4x128xf32>
    %503 = math.exp %502 : vector<4x128xf32>
    %cst_79 = arith.constant 1.000000e+00 : f32
    %504 = vector.broadcast %cst_79 : f32 to vector<4x128xf32>
    %505 = arith.addf %504, %503 : vector<4x128xf32>
    %506 = arith.divf %504, %505 : vector<4x128xf32>
    %507 = arith.select %23, %501, %506 : vector<4x128xi1>, vector<4x128xf32>
    %508 = vector.extract_strided_slice %507 {offsets = [0, 0], sizes = [4, 32], strides = [1, 1]} : vector<4x128xf32> to vector<4x32xf32>
    %509 = vector.extract_strided_slice %507 {offsets = [0, 32], sizes = [4, 32], strides = [1, 1]} : vector<4x128xf32> to vector<4x32xf32>
    %510 = vector.extract_strided_slice %507 {offsets = [0, 64], sizes = [4, 32], strides = [1, 1]} : vector<4x128xf32> to vector<4x32xf32>
    %511 = vector.extract_strided_slice %507 {offsets = [0, 96], sizes = [4, 32], strides = [1, 1]} : vector<4x128xf32> to vector<4x32xf32>
    %512 = arith.mulf %509, %473 : vector<4x32xf32>
    %513 = arith.mulf %508, %510 : vector<4x32xf32>
    %514 = arith.addf %512, %513 : vector<4x32xf32>
    %515 = math.tanh %514 : vector<4x32xf32>
    %516 = arith.mulf %511, %515 : vector<4x32xf32>
    %517 = arith.truncf %516 : vector<4x32xf32> to vector<4x32xbf16>
    %cst_80 = arith.constant dense<0.000000e+00> : vector<4x128xf32>
    %518 = tpu.matmul %517, %5, %cst_80 {dimension_numbers = #tpu.dot_dimension_numbers<[1], [0], [0], [1], [0, 0, 1, 1], [], []>} : vector<4x32xbf16>, vector<32x128xbf16>, vector<4x128xf32> -> vector<4x128xf32>
    %519 = arith.truncf %497 : vector<4x32xf32> to vector<4x32xbf16>
    %cst_81 = arith.constant dense<0.000000e+00> : vector<4x128xf32>
    %520 = tpu.matmul %519, %7, %cst_81 {dimension_numbers = #tpu.dot_dimension_numbers<[1], [0], [0], [1], [0, 0, 1, 1], [], []>} : vector<4x32xbf16>, vector<32x128xbf16>, vector<4x128xf32> -> vector<4x128xf32>
    %521 = arith.addf %518, %520 : vector<4x128xf32>
    %522 = arith.addf %521, %17 : vector<4x128xf32>
    %523 = math.tanh %522 : vector<4x128xf32>
    %524 = arith.negf %522 : vector<4x128xf32>
    %525 = math.exp %524 : vector<4x128xf32>
    %cst_82 = arith.constant 1.000000e+00 : f32
    %526 = vector.broadcast %cst_82 : f32 to vector<4x128xf32>
    %527 = arith.addf %526, %525 : vector<4x128xf32>
    %528 = arith.divf %526, %527 : vector<4x128xf32>
    %529 = arith.select %23, %523, %528 : vector<4x128xi1>, vector<4x128xf32>
    %530 = vector.extract_strided_slice %529 {offsets = [0, 0], sizes = [4, 32], strides = [1, 1]} : vector<4x128xf32> to vector<4x32xf32>
    %531 = vector.extract_strided_slice %529 {offsets = [0, 32], sizes = [4, 32], strides = [1, 1]} : vector<4x128xf32> to vector<4x32xf32>
    %532 = vector.extract_strided_slice %529 {offsets = [0, 64], sizes = [4, 32], strides = [1, 1]} : vector<4x128xf32> to vector<4x32xf32>
    %533 = vector.extract_strided_slice %529 {offsets = [0, 96], sizes = [4, 32], strides = [1, 1]} : vector<4x128xf32> to vector<4x32xf32>
    %534 = arith.mulf %531, %495 : vector<4x32xf32>
    %535 = arith.mulf %530, %532 : vector<4x32xf32>
    %536 = arith.addf %534, %535 : vector<4x32xf32>
    %537 = math.tanh %536 : vector<4x32xf32>
    %538 = arith.mulf %533, %537 : vector<4x32xf32>
    %539 = arith.truncf %516 : vector<4x32xf32> to vector<4x32xbf16>
    %cst_83 = arith.constant dense<0.000000e+00> : vector<4x128xf32>
    %540 = tpu.matmul %539, %6, %cst_83 {dimension_numbers = #tpu.dot_dimension_numbers<[1], [0], [0], [1], [0, 0, 1, 1], [], []>} : vector<4x32xbf16>, vector<32x128xbf16>, vector<4x128xf32> -> vector<4x128xf32>
    %541 = arith.addf %411, %540 : vector<4x128xf32>
    %542 = math.tanh %541 : vector<4x128xf32>
    %543 = arith.negf %541 : vector<4x128xf32>
    %544 = math.exp %543 : vector<4x128xf32>
    %cst_84 = arith.constant 1.000000e+00 : f32
    %545 = vector.broadcast %cst_84 : f32 to vector<4x128xf32>
    %546 = arith.addf %545, %544 : vector<4x128xf32>
    %547 = arith.divf %545, %546 : vector<4x128xf32>
    %548 = arith.select %23, %542, %547 : vector<4x128xi1>, vector<4x128xf32>
    %549 = vector.extract_strided_slice %548 {offsets = [0, 0], sizes = [4, 32], strides = [1, 1]} : vector<4x128xf32> to vector<4x32xf32>
    %550 = vector.extract_strided_slice %548 {offsets = [0, 32], sizes = [4, 32], strides = [1, 1]} : vector<4x128xf32> to vector<4x32xf32>
    %551 = vector.extract_strided_slice %548 {offsets = [0, 64], sizes = [4, 32], strides = [1, 1]} : vector<4x128xf32> to vector<4x32xf32>
    %552 = vector.extract_strided_slice %548 {offsets = [0, 96], sizes = [4, 32], strides = [1, 1]} : vector<4x128xf32> to vector<4x32xf32>
    %553 = arith.mulf %550, %514 : vector<4x32xf32>
    %554 = arith.mulf %549, %551 : vector<4x32xf32>
    %555 = arith.addf %553, %554 : vector<4x32xf32>
    %556 = math.tanh %555 : vector<4x32xf32>
    %557 = arith.mulf %552, %556 : vector<4x32xf32>
    %558 = arith.truncf %557 : vector<4x32xf32> to vector<4x32xbf16>
    %cst_85 = arith.constant dense<0.000000e+00> : vector<4x128xf32>
    %559 = tpu.matmul %558, %5, %cst_85 {dimension_numbers = #tpu.dot_dimension_numbers<[1], [0], [0], [1], [0, 0, 1, 1], [], []>} : vector<4x32xbf16>, vector<32x128xbf16>, vector<4x128xf32> -> vector<4x128xf32>
    %560 = arith.truncf %538 : vector<4x32xf32> to vector<4x32xbf16>
    %cst_86 = arith.constant dense<0.000000e+00> : vector<4x128xf32>
    %561 = tpu.matmul %560, %7, %cst_86 {dimension_numbers = #tpu.dot_dimension_numbers<[1], [0], [0], [1], [0, 0, 1, 1], [], []>} : vector<4x32xbf16>, vector<32x128xbf16>, vector<4x128xf32> -> vector<4x128xf32>
    %562 = arith.addf %559, %561 : vector<4x128xf32>
    %563 = arith.addf %562, %17 : vector<4x128xf32>
    %564 = math.tanh %563 : vector<4x128xf32>
    %565 = arith.negf %563 : vector<4x128xf32>
    %566 = math.exp %565 : vector<4x128xf32>
    %cst_87 = arith.constant 1.000000e+00 : f32
    %567 = vector.broadcast %cst_87 : f32 to vector<4x128xf32>
    %568 = arith.addf %567, %566 : vector<4x128xf32>
    %569 = arith.divf %567, %568 : vector<4x128xf32>
    %570 = arith.select %23, %564, %569 : vector<4x128xi1>, vector<4x128xf32>
    %571 = vector.extract_strided_slice %570 {offsets = [0, 0], sizes = [4, 32], strides = [1, 1]} : vector<4x128xf32> to vector<4x32xf32>
    %572 = vector.extract_strided_slice %570 {offsets = [0, 32], sizes = [4, 32], strides = [1, 1]} : vector<4x128xf32> to vector<4x32xf32>
    %573 = vector.extract_strided_slice %570 {offsets = [0, 64], sizes = [4, 32], strides = [1, 1]} : vector<4x128xf32> to vector<4x32xf32>
    %574 = vector.extract_strided_slice %570 {offsets = [0, 96], sizes = [4, 32], strides = [1, 1]} : vector<4x128xf32> to vector<4x32xf32>
    %575 = arith.mulf %572, %536 : vector<4x32xf32>
    %576 = arith.mulf %571, %573 : vector<4x32xf32>
    %577 = arith.addf %575, %576 : vector<4x32xf32>
    %578 = math.tanh %577 : vector<4x32xf32>
    %579 = arith.mulf %574, %578 : vector<4x32xf32>
    %580 = arith.truncf %557 : vector<4x32xf32> to vector<4x32xbf16>
    %cst_88 = arith.constant dense<0.000000e+00> : vector<4x128xf32>
    %581 = tpu.matmul %580, %6, %cst_88 {dimension_numbers = #tpu.dot_dimension_numbers<[1], [0], [0], [1], [0, 0, 1, 1], [], []>} : vector<4x32xbf16>, vector<32x128xbf16>, vector<4x128xf32> -> vector<4x128xf32>
    %582 = arith.addf %411, %581 : vector<4x128xf32>
    %583 = math.tanh %582 : vector<4x128xf32>
    %584 = arith.negf %582 : vector<4x128xf32>
    %585 = math.exp %584 : vector<4x128xf32>
    %cst_89 = arith.constant 1.000000e+00 : f32
    %586 = vector.broadcast %cst_89 : f32 to vector<4x128xf32>
    %587 = arith.addf %586, %585 : vector<4x128xf32>
    %588 = arith.divf %586, %587 : vector<4x128xf32>
    %589 = arith.select %23, %583, %588 : vector<4x128xi1>, vector<4x128xf32>
    %590 = vector.extract_strided_slice %589 {offsets = [0, 0], sizes = [4, 32], strides = [1, 1]} : vector<4x128xf32> to vector<4x32xf32>
    %591 = vector.extract_strided_slice %589 {offsets = [0, 32], sizes = [4, 32], strides = [1, 1]} : vector<4x128xf32> to vector<4x32xf32>
    %592 = vector.extract_strided_slice %589 {offsets = [0, 64], sizes = [4, 32], strides = [1, 1]} : vector<4x128xf32> to vector<4x32xf32>
    %593 = vector.extract_strided_slice %589 {offsets = [0, 96], sizes = [4, 32], strides = [1, 1]} : vector<4x128xf32> to vector<4x32xf32>
    %594 = arith.mulf %591, %555 : vector<4x32xf32>
    %595 = arith.mulf %590, %592 : vector<4x32xf32>
    %596 = arith.addf %594, %595 : vector<4x32xf32>
    %597 = math.tanh %596 : vector<4x32xf32>
    %598 = arith.mulf %593, %597 : vector<4x32xf32>
    %599 = arith.truncf %598 : vector<4x32xf32> to vector<4x32xbf16>
    %cst_90 = arith.constant dense<0.000000e+00> : vector<4x128xf32>
    %600 = tpu.matmul %599, %5, %cst_90 {dimension_numbers = #tpu.dot_dimension_numbers<[1], [0], [0], [1], [0, 0, 1, 1], [], []>} : vector<4x32xbf16>, vector<32x128xbf16>, vector<4x128xf32> -> vector<4x128xf32>
    %601 = arith.truncf %579 : vector<4x32xf32> to vector<4x32xbf16>
    %cst_91 = arith.constant dense<0.000000e+00> : vector<4x128xf32>
    %602 = tpu.matmul %601, %7, %cst_91 {dimension_numbers = #tpu.dot_dimension_numbers<[1], [0], [0], [1], [0, 0, 1, 1], [], []>} : vector<4x32xbf16>, vector<32x128xbf16>, vector<4x128xf32> -> vector<4x128xf32>
    %603 = arith.addf %600, %602 : vector<4x128xf32>
    %604 = arith.addf %603, %17 : vector<4x128xf32>
    %605 = math.tanh %604 : vector<4x128xf32>
    %606 = arith.negf %604 : vector<4x128xf32>
    %607 = math.exp %606 : vector<4x128xf32>
    %cst_92 = arith.constant 1.000000e+00 : f32
    %608 = vector.broadcast %cst_92 : f32 to vector<4x128xf32>
    %609 = arith.addf %608, %607 : vector<4x128xf32>
    %610 = arith.divf %608, %609 : vector<4x128xf32>
    %611 = arith.select %23, %605, %610 : vector<4x128xi1>, vector<4x128xf32>
    %612 = vector.extract_strided_slice %611 {offsets = [0, 0], sizes = [4, 32], strides = [1, 1]} : vector<4x128xf32> to vector<4x32xf32>
    %613 = vector.extract_strided_slice %611 {offsets = [0, 32], sizes = [4, 32], strides = [1, 1]} : vector<4x128xf32> to vector<4x32xf32>
    %614 = vector.extract_strided_slice %611 {offsets = [0, 64], sizes = [4, 32], strides = [1, 1]} : vector<4x128xf32> to vector<4x32xf32>
    %615 = vector.extract_strided_slice %611 {offsets = [0, 96], sizes = [4, 32], strides = [1, 1]} : vector<4x128xf32> to vector<4x32xf32>
    %616 = arith.mulf %613, %577 : vector<4x32xf32>
    %617 = arith.mulf %612, %614 : vector<4x32xf32>
    %618 = arith.addf %616, %617 : vector<4x32xf32>
    %619 = math.tanh %618 : vector<4x32xf32>
    %620 = arith.mulf %615, %619 : vector<4x32xf32>
    %621 = tpu.concatenate %456, %497, %538, %579, %620 in 0 : vector<4x32xf32>, vector<4x32xf32>, vector<4x32xf32>, vector<4x32xf32>, vector<4x32xf32> -> vector<20x32xf32>
    %c0_93 = arith.constant 0 : index
    %c0_94 = arith.constant 0 : index
    %622 = vector.load %arg2[%c0_93, %c0_94] : memref<32x128xbf16, #tpu.memory_space<vmem>>, vector<32x128xbf16>
    %623 = arith.truncf %621 : vector<20x32xf32> to vector<20x32xbf16>
    %cst_95 = arith.constant dense<0.000000e+00> : vector<20x128xf32>
    %624 = tpu.matmul %623, %622, %cst_95 {dimension_numbers = #tpu.dot_dimension_numbers<[1], [0], [0], [1], [0, 0, 1, 1], [], []>} : vector<20x32xbf16>, vector<32x128xbf16>, vector<20x128xf32> -> vector<20x128xf32>
    %c0_96 = arith.constant 0 : index
    %c0_97 = arith.constant 0 : index
    %625 = vector.load %arg4[%c0_96, %c0_97] : memref<1x128xf32, #tpu.memory_space<vmem>>, vector<1x128xf32>
    %626 = vector.shape_cast %625 : vector<1x128xf32> to vector<1x128xf32>
    %627 = vector.broadcast %626 : vector<1x128xf32> to vector<20x128xf32>
    %628 = arith.addf %624, %627 : vector<20x128xf32>
    %c0_98 = arith.constant 0 : index
    %c0_99 = arith.constant 0 : index
    %629 = vector.load %arg5[%c0_98, %c0_99] : memref<20x128xf32, #tpu.memory_space<vmem>>, vector<20x128xf32>
    tpu.vector_store %arg5[%c0_98, %c0_99], %628 {strides = array<i32>} : memref<20x128xf32, #tpu.memory_space<vmem>>, vector<20x128xf32>,
    return
  }
}

</mosaic_0001>

<bundles_post_ra>
// kernel: custom-call.4
= control target key start
LH: loop header
LB: loop body
LE: loop exit
PB: predicated region body
PF: predicated region fallthrough
CT: control target
= control target key end

     0   :  { %s6_s0 = inlined_call_operand.hbm [shape: f32[14,64], index: 0, kind: output, shape index: {}]  }

// kernel: fwd.1
= control target key start
LH: loop header
LB: loop body
LE: loop exit
PB: predicated region body
PF: predicated region fallthrough
CT: control target
= control target key end

     0   :  { %v3696_v0 = vmov 0.0   ;;  %vm3697_vm0 = vmmov 0   ;;  %vm103_vm1 = vcmask 261120   ;;  %v3698_v7 = vmov 0   ;;  %s3699_s6 = smov 64   ;;  %s3700_s7 = smov 32   ;;  %s4538_s1 = inlined_call_operand.vmem [shape: bf16[256,128], index: 1, kind: input, shape index: {}]   ;;  %s4539_s0 = inlined_call_operand.vmem [shape: bf16[32,32], index: 0, kind: input, shape index: {}]   ;;  %s4540_s3 = inlined_call_operand.vmem [shape: f32[4,128], index: 3, kind: input, shape index: {}]   ;;  %s4541_s2 = inlined_call_operand.vmem [shape: bf16[32,128], index: 2, kind: input, shape index: {}]   ;;  %s4542_s4 = inlined_call_operand.vmem [shape: f32[1,128], index: 4, kind: input, shape index: {}]   ;;  %s4543_s5 = inlined_call_operand.vmem [shape: f32[20,128], index: 5, kind: output, shape index: {}]  }
   0x1   :  { %3112 = vmatprep.subr.bf16.mxu1 %v3696_v0  ;;  %v3461_v1 = vld [vmem:[%s4538_s1 + $0x8] sm:$0xff]   ;;  %3116 = vmatprep.mubr.msk.bf16.mxu1 %vm3697_vm0, %v3696_v0  ;;  %v3741_v2 = vld [vmem:[%s4538_s1 + $0x18] sm:$0xff]   ;;  %v3463_v3 = vld [vmem:[%s4538_s1] sm:$0xff]   ;;  %v54_v8 = vlaneseq  ;;  %s3701_s16 = smov 96   ;;  %vm2794_vm8 = vcmask 1043456  }
   0x2   :  { %3104 = vmatprep.subr.bf16.mxu0 %v3461_v1  ;;  %3113 = vmatpush3.bf16.msra.mxu1 %v3741_v2  ;;  %v3750_v4 = vld [vmem:[%s4538_s1 + $0x10] sm:$0xff]   ;;  %v3465_v5 = vld [vmem:[%s4539_s0] sm:$0xff]   ;;  %v3466_v6 = vld [vmem:[%s4539_s0 + $0x8] sm:$0xff]  }
   0x3   :  { %3105 = vmatpush3.bf16.msra.mxu0 %v3461_v1  ;;  %3114 = vmatprep.subr.bf16.mxu1 %v3696_v0  ;;  %v3769_v9 = vshrl.u32 %v54_v8, 7  ;;  %v3775_v11 = vld [vmem:[%s4540_s3] sm:$0xf]  ;;  %v67_v27 = vand.u32 127, %v54_v8  ;;  %v3804_v37 = vld [vmem:[%s4538_s1 + $0x38] sm:$0xff]   ;;  %v3809_v38 = vld [vmem:[%s4538_s1 + $0x28] sm:$0xff]  }
   0x4   :  { %3106 = vmatprep.subr.bf16.mxu0 %v3463_v3  ;;  %3108 = vmatprep.mubr.msk.bf16.mxu0 %vm103_vm1, %v3465_v5  ;;  %v3815_v39 = vld [vmem:[%s4538_s1 + $0x30] sm:$0xff]   ;;  %v3821_v40 = vld [vmem:[%s4538_s1 + $0x20] sm:$0xff]   ;;  %v3479_v28 = vld [vmem:[%s4541_s2 + $0x8] sm:$0xff]  }
   0x5   :  { %v79_v10 = vsub.s32 0, %v3769_v9  ;;  %vm68_vm2 = vcmp.ge.s32.totalorder %v67_v27, 64  ;;  %vm69_vm3 = vcmp.lt.s32.totalorder %v67_v27, 96  ;;  %v56_v51 = vsub.s32 1, %v3769_v9 }
   0x6   :  { %3115 = vmatpush3.bf16.msra.mxu1 %v3750_v4  ;;  %vm3790_vm4 = vmand %vm68_vm2, %vm69_vm3  ;;  %vm831_vm5 = vcmp.lt.s32.totalorder %v3769_v9, 3  ;;  %vm1236_vm6 = vcmp.lt.s32.totalorder %v3769_v9, 2  ;;  %vm1641_vm7 = vcmp.lt.s32.totalorder %v3769_v9, 1 }
   0x7   :  { %3107 = vmatpush3.bf16.msra.mxu0 %v3463_v3  ;;  %3128 = vmatprep.subr.bf16.mxu1 %v3696_v0  ;;  %v3778_v12 = vrot.slane %v3775_v11, %v79_v10  ;;  %v3856_v52 = vrot.slane %v3775_v11, %v56_v51 }
   0x8   :  { %3120 = vmatprep.subr.bf16.mxu0 %v3696_v0 }
   0x9   :  { %3117 = vmatmul.mubr.bf16.vlgmr.msra.gmra.mxu1 %v3698_v7 }
   0xa   :  { %3109 = vmatmul.mubr.msk.bf16.vlgmr.msra.gmra.mxu0 %vm103_vm1, %v3466_v6  ;;  %3132 = vmatprep.mubr.msk.bf16.mxu1 %vm3697_vm0, %v3696_v0 }
   0xb   :  { %3124 = vmatprep.mubr.msk.bf16.mxu0 %vm3697_vm0, %v3696_v0  ;;  %3121 = vmatpush3.bf16.msra.mxu0 %v3804_v37 }
   0xc   :  { %3129 = vmatpush3.bf16.msra.mxu1 %v3809_v38  ;;  %3122 = vmatprep.subr.bf16.mxu0 %v3696_v0 }
   0xd   :  { %3130 = vmatprep.subr.bf16.mxu1 %v3696_v0 }
   0xf   :  { %3123 = vmatpush3.bf16.msra.mxu0 %v3815_v39 }
  0x10   :  { %3131 = vmatpush3.bf16.msra.mxu1 %v3821_v40  ;;  %3136 = vmatprep.subr.bf16.mxu0 %v3696_v0 }
  0x11   :  { %3144 = vmatprep.subr.bf16.mxu1 %v3696_v0 }
  0x12   :  { %3125 = vmatmul.mubr.bf16.vlgmr.msra.gmra.mxu0 %v3698_v7 }
  0x13   :  { %3137 = vmatpush3.bf16.msra.mxu0 %v3741_v2  ;;  %3140 = vmatprep.mubr.msk.bf16.mxu0 %vm3697_vm0, %v3696_v0 }
  0x14   :  { %3138 = vmatprep.subr.bf16.mxu0 %v3696_v0 }
  0x17   :  { %3139 = vmatpush3.bf16.msra.mxu0 %v3750_v4 }
  0x18   :  { %3152 = vmatprep.subr.bf16.mxu0 %v3696_v0 }
  0xc9   :  { %v208_v13 = vpop.f32.mrf.mxu1 }
  0xca   :  { %v3110_v14 = vpop.f32.mrf.mxu0 }
  0xcb   :  { %v3781_v15 = vadd.f32 %v3110_v14, %v3778_v12  ;;  %v3118_v16 = vpop.f32.mrf.mxu1 }
  0xcc   :  { %v144_v17 = vpop.f32.mrf.mxu0 }
  0xcd   :  { %v3784_v18 = vadd.f32 %v144_v17, %v3778_v12  ;;  %v211_v19 = vpop.f32.mrf.mxu1 }
  0xce   :  { %v3111_v20 = vpop.f32.mrf.mxu0 }
  0xcf   :  { %v214_v21 = vadd.f32 %v208_v13, %v3784_v18  ;;  %v3788_v22 = vadd.f32 %v3111_v20, %v3778_v12  ;;  %v3119_v23 = vpop.f32.mrf.mxu1 }
  0xd0   :  { %v3838_v45 = vpop.f32.mrf.mxu0 }
  0xd1   :  { %v2897_v24 = vmul.f32 -1.442695, %v214_v21 }
  0xd2   :  { %v287_v46 = vpop.f32.mrf.mxu0 }
  0xd3   :  { %3481 = vpow2.f32 %v2897_v24 }
  0xd4   :  { %3483 = vtanh.f32 %v214_v21  ;;  %v3126_v47 = vpop.f32.mrf.mxu0 }
  0xd6   :  { %v290_v48 = vpop.f32.mrf.mxu0 }
  0xd8   :  { %v3127_v49 = vpop.f32.mrf.mxu0 }
  0xe0   :  { %v3482_v25 = vpop.eup %3481 }
  0xe1   :  { %v219_v26 = vadd.f32 1.0, %v3482_v25  ;;  %v3484_v29 = vpop.eup %3483 }
  0xe3   :  { %3485 = vrcp.f32 %v219_v26 }
  0xf0   :  { %v3486_v30 = vpop.eup %3485 }
  0xf1   :  { %v222_v31 = vsel %vm3790_vm4, %v3484_v29, %v3486_v30 }
  0xf2   :  { %225 = vrot.lane.b32.xlu0 %v222_v31, %s3699_s6  ;;  %v223_v34 = vmul.f32 0.0, %v222_v31 }
 0x164   :  { %v226_v32 = vpop.permute.xlu0 %225 }
 0x165   :  { %v228_v33 = vmul.f32 %v226_v32, %v222_v31 }
 0x167   :  { %230 = vrot.lane.b32.xlu0 %v228_v33, %s3700_s7 }
 0x1d9   :  { %v231_v35 = vpop.permute.xlu0 %230 }
 0x1da   :  { %v3798_v36 = vadd.f32 %v231_v35, %v223_v34 }
 0x1dc   :  { %3487 = vtanh.f32 %v3798_v36  ;;  %v430_v25 = vrot.slane %v3798_v36, 4 }
 0x1e9   :  { %v3488_v41 = vpop.eup %3487 }
 0x1ea   :  { %236 = vrot.lane.b32.xlu1 %v3488_v41, %s3699_s6 }
 0x25c   :  { %v237_v42 = vpop.permute.xlu1 %236 }
 0x25d   :  { %v239_v43 = vmul.f32 %v237_v42, %v222_v31 }
 0x25f   :  { %v240_v44 = vpack.c.bf16 %v239_v43, %v239_v43 }
 0x261   :  { %294 = vrot.lane.b32.xlu1 %v240_v44, %s3700_s7 }
 0x2d3   :  { %v295_v50 = vpop.permute.xlu1 %294 }
 0x2d4   :  { %3133 = vmatmul.mubr.msk.bf16.vlgmr.msra.gmra.mxu1 %vm103_vm1, %v295_v50  ;;  %3141 = vmatmul.mubr.msk.bf16.vlgmr.msra.gmra.mxu0 %vm103_vm1, %v295_v50 }
 0x2d5   :  { %3145 = vmatpush3.bf16.msra.mxu1 %v3804_v37  ;;  %3153 = vmatpush3.bf16.msra.mxu0 %v3809_v38 }
 0x2d6   :  { %3146 = vmatprep.subr.bf16.mxu1 %v3696_v0  ;;  %3154 = vmatprep.subr.bf16.mxu0 %v3696_v0 }
 0x2d7   :  { %3148 = vmatprep.mubr.msk.bf16.mxu1 %vm3697_vm0, %v3696_v0  ;;  %3156 = vmatprep.mubr.msk.bf16.mxu0 %vm3697_vm0, %v3696_v0 }
 0x2d9   :  { %3147 = vmatpush3.bf16.msra.mxu1 %v3815_v39  ;;  %3155 = vmatpush3.bf16.msra.mxu0 %v3821_v40 }
 0x2da   :  { %3160 = vmatprep.subr.bf16.mxu1 %v3696_v0  ;;  %3168 = vmatprep.subr.bf16.mxu0 %v3696_v0 }
 0x394   :  { %v345_v53 = vpop.f32.mrf.mxu1  ;;  %v411_v54 = vpop.f32.mrf.mxu0 }
 0x395   :  { %v346_v55 = vadd.f32 %v345_v53, %v287_v46  ;;  %v418_v56 = vrot.slane %v411_v54, 4 }
 0x396   :  { %v3134_v57 = vpop.f32.mrf.mxu1  ;;  %v3142_v58 = vpop.f32.mrf.mxu0 }
 0x397   :  { %v351_v59 = vadd.f32 %v346_v55, %v3856_v52  ;;  %v420_v60 = vadd.f32 %v418_v56, %v3784_v18  ;;  %v3903_v58 = vadd.f32 %v3838_v45, %v3778_v12 }
 0x398   :  { %v348_v61 = vpop.f32.mrf.mxu1  ;;  %v414_v62 = vpop.f32.mrf.mxu0 }
 0x399   :  { %v2903_v63 = vmul.f32 -1.442695, %v351_v59  ;;  %v2905_v1 = vmul.f32 -1.442695, %v420_v60 }
 0x39a   :  { %v3135_v3 = vpop.f32.mrf.mxu1  ;;  %v3143_v5 = vpop.f32.mrf.mxu0 }
 0x39b   :  { %3489 = vpow2.f32 %v2903_v63 }
 0x39c   :  { %3491 = vpow2.f32 %v2905_v1 }
 0x39d   :  { %3493 = vtanh.f32 %v351_v59 }
 0x39e   :  { %3495 = vtanh.f32 %v420_v60 }
 0x3a8   :  { %v3490_v6 = vpop.eup %3489 }
 0x3a9   :  { %v3492_v8 = vpop.eup %3491  ;;  %v356_v10 = vadd.f32 1.0, %v3490_v6 }
 0x3aa   :  { %v425_v11 = vadd.f32 1.0, %v3492_v8  ;;  %v3494_v13 = vpop.eup %3493 }
 0x3ab   :  { %3497 = vrcp.f32 %v356_v10  ;;  %v3496_v14 = vpop.eup %3495 }
 0x3ac   :  { %3499 = vrcp.f32 %v425_v11 }
 0x3b8   :  { %v3498_v16 = vpop.eup %3497 }
 0x3b9   :  { %v3500_v17 = vpop.eup %3499  ;;  %v359_v18 = vsel %vm3790_vm4, %v3494_v13, %v3498_v16 }
 0x3ba   :  { %v428_v19 = vsel %vm3790_vm4, %v3496_v14, %v3500_v17  ;;  %362 = vrot.lane.b32.xlu1 %v359_v18, %s3699_s6  ;;  %v360_v26 = vmul.f32 0.0, %v359_v18 }
 0x3bb   :  { %434 = vrot.lane.b32.xlu0 %v428_v19, %s3699_s6  ;;  %v432_v27 = vmul.f32 %v430_v25, %v428_v19 }
 0x42c   :  { %v363_v20 = vpop.permute.xlu1 %362 }
 0x42d   :  { %v435_v21 = vpop.permute.xlu0 %434  ;;  %v365_v23 = vmul.f32 %v363_v20, %v359_v18 }
 0x42e   :  { %v437_v24 = vmul.f32 %v435_v21, %v428_v19 }
 0x42f   :  { %367 = vrot.lane.b32.xlu1 %v365_v23, %s3700_s7 }
 0x430   :  { %439 = vrot.lane.b32.xlu0 %v437_v24, %s3700_s7 }
 0x4a1   :  { %v368_v29 = vpop.permute.xlu1 %367 }
 0x4a2   :  { %v440_v30 = vpop.permute.xlu0 %439  ;;  %v3869_v31 = vadd.f32 %v368_v29, %v360_v26 }
 0x4a3   :  { %v3871_v32 = vadd.f32 %v440_v30, %v432_v27 }
 0x4a4   :  { %3501 = vtanh.f32 %v3869_v31 }
 0x4a5   :  { %3503 = vtanh.f32 %v3871_v32  ;;  %v620_v25 = vrot.slane %v3871_v32, 4 }
 0x4b1   :  { %v3502_v33 = vpop.eup %3501 }
 0x4b2   :  { %v3504_v34 = vpop.eup %3503  ;;  %373 = vrot.lane.b32.xlu1 %v3502_v33, %s3699_s6 }
 0x4b3   :  { %445 = vrot.lane.b32.xlu0 %v3504_v34, %s3699_s6 }
 0x524   :  { %v374_v35 = vpop.permute.xlu1 %373 }
 0x525   :  { %v446_v36 = vpop.permute.xlu0 %445  ;;  %v376_v41 = vmul.f32 %v374_v35, %v359_v18 }
 0x526   :  { %v448_v42 = vmul.f32 %v446_v36, %v428_v19 }
 0x527   :  { %v450_v43 = vpack.c.bf16 %v376_v41, %v376_v41 }
 0x528   :  { %v449_v44 = vpack.c.bf16 %v448_v42, %v448_v42 }
 0x529   :  { %452 = vrot.lane.b32.xlu0 %v450_v43, %s3700_s7 }
 0x52a   :  { %v498_v46 = vrot.slane %v449_v44, 2 }
 0x52c   :  { %499 = vrot.lane.b32.xlu1 %v498_v46, %s3700_s7 }
 0x59b   :  { %v453_v47 = vpop.permute.xlu0 %452 }
 0x59c   :  { %3149 = vmatmul.mubr.msk.bf16.vlgmr.msra.gmra.mxu1 %vm103_vm1, %v453_v47 }
 0x59d   :  { %3161 = vmatpush3.bf16.msra.mxu1 %v3741_v2  ;;  %3164 = vmatprep.mubr.msk.bf16.mxu1 %vm3697_vm0, %v3696_v0 }
 0x59e   :  { %v500_v48 = vpop.permute.xlu1 %499  ;;  %3162 = vmatprep.subr.bf16.mxu1 %v3696_v0 }
 0x59f   :  { %3157 = vmatmul.mubr.msk.bf16.vlgmr.msra.gmra.mxu0 %vm103_vm1, %v500_v48 }
 0x5a0   :  { %3169 = vmatpush3.bf16.msra.mxu0 %v3804_v37  ;;  %3172 = vmatprep.mubr.msk.bf16.mxu0 %vm3697_vm0, %v3696_v0 }
 0x5a1   :  { %3163 = vmatpush3.bf16.msra.mxu1 %v3750_v4  ;;  %3170 = vmatprep.subr.bf16.mxu0 %v3696_v0 }
 0x5a2   :  { %3176 = vmatprep.subr.bf16.mxu1 %v3696_v0 }
 0x5a4   :  { %3165 = vmatmul.mubr.msk.bf16.vlgmr.msra.gmra.mxu1 %vm103_vm1, %v500_v48  ;;  %3171 = vmatpush3.bf16.msra.mxu0 %v3815_v39 }
 0x5a5   :  { %3177 = vmatpush3.bf16.msra.mxu1 %v3809_v38  ;;  %3184 = vmatprep.subr.bf16.mxu0 %v3696_v0 }
 0x5a6   :  { %3178 = vmatprep.subr.bf16.mxu1 %v3696_v0  ;;  %3180 = vmatprep.mubr.msk.bf16.mxu1 %vm3697_vm0, %v3696_v0 }
 0x5a9   :  { %3179 = vmatpush3.bf16.msra.mxu1 %v3821_v40 }
 0x5aa   :  { %3192 = vmatprep.subr.bf16.mxu1 %v3696_v0 }
 0x65c   :  { %v491_v49 = vpop.f32.mrf.mxu1 }
 0x65e   :  { %v3150_v50 = vpop.f32.mrf.mxu1 }
 0x65f   :  { %v538_v51 = vpop.f32.mrf.mxu0 }
 0x660   :  { %v539_v53 = vadd.f32 %v538_v51, %v491_v49  ;;  %v494_v54 = vpop.f32.mrf.mxu1 }
 0x661   :  { %v3158_v55 = vpop.f32.mrf.mxu0 }
 0x662   :  { %v544_v56 = vadd.f32 %v539_v53, %v3856_v52  ;;  %v3151_v57 = vpop.f32.mrf.mxu1 }
 0x663   :  { %v541_v59 = vpop.f32.mrf.mxu0 }
 0x664   :  { %v2908_v60 = vmul.f32 -1.442695, %v544_v56  ;;  %v604_v61 = vpop.f32.mrf.mxu1 }
 0x665   :  { %v3159_v62 = vpop.f32.mrf.mxu0  ;;  %v610_v63 = vadd.f32 %v604_v61, %v3903_v58 }
 0x666   :  { %3505 = vpow2.f32 %v2908_v60  ;;  %v3166_v1 = vpop.f32.mrf.mxu1 }
 0x667   :  { %v2910_v3 = vmul.f32 -1.442695, %v610_v63 }
 0x668   :  { %v607_v5 = vpop.f32.mrf.mxu1 }
 0x669   :  { %3507 = vpow2.f32 %v2910_v3 }
 0x66a   :  { %v3167_v6 = vpop.f32.mrf.mxu1  ;;  %3509 = vtanh.f32 %v544_v56 }
 0x673   :  { %v3506_v8 = vpop.eup %3505 }
 0x674   :  { %v549_v10 = vadd.f32 1.0, %v3506_v8 }
 0x676   :  { %v3508_v11 = vpop.eup %3507  ;;  %3511 = vrcp.f32 %v549_v10 }
 0x677   :  { %v615_v13 = vadd.f32 1.0, %v3508_v11  ;;  %3513 = vtanh.f32 %v610_v63  ;;  %v3510_v12 = vpop.eup %3509 }
 0x679   :  { %3515 = vrcp.f32 %v615_v13 }
 0x683   :  { %v3512_v45 = vpop.eup %3511 }
 0x684   :  { %v552_v14 = vsel %vm3790_vm4, %v3510_v12, %v3512_v45  ;;  %v3514_v16 = vpop.eup %3513 }
 0x685   :  { %555 = vrot.lane.b32.xlu0 %v552_v14, %s3699_s6  ;;  %v553_v24 = vmul.f32 %v552_v14, %v3869_v31 }
 0x686   :  { %v3516_v17 = vpop.eup %3515 }
 0x687   :  { %v618_v18 = vsel %vm3790_vm4, %v3514_v16, %v3516_v17 }
 0x688   :  { %624 = vrot.lane.b32.xlu1 %v618_v18, %s3699_s6  ;;  %v622_v29 = vmul.f32 %v620_v25, %v618_v18 }
 0x6f7   :  { %v556_v19 = vpop.permute.xlu0 %555 }
 0x6f8   :  { %v558_v20 = vmul.f32 %v556_v19, %v552_v14 }
 0x6fa   :  { %560 = vrot.lane.b32.xlu0 %v558_v20, %s3700_s7  ;;  %v625_v21 = vpop.permute.xlu1 %624 }
 0x6fb   :  { %v627_v23 = vmul.f32 %v625_v21, %v618_v18 }
 0x6fd   :  { %629 = vrot.lane.b32.xlu1 %v627_v23, %s3700_s7 }
 0x76c   :  { %v561_v26 = vpop.permute.xlu0 %560 }
 0x76d   :  { %v3916_v27 = vadd.f32 %v561_v26, %v553_v24 }
 0x76f   :  { %3517 = vtanh.f32 %v3916_v27  ;;  %v630_v30 = vpop.permute.xlu1 %629 }
 0x770   :  { %v3919_v33 = vadd.f32 %v630_v30, %v622_v29 }
 0x772   :  { %3519 = vtanh.f32 %v3919_v33  ;;  %v812_v25 = vrot.slane %v3919_v33, 4 }
 0x77c   :  { %v3518_v34 = vpop.eup %3517 }
 0x77d   :  { %566 = vrot.lane.b32.xlu0 %v3518_v34, %s3699_s6 }
 0x77f   :  { %v3520_v35 = vpop.eup %3519 }
 0x780   :  { %635 = vrot.lane.b32.xlu1 %v3520_v35, %s3699_s6 }
 0x7ef   :  { %v567_v31 = vpop.permute.xlu0 %566 }
 0x7f0   :  { %v569_v36 = vmul.f32 %v567_v31, %v552_v14 }
 0x7f2   :  { %v640_v32 = vpack.c.bf16 %v569_v36, %v569_v36  ;;  %v636_v41 = vpop.permute.xlu1 %635 }
 0x7f3   :  { %v3924_v42 = vmul.f32 %v636_v41, %v618_v18 }
 0x7f4   :  { %642 = vrot.lane.b32.xlu0 %v640_v32, %s3700_s7 }
 0x7f5   :  { %v639_v43 = vpack.c.bf16 %v3924_v42, %v3924_v42 }
 0x7f7   :  { %688 = vrot.lane.b32.xlu1 %v639_v43, %s3700_s7 }
 0x866   :  { %v643_v44 = vpop.permute.xlu0 %642 }
 0x867   :  { %3173 = vmatmul.mubr.msk.bf16.vlgmr.msra.gmra.mxu0 %vm103_vm1, %v643_v44 }
 0x868   :  { %3185 = vmatpush3.bf16.msra.mxu0 %v3741_v2  ;;  %3188 = vmatprep.mubr.msk.bf16.mxu0 %vm3697_vm0, %v3696_v0 }
 0x869   :  { %3186 = vmatprep.subr.bf16.mxu0 %v3696_v0  ;;  %v689_v46 = vpop.permute.xlu1 %688 }
 0x86a   :  { %3181 = vmatmul.mubr.msk.bf16.vlgmr.msra.gmra.mxu1 %vm103_vm1, %v689_v46 }
 0x86b   :  { %3193 = vmatpush3.bf16.msra.mxu1 %v3804_v37  ;;  %3196 = vmatprep.mubr.msk.bf16.mxu1 %vm3697_vm0, %v3696_v0 }
 0x86c   :  { %3187 = vmatpush3.bf16.msra.mxu0 %v3750_v4  ;;  %3194 = vmatprep.subr.bf16.mxu1 %v3696_v0 }
 0x86d   :  { %3200 = vmatprep.subr.bf16.mxu0 %v3696_v0 }
 0x86f   :  { %3189 = vmatmul.mubr.msk.bf16.vlgmr.msra.gmra.mxu0 %vm103_vm1, %v689_v46  ;;  %3195 = vmatpush3.bf16.msra.mxu1 %v3815_v39 }
 0x870   :  { %3201 = vmatpush3.bf16.msra.mxu0 %v3809_v38  ;;  %3208 = vmatprep.subr.bf16.mxu1 %v3696_v0 }
 0x871   :  { %3202 = vmatprep.subr.bf16.mxu0 %v3696_v0  ;;  %3204 = vmatprep.mubr.msk.bf16.mxu0 %vm3697_vm0, %v3696_v0 }
 0x874   :  { %3203 = vmatpush3.bf16.msra.mxu0 %v3821_v40 }
 0x875   :  { %3216 = vmatprep.subr.bf16.mxu0 %v3696_v0 }
 0x927   :  { %v681_v47 = vpop.f32.mrf.mxu0 }
 0x929   :  { %v3174_v48 = vpop.f32.mrf.mxu0 }
 0x92a   :  { %v727_v49 = vpop.f32.mrf.mxu1 }
 0x92b   :  { %v684_v50 = vpop.f32.mrf.mxu0  ;;  %v728_v51 = vadd.f32 %v727_v49, %v681_v47 }
 0x92c   :  { %v3182_v53 = vpop.f32.mrf.mxu1 }
 0x92d   :  { %v733_v54 = vadd.f32 %v728_v51, %v3856_v52  ;;  %v3175_v55 = vpop.f32.mrf.mxu0 }
 0x92e   :  { %v730_v56 = vpop.f32.mrf.mxu1 }
 0x92f   :  { %v2913_v57 = vmul.f32 -1.442695, %v733_v54  ;;  %v793_v59 = vpop.f32.mrf.mxu0 }
 0x930   :  { %v800_v60 = vrot.slane %v793_v59, 4  ;;  %v3183_v61 = vpop.f32.mrf.mxu1 }
 0x931   :  { %3521 = vpow2.f32 %v2913_v57  ;;  %v3190_v62 = vpop.f32.mrf.mxu0 }
 0x932   :  { %v802_v63 = vadd.f32 %v800_v60, %v3903_v58 }
 0x933   :  { %v796_v1 = vpop.f32.mrf.mxu0 }
 0x934   :  { %v2915_v3 = vmul.f32 -1.442695, %v802_v63 }
 0x935   :  { %v3191_v5 = vpop.f32.mrf.mxu0 }
 0x936   :  { %3523 = vpow2.f32 %v2915_v3 }
 0x937   :  { %3525 = vtanh.f32 %v733_v54 }
 0x93e   :  { %v3522_v6 = vpop.eup %3521 }
 0x93f   :  { %v738_v8 = vadd.f32 1.0, %v3522_v6 }
 0x941   :  { %3527 = vrcp.f32 %v738_v8 }
 0x942   :  { %3529 = vtanh.f32 %v802_v63 }
 0x943   :  { %v3524_v10 = vpop.eup %3523 }
 0x944   :  { %v807_v11 = vadd.f32 1.0, %v3524_v10  ;;  %v3526_v13 = vpop.eup %3525 }
 0x946   :  { %3531 = vrcp.f32 %v807_v11 }
 0x94e   :  { %v3528_v12 = vpop.eup %3527 }
 0x94f   :  { %v741_v45 = vsel %vm3790_vm4, %v3526_v13, %v3528_v12  ;;  %v3530_v58 = vpop.eup %3529 }
 0x950   :  { %744 = vrot.lane.b32.xlu1 %v741_v45, %s3699_s6  ;;  %v742_v21 = vmul.f32 %v741_v45, %v3916_v27 }
 0x953   :  { %v3532_v14 = vpop.eup %3531 }
 0x954   :  { %v810_v16 = vsel %vm3790_vm4, %v3530_v58, %v3532_v14 }
 0x955   :  { %816 = vrot.lane.b32.xlu0 %v810_v16, %s3699_s6  ;;  %v814_v26 = vmul.f32 %v812_v25, %v810_v16 }
 0x9c2   :  { %v745_v17 = vpop.permute.xlu1 %744 }
 0x9c3   :  { %v747_v18 = vmul.f32 %v745_v17, %v741_v45 }
 0x9c5   :  { %749 = vrot.lane.b32.xlu1 %v747_v18, %s3700_s7 }
 0x9c7   :  { %v817_v19 = vpop.permute.xlu0 %816 }
 0x9c8   :  { %v819_v20 = vmul.f32 %v817_v19, %v810_v16 }
 0x9ca   :  { %821 = vrot.lane.b32.xlu0 %v819_v20, %s3700_s7 }
 0xa37   :  { %v750_v23 = vpop.permute.xlu1 %749 }
 0xa38   :  { %v3962_v24 = vadd.f32 %v750_v23, %v742_v21 }
 0xa3a   :  { %3533 = vtanh.f32 %v3962_v24 }
 0xa3c   :  { %v822_v29 = vpop.permute.xlu0 %821 }
 0xa3d   :  { %v824_v30 = vadd.f32 %v822_v29, %v814_v26 }
 0xa3f   :  { %3535 = vtanh.f32 %v824_v30  ;;  %v843_v43 = vrot.slane %v824_v30, 4 }
 0xa47   :  { %v3534_v34 = vpop.eup %3533 }
 0xa48   :  { %755 = vrot.lane.b32.xlu1 %v3534_v34, %s3699_s6 }
 0xa4c   :  { %v3536_v35 = vpop.eup %3535 }
 0xa4d   :  { %827 = vrot.lane.b32.xlu0 %v3536_v35, %s3699_s6 }
 0xaba   :  { %v756_v31 = vpop.permute.xlu1 %755 }
 0xabb   :  { %v3968_v36 = vmul.f32 %v756_v31, %v741_v45 }
 0xabd   :  { %v852_v27 = vpack.c.bf16 %v3968_v36, %v3968_v36 }
 0xabf   :  { %v828_v32 = vpop.permute.xlu0 %827  ;;  %854 = vrot.lane.b32.xlu1 %v852_v27, %s3700_s7 }
 0xac0   :  { %v830_v41 = vmul.f32 %v828_v32, %v810_v16 }
 0xac2   :  { %v833_v44 = vrot.slane %v830_v41, 4 }
 0xac3   :  { %844 = vrot.lane.b32.xlu1 %v843_v43, %s3701_s16 }
 0xac4   :  { %v3446_v46 = vpack.i.bf16 %v3924_v42, %v833_v44 }
 0xac6   :  { %3447 = vrot.lane.b32.xlu0 %v3446_v46, %s3700_s7 }
 0xb31   :  { %v855_v47 = vpop.permute.xlu1 %854 }
 0xb32   :  { %3197 = vmatmul.mubr.msk.bf16.vlgmr.msra.gmra.mxu1 %vm103_vm1, %v855_v47 }
 0xb33   :  { %3209 = vmatpush3.bf16.msra.mxu1 %v3741_v2  ;;  %3212 = vmatprep.mubr.msk.bf16.mxu1 %vm3697_vm0, %v3696_v0 }
 0xb34   :  { %3210 = vmatprep.subr.bf16.mxu1 %v3696_v0 }
 0xb35   :  { %v845_v23 = vpop.permute.xlu1 %844 }
 0xb37   :  { %3211 = vmatpush3.bf16.msra.mxu1 %v3750_v4 }
 0xb38   :  { %v3448_v48 = vpop.permute.xlu0 %3447  ;;  %3224 = vmatprep.subr.bf16.mxu1 %v3696_v0 }
 0xb39   :  { %v3450_v49 = vunpack.i.h.bf16 %v3448_v48  ;;  %v3449_v50 = vunpack.i.l.bf16 %v3448_v48 }
 0xb3b   :  { %v841_v51 = vsel %vm831_vm5, %v3449_v50, %v3450_v49 }
 0xb3c   :  { %v851_v53 = vpack.c.bf16 %v841_v51, %v841_v51 }
 0xb3e   :  { %3205 = vmatmul.mubr.msk.bf16.vlgmr.msra.gmra.mxu0 %vm103_vm1, %v851_v53  ;;  %3213 = vmatmul.mubr.msk.bf16.vlgmr.msra.gmra.mxu1 %vm103_vm1, %v851_v53 }
 0xb3f   :  { %3217 = vmatpush3.bf16.msra.mxu0 %v3804_v37  ;;  %3225 = vmatpush3.bf16.msra.mxu1 %v3809_v38 }
 0xb40   :  { %3218 = vmatprep.subr.bf16.mxu0 %v3696_v0  ;;  %3220 = vmatprep.mubr.msk.bf16.mxu0 %vm3697_vm0, %v3696_v0 }
 0xb41   :  { %3226 = vmatprep.subr.bf16.mxu1 %v3696_v0  ;;  %3228 = vmatprep.mubr.msk.bf16.mxu1 %vm3697_vm0, %v3696_v0 }
 0xb43   :  { %3219 = vmatpush3.bf16.msra.mxu0 %v3815_v39  ;;  %3227 = vmatpush3.bf16.msra.mxu1 %v3821_v40 }
 0xb44   :  { %3232 = vmatprep.subr.bf16.mxu0 %v3696_v0  ;;  %3240 = vmatprep.subr.bf16.mxu1 %v3696_v0 }
 0xbf2   :  { %v893_v54 = vpop.f32.mrf.mxu1 }
 0xbf4   :  { %v3198_v55 = vpop.f32.mrf.mxu1 }
 0xbf6   :  { %v896_v56 = vpop.f32.mrf.mxu1 }
 0xbf8   :  { %v3199_v57 = vpop.f32.mrf.mxu1 }
 0xbfe   :  { %v936_v59 = vpop.f32.mrf.mxu0  ;;  %v1004_v60 = vpop.f32.mrf.mxu1 }
 0xbff   :  { %v937_v61 = vadd.f32 %v936_v59, %v893_v54  ;;  %v1010_v62 = vadd.f32 %v1004_v60, %v3781_v15 }
 0xc00   :  { %v3206_v63 = vpop.f32.mrf.mxu0  ;;  %v3214_v1 = vpop.f32.mrf.mxu1 }
 0xc01   :  { %v942_v3 = vadd.f32 %v937_v61, %v3856_v52  ;;  %v2920_v5 = vmul.f32 -1.442695, %v1010_v62 }
 0xc02   :  { %v939_v6 = vpop.f32.mrf.mxu0  ;;  %v1007_v8 = vpop.f32.mrf.mxu1 }
 0xc03   :  { %v2918_v10 = vmul.f32 -1.442695, %v942_v3  ;;  %3537 = vpow2.f32 %v2920_v5 }
 0xc04   :  { %v3207_v11 = vpop.f32.mrf.mxu0  ;;  %v3215_v13 = vpop.f32.mrf.mxu1 }
 0xc05   :  { %3539 = vpow2.f32 %v2918_v10 }
 0xc06   :  { %3541 = vtanh.f32 %v1010_v62 }
 0xc07   :  { %3543 = vtanh.f32 %v942_v3 }
 0xc10   :  { %v3538_v12 = vpop.eup %3537 }
 0xc11   :  { %v1015_v58 = vadd.f32 1.0, %v3538_v12 }
 0xc12   :  { %v3540_v45 = vpop.eup %3539 }
 0xc13   :  { %v947_v14 = vadd.f32 1.0, %v3540_v45  ;;  %3545 = vrcp.f32 %v1015_v58  ;;  %v3542_v16 = vpop.eup %3541 }
 0xc14   :  { %v3544_v17 = vpop.eup %3543 }
 0xc15   :  { %3547 = vrcp.f32 %v947_v14 }
 0xc20   :  { %v3546_v18 = vpop.eup %3545 }
 0xc21   :  { %v1018_v20 = vsel %vm3790_vm4, %v3542_v16, %v3546_v18 }
 0xc22   :  { %v3548_v19 = vpop.eup %3547  ;;  %1025 = vrot.lane.b32.xlu1 %v1018_v20, %s3699_s6 }
 0xc23   :  { %v950_v21 = vsel %vm3790_vm4, %v3544_v17, %v3548_v19 }
 0xc24   :  { %953 = vrot.lane.b32.xlu0 %v950_v21, %s3699_s6  ;;  %v951_v31 = vmul.f32 %v950_v21, %v3962_v24 }
 0xc28   :  { %847 = vrot.lane.b32.xlu0 %v3919_v33, %s3701_s16 }
 0xc94   :  { %v1026_v29 = vpop.permute.xlu1 %1025 }
 0xc95   :  { %v1028_v34 = vmul.f32 %v1026_v29, %v1018_v20 }
 0xc96   :  { %v954_v25 = vpop.permute.xlu0 %953 }
 0xc97   :  { %v956_v26 = vmul.f32 %v954_v25, %v950_v21 }
 0xc99   :  { %958 = vrot.lane.b32.xlu0 %v956_v26, %s3700_s7 }
 0xc9a   :  { %v848_v30 = vpop.permute.xlu0 %847 }
 0xc9b   :  { %v850_v35 = vsel %vm831_vm5, %v845_v23, %v848_v30 }
 0xc9c   :  { %1020 = vrot.lane.b32.xlu1 %v850_v35, %s3700_s7 }
 0xc9d   :  { %1030 = vrot.lane.b32.xlu0 %v1028_v34, %s3700_s7 }
 0xd0b   :  { %v959_v27 = vpop.permute.xlu0 %958 }
 0xd0c   :  { %v4016_v32 = vadd.f32 %v959_v27, %v951_v31 }
 0xd0e   :  { %3549 = vtanh.f32 %v4016_v32  ;;  %v1021_v41 = vpop.permute.xlu1 %1020  ;;  %v969_v27 = vsel %vm831_vm5, %v4016_v32, %v3962_v24 }
 0xd0f   :  { %v1023_v43 = vmul.f32 %v1021_v41, %v1018_v20  ;;  %v1031_v44 = vpop.permute.xlu0 %1030 }
 0xd11   :  { %v4019_v46 = vadd.f32 %v1031_v44, %v1023_v43 }
 0xd13   :  { %3551 = vtanh.f32 %v4019_v46  ;;  %v4071_v31 = vsel %vm831_vm5, %v4019_v46, %v3919_v33 }
 0xd14   :  { %v1217_v44 = vrot.slane %v4071_v31, 4 }
 0xd1b   :  { %v3550_v47 = vpop.eup %3549 }
 0xd1c   :  { %964 = vrot.lane.b32.xlu1 %v3550_v47, %s3699_s6 }
 0xd20   :  { %v3552_v48 = vpop.eup %3551 }
 0xd21   :  { %1036 = vrot.lane.b32.xlu0 %v3552_v48, %s3699_s6 }
 0xd8e   :  { %v965_v49 = vpop.permute.xlu1 %964 }
 0xd8f   :  { %v967_v50 = vmul.f32 %v965_v49, %v950_v21 }
 0xd91   :  { %v968_v51 = vsel %vm831_vm5, %v967_v50, %v3968_v36 }
 0xd92   :  { %v1043_v53 = vpack.c.bf16 %v968_v51, %v968_v51 }
 0xd93   :  { %v1037_v54 = vpop.permute.xlu0 %1036 }
 0xd94   :  { %v1039_v55 = vmul.f32 %v1037_v54, %v1018_v20  ;;  %1045 = vrot.lane.b32.xlu1 %v1043_v53, %s3700_s7 }
 0xd96   :  { %v4031_v56 = vsel %vm831_vm5, %v1039_v55, %v3924_v42 }
 0xd97   :  { %v1042_v57 = vpack.c.bf16 %v4031_v56, %v4031_v56 }
 0xd99   :  { %1091 = vrot.lane.b32.xlu0 %v1042_v57, %s3700_s7 }
 0xe06   :  { %v1046_v59 = vpop.permute.xlu1 %1045 }
 0xe07   :  { %3221 = vmatmul.mubr.msk.bf16.vlgmr.msra.gmra.mxu0 %vm103_vm1, %v1046_v59 }
 0xe08   :  { %3233 = vmatpush3.bf16.msra.mxu0 %v3741_v2  ;;  %3236 = vmatprep.mubr.msk.bf16.mxu0 %vm3697_vm0, %v3696_v0 }
 0xe09   :  { %3234 = vmatprep.subr.bf16.mxu0 %v3696_v0 }
 0xe0b   :  { %v1092_v60 = vpop.permute.xlu0 %1091 }
 0xe0c   :  { %3235 = vmatpush3.bf16.msra.mxu0 %v3750_v4  ;;  %3229 = vmatmul.mubr.msk.bf16.vlgmr.msra.gmra.mxu1 %vm103_vm1, %v1092_v60 }
 0xe0d   :  { %3241 = vmatpush3.bf16.msra.mxu1 %v3804_v37  ;;  %3244 = vmatprep.mubr.msk.bf16.mxu1 %vm3697_vm0, %v3696_v0 }
 0xe0e   :  { %3242 = vmatprep.subr.bf16.mxu1 %v3696_v0  ;;  %3248 = vmatprep.subr.bf16.mxu0 %v3696_v0 }
 0xe0f   :  { %3237 = vmatmul.mubr.msk.bf16.vlgmr.msra.gmra.mxu0 %vm103_vm1, %v1092_v60 }
 0xe10   :  { %3249 = vmatpush3.bf16.msra.mxu0 %v3809_v38  ;;  %3252 = vmatprep.mubr.msk.bf16.mxu0 %vm3697_vm0, %v3696_v0 }
 0xe11   :  { %3243 = vmatpush3.bf16.msra.mxu1 %v3815_v39  ;;  %3250 = vmatprep.subr.bf16.mxu0 %v3696_v0 }
 0xe12   :  { %3256 = vmatprep.subr.bf16.mxu1 %v3696_v0 }
 0xe14   :  { %3251 = vmatpush3.bf16.msra.mxu0 %v3821_v40 }
 0xe15   :  { %3264 = vmatprep.subr.bf16.mxu0 %v3696_v0 }
 0xec7   :  { %v1084_v2 = vpop.f32.mrf.mxu0 }
 0xec9   :  { %v3222_v4 = vpop.f32.mrf.mxu0 }
 0xecb   :  { %v1087_v42 = vpop.f32.mrf.mxu0 }
 0xecc   :  { %v1130_v61 = vpop.f32.mrf.mxu1 }
 0xecd   :  { %v1131_v62 = vadd.f32 %v1130_v61, %v1084_v2  ;;  %v3223_v63 = vpop.f32.mrf.mxu0 }
 0xece   :  { %v3230_v1 = vpop.f32.mrf.mxu1  ;;  %v4108_v63 = vld [vmem:[%s4538_s1 + $0x10] sm:$0xff]  }
 0xecf   :  { %v1136_v3 = vadd.f32 %v1131_v62, %v3856_v52  ;;  %v1198_v5 = vpop.f32.mrf.mxu0 }
 0xed0   :  { %v1205_v6 = vrot.slane %v1198_v5, 4  ;;  %v1133_v8 = vpop.f32.mrf.mxu1 }
 0xed1   :  { %v2923_v10 = vmul.f32 -1.442695, %v1136_v3  ;;  %v3238_v11 = vpop.f32.mrf.mxu0 }
 0xed2   :  { %v1207_v13 = vadd.f32 %v1205_v6, %v3781_v15  ;;  %v3231_v12 = vpop.f32.mrf.mxu1 }
 0xed3   :  { %3553 = vpow2.f32 %v2923_v10  ;;  %v1201_v45 = vpop.f32.mrf.mxu0 }
 0xed4   :  { %v2925_v58 = vmul.f32 -1.442695, %v1207_v13 }
 0xed5   :  { %v3239_v14 = vpop.f32.mrf.mxu0 }
 0xed6   :  { %3555 = vpow2.f32 %v2925_v58 }
 0xed7   :  { %3557 = vtanh.f32 %v1136_v3 }
 0xee0   :  { %v3554_v16 = vpop.eup %3553 }
 0xee1   :  { %v1141_v17 = vadd.f32 1.0, %v3554_v16 }
 0xee3   :  { %v3556_v18 = vpop.eup %3555  ;;  %3559 = vrcp.f32 %v1141_v17 }
 0xee4   :  { %v1212_v19 = vadd.f32 1.0, %v3556_v18  ;;  %3561 = vtanh.f32 %v1207_v13  ;;  %v3558_v20 = vpop.eup %3557 }
 0xee6   :  { %3563 = vrcp.f32 %v1212_v19 }
 0xef0   :  { %v3560_v21 = vpop.eup %3559 }
 0xef1   :  { %v1144_v23 = vsel %vm3790_vm4, %v3558_v20, %v3560_v21  ;;  %v3562_v15 = vpop.eup %3561 }
 0xef2   :  { %1147 = vrot.lane.b32.xlu0 %v1144_v23, %s3699_s6  ;;  %v1145_v41 = vmul.f32 %v1144_v23, %v969_v27 }
 0xef3   :  { %v3564_v25 = vpop.eup %3563 }
 0xef4   :  { %v1215_v26 = vsel %vm3790_vm4, %v3562_v15, %v3564_v25 }
 0xef5   :  { %1221 = vrot.lane.b32.xlu1 %v1215_v26, %s3699_s6  ;;  %v1219_v48 = vmul.f32 %v1217_v44, %v1215_v26 }
 0xf64   :  { %v1148_v29 = vpop.permute.xlu0 %1147 }
 0xf65   :  { %v1150_v30 = vmul.f32 %v1148_v29, %v1144_v23 }
 0xf67   :  { %v1222_v34 = vpop.permute.xlu1 %1221  ;;  %1152 = vrot.lane.b32.xlu0 %v1150_v30, %s3700_s7 }
 0xf68   :  { %v1224_v35 = vmul.f32 %v1222_v34, %v1215_v26 }
 0xf6a   :  { %1226 = vrot.lane.b32.xlu1 %v1224_v35, %s3700_s7 }
 0xfd9   :  { %v1153_v43 = vpop.permute.xlu0 %1152 }
 0xfda   :  { %v4078_v47 = vadd.f32 %v1153_v43, %v1145_v41 }
 0xfdc   :  { %3565 = vtanh.f32 %v4078_v47  ;;  %v1227_v49 = vpop.permute.xlu1 %1226 }
 0xfdd   :  { %v1229_v50 = vadd.f32 %v1227_v49, %v1219_v48 }
 0xfdf   :  { %3567 = vtanh.f32 %v1229_v50  ;;  %v1248_v60 = vrot.slane %v1229_v50, 4  ;;  %v4147_v50 = vsel %vm831_vm5, %v4078_v47, %v3962_v24 }
 0xfe9   :  { %v3566_v51 = vpop.eup %3565 }
 0xfea   :  { %1158 = vrot.lane.b32.xlu0 %v3566_v51, %s3699_s6 }
 0xfec   :  { %v3568_v33 = vpop.eup %3567 }
 0xfed   :  { %1232 = vrot.lane.b32.xlu1 %v3568_v33, %s3699_s6 }
0x105c   :  { %v1159_v46 = vpop.permute.xlu0 %1158 }
0x105d   :  { %v1161_v32 = vmul.f32 %v1159_v46, %v1144_v23 }
0x105f   :  { %v4086_v53 = vsel %vm831_vm5, %v1161_v32, %v3968_v36  ;;  %v1233_v54 = vpop.permute.xlu1 %1232  ;;  %v4098_v36 = vld [vmem:[%s4538_s1 + $0x18] sm:$0xff]  }
0x1060   :  { %v1235_v55 = vmul.f32 %v1233_v54, %v1215_v26  ;;  %v1257_v57 = vpack.c.bf16 %v4086_v53, %v4086_v53 }
0x1062   :  { %v1238_v59 = vrot.slane %v1235_v55, 4  ;;  %1259 = vrot.lane.b32.xlu0 %v1257_v57, %s3700_s7 }
0x1064   :  { %v3451_v2 = vpack.i.bf16 %v4031_v56, %v1238_v59 }
0x1066   :  { %3452 = vrot.lane.b32.xlu1 %v3451_v2, %s3700_s7  ;;  %1249 = vrot.lane.b32.xlu0 %v1248_v60, %s3701_s16 }
0x10d4   :  { %v1260_v4 = vpop.permute.xlu0 %1259 }
0x10d5   :  { %3245 = vmatmul.mubr.msk.bf16.vlgmr.msra.gmra.mxu1 %vm103_vm1, %v1260_v4 }
0x10d6   :  { %3257 = vmatpush3.bf16.msra.mxu1 %v4098_v36  ;;  %3260 = vmatprep.mubr.msk.bf16.mxu1 %vm3697_vm0, %v3696_v0 }
0x10d7   :  { %3258 = vmatprep.subr.bf16.mxu1 %v3696_v0 }
0x10d8   :  { %v3453_v42 = vpop.permute.xlu1 %3452  ;;  %v1250_v35 = vpop.permute.xlu0 %1249 }
0x10d9   :  { %v3455_v61 = vunpack.i.h.bf16 %v3453_v42  ;;  %v3454_v62 = vunpack.i.l.bf16 %v3453_v42 }
0x10da   :  { %3259 = vmatpush3.bf16.msra.mxu1 %v4108_v63 }
0x10db   :  { %v1246_v1 = vsel %vm1236_vm6, %v3454_v62, %v3455_v61  ;;  %3272 = vmatprep.subr.bf16.mxu1 %v3696_v0 }
0x10dc   :  { %v1256_v3 = vpack.c.bf16 %v1246_v1, %v1246_v1 }
0x10de   :  { %3253 = vmatmul.mubr.msk.bf16.vlgmr.msra.gmra.mxu0 %vm103_vm1, %v1256_v3  ;;  %3261 = vmatmul.mubr.msk.bf16.vlgmr.msra.gmra.mxu1 %vm103_vm1, %v1256_v3 }
0x10df   :  { %3265 = vmatpush3.bf16.msra.mxu0 %v3804_v37  ;;  %3273 = vmatpush3.bf16.msra.mxu1 %v3809_v38 }
0x10e0   :  { %3266 = vmatprep.subr.bf16.mxu0 %v3696_v0  ;;  %3268 = vmatprep.mubr.msk.bf16.mxu0 %vm3697_vm0, %v3696_v0 }
0x10e1   :  { %3274 = vmatprep.subr.bf16.mxu1 %v3696_v0  ;;  %3276 = vmatprep.mubr.msk.bf16.mxu1 %vm3697_vm0, %v3696_v0 }
0x10e3   :  { %3267 = vmatpush3.bf16.msra.mxu0 %v3815_v39  ;;  %3275 = vmatpush3.bf16.msra.mxu1 %v3821_v40 }
0x10e4   :  { %3280 = vmatprep.subr.bf16.mxu0 %v3696_v0  ;;  %3288 = vmatprep.subr.bf16.mxu1 %v3696_v0 }
0x1195   :  { %v1298_v37 = vpop.f32.mrf.mxu1 }
0x1197   :  { %v3246_v38 = vpop.f32.mrf.mxu1 }
0x1198   :  { %v3694_v38 = vld [vmem:[%s4538_s1 + $0x20] sm:$0xff]  }
0x1199   :  { %v1301_v5 = vpop.f32.mrf.mxu1 }
0x119b   :  { %v3247_v6 = vpop.f32.mrf.mxu1 }
0x119e   :  { %v1341_v8 = vpop.f32.mrf.mxu0  ;;  %v1409_v10 = vpop.f32.mrf.mxu1 }
0x119f   :  { %v1342_v11 = vadd.f32 %v1341_v8, %v1298_v37  ;;  %v1415_v13 = vadd.f32 %v1409_v10, %v3788_v22 }
0x11a0   :  { %v3254_v12 = vpop.f32.mrf.mxu0  ;;  %v3262_v45 = vpop.f32.mrf.mxu1 }
0x11a1   :  { %v1347_v58 = vadd.f32 %v1342_v11, %v3856_v52  ;;  %v2930_v39 = vmul.f32 -1.442695, %v1415_v13 }
0x11a2   :  { %v1344_v14 = vpop.f32.mrf.mxu0  ;;  %v1412_v40 = vpop.f32.mrf.mxu1 }
0x11a3   :  { %v2928_v16 = vmul.f32 -1.442695, %v1347_v58  ;;  %3569 = vpow2.f32 %v2930_v39 }
0x11a4   :  { %v3255_v17 = vpop.f32.mrf.mxu0  ;;  %v3263_v18 = vpop.f32.mrf.mxu1 }
0x11a5   :  { %3571 = vpow2.f32 %v2928_v16 }
0x11a6   :  { %3573 = vtanh.f32 %v1415_v13 }
0x11a7   :  { %3575 = vtanh.f32 %v1347_v58 }
0x11b0   :  { %v3570_v19 = vpop.eup %3569 }
0x11b1   :  { %v1420_v21 = vadd.f32 1.0, %v3570_v19 }
0x11b2   :  { %v3572_v20 = vpop.eup %3571 }
0x11b3   :  { %v1352_v23 = vadd.f32 1.0, %v3572_v20  ;;  %3577 = vrcp.f32 %v1420_v21  ;;  %v3574_v15 = vpop.eup %3573 }
0x11b4   :  { %v3576_v25 = vpop.eup %3575 }
0x11b5   :  { %3579 = vrcp.f32 %v1352_v23 }
0x11c0   :  { %v3578_v26 = vpop.eup %3577 }
0x11c1   :  { %v1423_v30 = vsel %vm3790_vm4, %v3574_v15, %v3578_v26 }
0x11c2   :  { %v3580_v29 = vpop.eup %3579  ;;  %1430 = vrot.lane.b32.xlu0 %v1423_v30, %s3699_s6 }
0x11c3   :  { %v1355_v34 = vsel %vm3790_vm4, %v3576_v25, %v3580_v29 }
0x11c4   :  { %1358 = vrot.lane.b32.xlu1 %v1355_v34, %s3699_s6  ;;  %v1356_v51 = vmul.f32 %v1355_v34, %v4147_v50 }
0x11c8   :  { %1252 = vrot.lane.b32.xlu1 %v4071_v31, %s3701_s16 }
0x1234   :  { %v1431_v43 = vpop.permute.xlu0 %1430 }
0x1235   :  { %v1433_v48 = vmul.f32 %v1431_v43, %v1423_v30 }
0x1236   :  { %v1359_v27 = vpop.permute.xlu1 %1358 }
0x1237   :  { %v1361_v41 = vmul.f32 %v1359_v27, %v1355_v34 }
0x1239   :  { %1363 = vrot.lane.b32.xlu1 %v1361_v41, %s3700_s7 }
0x123a   :  { %v1253_v44 = vpop.permute.xlu1 %1252 }
0x123b   :  { %v1255_v49 = vsel %vm1236_vm6, %v1250_v35, %v1253_v44 }
0x123c   :  { %1425 = vrot.lane.b32.xlu0 %v1255_v49, %s3700_s7 }
0x123d   :  { %1435 = vrot.lane.b32.xlu1 %v1433_v48, %s3700_s7 }
0x12ab   :  { %v1364_v33 = vpop.permute.xlu1 %1363 }
0x12ac   :  { %v4150_v46 = vadd.f32 %v1364_v33, %v1356_v51 }
0x12ae   :  { %3581 = vtanh.f32 %v4150_v46  ;;  %v1426_v32 = vpop.permute.xlu0 %1425  ;;  %v1374_v51 = vsel %vm1236_vm6, %v4150_v46, %v4147_v50 }
0x12af   :  { %v1428_v54 = vmul.f32 %v1426_v32, %v1423_v30  ;;  %v1436_v55 = vpop.permute.xlu1 %1435 }
0x12b1   :  { %v4153_v57 = vadd.f32 %v1436_v55, %v1428_v54 }
0x12b3   :  { %3583 = vtanh.f32 %v4153_v57  ;;  %v1446_v49 = vsel %vm1236_vm6, %v4153_v57, %v4071_v31 }
0x12b4   :  { %v1622_v54 = vrot.slane %v1446_v49, 4 }
0x12bb   :  { %v3582_v59 = vpop.eup %3581 }
0x12bc   :  { %1369 = vrot.lane.b32.xlu0 %v3582_v59, %s3699_s6 }
0x12c0   :  { %v3584_v60 = vpop.eup %3583 }
0x12c1   :  { %1441 = vrot.lane.b32.xlu1 %v3584_v60, %s3699_s6 }
0x132e   :  { %v1370_v24 = vpop.permute.xlu0 %1369 }
0x132f   :  { %v1372_v47 = vmul.f32 %v1370_v24, %v1355_v34 }
0x1331   :  { %v1373_v2 = vsel %vm1236_vm6, %v1372_v47, %v4086_v53 }
0x1332   :  { %v1448_v4 = vpack.c.bf16 %v1373_v2, %v1373_v2 }
0x1333   :  { %v1442_v42 = vpop.permute.xlu1 %1441 }
0x1334   :  { %v1444_v61 = vmul.f32 %v1442_v42, %v1423_v30  ;;  %1450 = vrot.lane.b32.xlu0 %v1448_v4, %s3700_s7 }
0x1336   :  { %v4165_v62 = vsel %vm1236_vm6, %v1444_v61, %v4031_v56  ;;  %v3691_v56 = vld [vmem:[%s4538_s1 + $0x38] sm:$0xff]  }
0x1337   :  { %v1447_v1 = vpack.c.bf16 %v4165_v62, %v4165_v62 }
0x1339   :  { %1496 = vrot.lane.b32.xlu1 %v1447_v1, %s3700_s7 }
0x13a6   :  { %v1451_v3 = vpop.permute.xlu0 %1450 }
0x13a7   :  { %3269 = vmatmul.mubr.msk.bf16.vlgmr.msra.gmra.mxu0 %vm103_vm1, %v1451_v3 }
0x13a8   :  { %3281 = vmatpush3.bf16.msra.mxu0 %v4098_v36  ;;  %3284 = vmatprep.mubr.msk.bf16.mxu0 %vm3697_vm0, %v3696_v0  ;;  %v3692_v36 = vld [vmem:[%s4538_s1 + $0x28] sm:$0xff]  }
0x13a9   :  { %3282 = vmatprep.subr.bf16.mxu0 %v3696_v0 }
0x13ab   :  { %v1497_v37 = vpop.permute.xlu1 %1496 }
0x13ac   :  { %3283 = vmatpush3.bf16.msra.mxu0 %v4108_v63  ;;  %3277 = vmatmul.mubr.msk.bf16.vlgmr.msra.gmra.mxu1 %vm103_vm1, %v1497_v37  ;;  %v3693_v63 = vld [vmem:[%s4538_s1 + $0x30] sm:$0xff]  }
0x13ad   :  { %3289 = vmatpush3.bf16.msra.mxu1 %v3691_v56  ;;  %3292 = vmatprep.mubr.msk.bf16.mxu1 %vm3697_vm0, %v3696_v0 }
0x13ae   :  { %3290 = vmatprep.subr.bf16.mxu1 %v3696_v0  ;;  %3296 = vmatprep.subr.bf16.mxu0 %v3696_v0 }
0x13af   :  { %3285 = vmatmul.mubr.msk.bf16.vlgmr.msra.gmra.mxu0 %vm103_vm1, %v1497_v37 }
0x13b0   :  { %3297 = vmatpush3.bf16.msra.mxu0 %v3692_v36  ;;  %3300 = vmatprep.mubr.msk.bf16.mxu0 %vm3697_vm0, %v3696_v0 }
0x13b1   :  { %3291 = vmatpush3.bf16.msra.mxu1 %v3693_v63  ;;  %3298 = vmatprep.subr.bf16.mxu0 %v3696_v0 }
0x13b2   :  { %3304 = vmatprep.subr.bf16.mxu1 %v3696_v0 }
0x13b4   :  { %3299 = vmatpush3.bf16.msra.mxu0 %v3694_v38 }
0x13b5   :  { %3312 = vmatprep.subr.bf16.mxu0 %v3696_v0 }
0x1467   :  { %v1489_v5 = vpop.f32.mrf.mxu0 }
0x1469   :  { %v3270_v6 = vpop.f32.mrf.mxu0 }
0x146b   :  { %v1492_v8 = vpop.f32.mrf.mxu0 }
0x146c   :  { %v1535_v10 = vpop.f32.mrf.mxu1 }
0x146d   :  { %v1536_v11 = vadd.f32 %v1535_v10, %v1489_v5  ;;  %v3271_v13 = vpop.f32.mrf.mxu0 }
0x146e   :  { %v3278_v12 = vpop.f32.mrf.mxu1 }
0x146f   :  { %v1541_v45 = vadd.f32 %v1536_v11, %v3856_v52  ;;  %v1603_v58 = vpop.f32.mrf.mxu0 }
0x1470   :  { %v1610_v39 = vrot.slane %v1603_v58, 4  ;;  %v1538_v14 = vpop.f32.mrf.mxu1 }
0x1471   :  { %v2933_v40 = vmul.f32 -1.442695, %v1541_v45  ;;  %v3286_v16 = vpop.f32.mrf.mxu0 }
0x1472   :  { %v1612_v17 = vadd.f32 %v1610_v39, %v3788_v22  ;;  %v3279_v18 = vpop.f32.mrf.mxu1 }
0x1473   :  { %3585 = vpow2.f32 %v2933_v40  ;;  %v1606_v19 = vpop.f32.mrf.mxu0 }
0x1474   :  { %v2935_v20 = vmul.f32 -1.442695, %v1612_v17 }
0x1475   :  { %v3287_v21 = vpop.f32.mrf.mxu0 }
0x1476   :  { %3587 = vpow2.f32 %v2935_v20 }
0x1477   :  { %3589 = vtanh.f32 %v1541_v45 }
0x1480   :  { %v3586_v23 = vpop.eup %3585 }
0x1481   :  { %v1546_v15 = vadd.f32 1.0, %v3586_v23 }
0x1483   :  { %v3588_v25 = vpop.eup %3587  ;;  %3591 = vrcp.f32 %v1546_v15 }
0x1484   :  { %v1617_v26 = vadd.f32 1.0, %v3588_v25  ;;  %3593 = vtanh.f32 %v1612_v17  ;;  %v3590_v29 = vpop.eup %3589  ;;  %v4249_v25 = vld [vmem:[%s4538_s1 + $0x58] sm:$0xff]  }
0x1486   :  { %3595 = vrcp.f32 %v1617_v26  ;;  %v3472_v26 = vld [vmem:[%s4538_s1 + $0x48] sm:$0xff]  }
0x1490   :  { %v3592_v30 = vpop.eup %3591 }
0x1491   :  { %v1549_v34 = vsel %vm3790_vm4, %v3590_v29, %v3592_v30  ;;  %v3594_v22 = vpop.eup %3593  ;;  %v3474_v29 = vld [vmem:[%s4538_s1 + $0x40] sm:$0xff]  }
0x1492   :  { %1552 = vrot.lane.b32.xlu1 %v1549_v34, %s3699_s6  ;;  %v1550_v33 = vmul.f32 %v1549_v34, %v1374_v51  ;;  %v60_v51 = vsub.s32 2, %v3769_v9 }
0x1493   :  { %v3596_v35 = vpop.eup %3595 }
0x1494   :  { %v1620_v27 = vsel %vm3790_vm4, %v3594_v22, %v3596_v35 }
0x1495   :  { %1626 = vrot.lane.b32.xlu0 %v1620_v27, %s3699_s6  ;;  %v1624_v59 = vmul.f32 %v1622_v54, %v1620_v27 }
0x1504   :  { %v1553_v41 = vpop.permute.xlu1 %1552 }
0x1505   :  { %v1555_v43 = vmul.f32 %v1553_v41, %v1549_v34 }
0x1507   :  { %v1627_v44 = vpop.permute.xlu0 %1626  ;;  %1557 = vrot.lane.b32.xlu1 %v1555_v43, %s3700_s7 }
0x1508   :  { %v1629_v48 = vmul.f32 %v1627_v44, %v1620_v27 }
0x150a   :  { %1631 = vrot.lane.b32.xlu0 %v1629_v48, %s3700_s7 }
0x1579   :  { %v1558_v32 = vpop.permute.xlu1 %1557 }
0x157a   :  { %v1560_v55 = vadd.f32 %v1558_v32, %v1550_v33  ;;  %v4283_v33 = vld [vmem:[%s4540_s3] sm:$0xf] }
0x157b   :  { %v61_v32 = vrot.slane %v4283_v33, %v60_v51 }
0x157c   :  { %3597 = vtanh.f32 %v1560_v55  ;;  %v1632_v60 = vpop.permute.xlu0 %1631 }
0x157d   :  { %v1634_v24 = vadd.f32 %v1632_v60, %v1624_v59 }
0x157f   :  { %3599 = vtanh.f32 %v1634_v24 }
0x1589   :  { %v3598_v47 = vpop.eup %3597 }
0x158a   :  { %1563 = vrot.lane.b32.xlu1 %v3598_v47, %s3699_s6 }
0x158c   :  { %v3600_v2 = vpop.eup %3599 }
0x158d   :  { %1637 = vrot.lane.b32.xlu0 %v3600_v2, %s3699_s6 }
0x15fc   :  { %v1564_v31 = vpop.permute.xlu1 %1563 }
0x15fd   :  { %v1566_v57 = vmul.f32 %v1564_v31, %v1549_v34 }
0x15ff   :  { %v1638_v4 = vpop.permute.xlu0 %1637  ;;  %v4222_v46 = vsel %vm1236_vm6, %v1566_v57, %v4086_v53 }
0x1600   :  { %v1640_v42 = vmul.f32 %v1638_v4, %v1620_v27  ;;  %v1653_v61 = vpack.c.bf16 %v4222_v46, %v4222_v46 }
0x1602   :  { %v1643_v1 = vrot.slane %v1640_v42, 4  ;;  %1655 = vrot.lane.b32.xlu1 %v1653_v61, %s3700_s7 }
0x1604   :  { %v3456_v3 = vpack.i.bf16 %v4165_v62, %v1643_v1 }
0x1606   :  { %3457 = vrot.lane.b32.xlu0 %v3456_v3, %s3700_s7 }
0x1674   :  { %v1656_v37 = vpop.permute.xlu1 %1655 }
0x1675   :  { %3293 = vmatmul.mubr.msk.bf16.vlgmr.msra.gmra.mxu1 %vm103_vm1, %v1656_v37 }
0x1676   :  { %3308 = vmatprep.mubr.msk.bf16.mxu1 %vm3697_vm0, %v3696_v0  ;;  %3305 = vmatpush3.bf16.msra.mxu1 %v3472_v26 }
0x1677   :  { %3306 = vmatprep.subr.bf16.mxu1 %v3696_v0 }
0x1678   :  { %v3458_v53 = vpop.permute.xlu0 %3457 }
0x1679   :  { %v3460_v56 = vunpack.i.h.bf16 %v3458_v53  ;;  %v3459_v36 = vunpack.i.l.bf16 %v3458_v53 }
0x167a   :  { %3307 = vmatpush3.bf16.msra.mxu1 %v3474_v29 }
0x167b   :  { %v1651_v63 = vsel %vm1641_vm7, %v3459_v36, %v3460_v56  ;;  %3320 = vmatprep.subr.bf16.mxu1 %v3696_v0  ;;  %v4299_v56 = vld [vmem:[%s4538_s1 + $0x78] sm:$0xff]   ;;  %v4304_v36 = vld [vmem:[%s4538_s1 + $0x68] sm:$0xff]  }
0x167c   :  { %v1652_v38 = vpack.c.bf16 %v1651_v63, %v1651_v63  ;;  %v4310_v63 = vld [vmem:[%s4538_s1 + $0x70] sm:$0xff]  }
0x167e   :  { %3301 = vmatmul.mubr.msk.bf16.vlgmr.msra.gmra.mxu0 %vm103_vm1, %v1652_v38  ;;  %v4316_v38 = vld [vmem:[%s4538_s1 + $0x60] sm:$0xff]  }
0x167f   :  { %3316 = vmatprep.mubr.msk.bf16.mxu0 %vm3697_vm0, %v3696_v0  ;;  %3313 = vmatpush3.bf16.msra.mxu0 %v4249_v25 }
0x1680   :  { %3314 = vmatprep.subr.bf16.mxu0 %v3696_v0 }
0x1735   :  { %v1694_v62 = vpop.f32.mrf.mxu1 }
0x1737   :  { %v3294_v5 = vpop.f32.mrf.mxu1 }
0x1739   :  { %v1697_v6 = vpop.f32.mrf.mxu1 }
0x173b   :  { %v3295_v8 = vpop.f32.mrf.mxu1 }
0x173e   :  { %v1737_v10 = vpop.f32.mrf.mxu0 }
0x173f   :  { %v1738_v11 = vadd.f32 %v1737_v10, %v1694_v62 }
0x1740   :  { %v3302_v13 = vpop.f32.mrf.mxu0 }
0x1741   :  { %v1743_v12 = vadd.f32 %v1738_v11, %v3856_v52  ;;  %v1568_v52 = vsel %vm1236_vm6, %v1560_v55, %v4147_v50  ;;  %v4258_v50 = vld [vmem:[%s4538_s1 + $0x50] sm:$0xff]  }
0x1742   :  { %v1740_v45 = vpop.f32.mrf.mxu0  ;;  %3315 = vmatpush3.bf16.msra.mxu0 %v4258_v50 }
0x1743   :  { %v2938_v58 = vmul.f32 -1.442695, %v1743_v12  ;;  %3328 = vmatprep.subr.bf16.mxu0 %v3696_v0  ;;  %v64_v45 = vsub.s32 3, %v3769_v9 }
0x1744   :  { %v3303_v39 = vpop.f32.mrf.mxu0 }
0x1745   :  { %3601 = vpow2.f32 %v2938_v58  ;;  %3317 = vmatmul.mubr.bf16.vlgmr.msra.gmra.mxu0 %v3698_v7  ;;  %v4349_v58 = vrot.slane %v4283_v33, %v64_v45 }
0x1746   :  { %3603 = vtanh.f32 %v1743_v12  ;;  %3332 = vmatprep.mubr.msk.bf16.mxu0 %vm3697_vm0, %v3696_v0  ;;  %3329 = vmatpush3.bf16.msra.mxu0 %v4304_v36 }
0x1747   :  { %3330 = vmatprep.subr.bf16.mxu0 %v3696_v0 }
0x174a   :  { %3331 = vmatpush3.bf16.msra.mxu0 %v4316_v38 }
0x174b   :  { %3344 = vmatprep.subr.bf16.mxu0 %v3696_v0 }
0x1752   :  { %v3602_v14 = vpop.eup %3601 }
0x1753   :  { %v1748_v40 = vadd.f32 1.0, %v3602_v14  ;;  %v3604_v16 = vpop.eup %3603 }
0x1755   :  { %3605 = vrcp.f32 %v1748_v40 }
0x1762   :  { %v3606_v17 = vpop.eup %3605 }
0x1763   :  { %v1751_v18 = vsel %vm3790_vm4, %v3604_v16, %v3606_v17 }
0x1764   :  { %1754 = vrot.lane.b32.xlu0 %v1751_v18, %s3699_s6  ;;  %v1752_v21 = vmul.f32 %v1751_v18, %v1568_v52 }
0x17d6   :  { %v1755_v19 = vpop.permute.xlu0 %1754 }
0x17d7   :  { %v1757_v20 = vmul.f32 %v1755_v19, %v1751_v18 }
0x17d9   :  { %1759 = vrot.lane.b32.xlu1 %v1757_v20, %s3700_s7 }
0x1805   :  { %v1875_v41 = vpop.f32.mrf.mxu0 }
0x1807   :  { %v3318_v43 = vpop.f32.mrf.mxu0 }
0x1809   :  { %v1878_v44 = vpop.f32.mrf.mxu0 }
0x180b   :  { %v3319_v48 = vpop.f32.mrf.mxu0 }
0x184b   :  { %v1760_v23 = vpop.permute.xlu1 %1759 }
0x184c   :  { %v1762_v15 = vadd.f32 %v1760_v23, %v1752_v21 }
0x184e   :  { %3607 = vtanh.f32 %v1762_v15 }
0x185b   :  { %v3608_v30 = vpop.eup %3607 }
0x185c   :  { %1765 = vrot.lane.b32.xlu0 %v3608_v30, %s3699_s6 }
0x18ce   :  { %v1766_v34 = vpop.permute.xlu0 %1765 }
0x18cf   :  { %v1768_v22 = vmul.f32 %v1766_v34, %v1751_v18 }
0x18d1   :  { %v1769_v35 = vsel %vm1641_vm7, %v1768_v22, %v4222_v46 }
0x18d2   :  { %v1770_v27 = vpack.c.bf16 %v1769_v35, %v1769_v35 }
0x18d4   :  { %1772 = vrot.lane.b32.xlu1 %v1770_v27, %s3700_s7 }
0x1946   :  { %v1773_v49 = vpop.permute.xlu1 %1772 }
0x1947   :  { %3309 = vmatmul.mubr.msk.bf16.vlgmr.msra.gmra.mxu1 %vm103_vm1, %v1773_v49 }
0x1948   :  { %3324 = vmatprep.mubr.msk.bf16.mxu1 %vm3697_vm0, %v3696_v0  ;;  %3321 = vmatpush3.bf16.msra.mxu1 %v4299_v56 }
0x1949   :  { %3322 = vmatprep.subr.bf16.mxu1 %v3696_v0 }
0x194c   :  { %3323 = vmatpush3.bf16.msra.mxu1 %v4310_v63 }
0x194d   :  { %3336 = vmatprep.subr.bf16.mxu1 %v3696_v0 }
0x194f   :  { %3325 = vmatmul.mubr.bf16.vlgmr.msra.gmra.mxu1 %v3698_v7 }
0x1950   :  { %3337 = vmatpush3.bf16.msra.mxu1 %v4249_v25  ;;  %3340 = vmatprep.mubr.msk.bf16.mxu1 %vm3697_vm0, %v3696_v0 }
0x1951   :  { %3338 = vmatprep.subr.bf16.mxu1 %v3696_v0 }
0x1954   :  { %3339 = vmatpush3.bf16.msra.mxu1 %v4258_v50 }
0x1955   :  { %3352 = vmatprep.subr.bf16.mxu1 %v3696_v0 }
0x1a07   :  { %v1823_v54 = vpop.f32.mrf.mxu1 }
0x1a08   :  { %v4286_v55 = vadd.f32 %v1823_v54, %v61_v32 }
0x1a09   :  { %v3310_v59 = vpop.f32.mrf.mxu1 }
0x1a0a   :  { %v1881_v60 = vadd.f32 %v1875_v41, %v4286_v55 }
0x1a0b   :  { %v1826_v24 = vpop.f32.mrf.mxu1 }
0x1a0c   :  { %v2944_v47 = vmul.f32 -1.442695, %v1881_v60 }
0x1a0d   :  { %v3311_v2 = vpop.f32.mrf.mxu1 }
0x1a0e   :  { %3609 = vpow2.f32 %v2944_v47 }
0x1a0f   :  { %3611 = vtanh.f32 %v1881_v60  ;;  %v1954_v10 = vpop.f32.mrf.mxu1 }
0x1a11   :  { %v3326_v11 = vpop.f32.mrf.mxu1 }
0x1a13   :  { %v1957_v13 = vpop.f32.mrf.mxu1 }
0x1a15   :  { %v3327_v7 = vpop.f32.mrf.mxu1 }
0x1a1b   :  { %v3610_v31 = vpop.eup %3609 }
0x1a1c   :  { %v1886_v57 = vadd.f32 1.0, %v3610_v31  ;;  %v3612_v4 = vpop.eup %3611 }
0x1a1e   :  { %3613 = vrcp.f32 %v1886_v57 }
0x1a2b   :  { %v3614_v46 = vpop.eup %3613 }
0x1a2c   :  { %v1889_v42 = vsel %vm3790_vm4, %v3612_v4, %v3614_v46 }
0x1a2d   :  { %1892 = vrot.lane.b32.xlu0 %v1889_v42, %s3699_s6  ;;  %v1890_v3 = vmul.f32 0.0, %v1889_v42 }
0x1a9f   :  { %v1893_v61 = vpop.permute.xlu0 %1892 }
0x1aa0   :  { %v1895_v1 = vmul.f32 %v1893_v61, %v1889_v42 }
0x1aa2   :  { %1897 = vrot.lane.b32.xlu1 %v1895_v1, %s3700_s7 }
0x1b14   :  { %v1898_v37 = vpop.permute.xlu1 %1897 }
0x1b15   :  { %v4293_v53 = vadd.f32 %v1898_v37, %v1890_v3 }
0x1b17   :  { %3615 = vtanh.f32 %v4293_v53 }
0x1b24   :  { %v3616_v62 = vpop.eup %3615 }
0x1b25   :  { %1903 = vrot.lane.b32.xlu0 %v3616_v62, %s3699_s6 }
0x1b97   :  { %v1904_v5 = vpop.permute.xlu0 %1903 }
0x1b98   :  { %v1906_v6 = vmul.f32 %v1904_v5, %v1889_v42 }
0x1b9a   :  { %v1907_v8 = vpack.c.bf16 %v1906_v6, %v1906_v6 }
0x1b9c   :  { %1961 = vrot.lane.b32.xlu1 %v1907_v8, %s3700_s7 }
0x1c0e   :  { %v1962_v12 = vpop.permute.xlu1 %1961 }
0x1c0f   :  { %3333 = vmatmul.mubr.msk.bf16.vlgmr.msra.gmra.mxu0 %vm103_vm1, %v1962_v12  ;;  %3341 = vmatmul.mubr.msk.bf16.vlgmr.msra.gmra.mxu1 %vm103_vm1, %v1962_v12 }
0x1c10   :  { %3353 = vmatpush3.bf16.msra.mxu1 %v4304_v36  ;;  %3345 = vmatpush3.bf16.msra.mxu0 %v4299_v56 }
0x1c11   :  { %3354 = vmatprep.subr.bf16.mxu1 %v3696_v0  ;;  %3346 = vmatprep.subr.bf16.mxu0 %v3696_v0 }
0x1c12   :  { %3356 = vmatprep.mubr.msk.bf16.mxu1 %vm3697_vm0, %v3696_v0  ;;  %3348 = vmatprep.mubr.msk.bf16.mxu0 %vm3697_vm0, %v3696_v0 }
0x1c14   :  { %3355 = vmatpush3.bf16.msra.mxu1 %v4316_v38  ;;  %3347 = vmatpush3.bf16.msra.mxu0 %v4310_v63 }
0x1c15   :  { %3360 = vmatprep.subr.bf16.mxu0 %v3696_v0  ;;  %3368 = vmatprep.subr.bf16.mxu1 %v3696_v0 }
0x1ccf   :  { %v2012_v39 = vpop.f32.mrf.mxu0  ;;  %v2078_v14 = vpop.f32.mrf.mxu1 }
0x1cd0   :  { %v2013_v40 = vadd.f32 %v2012_v39, %v1954_v10  ;;  %v2084_v16 = vadd.f32 %v2078_v14, %v4286_v55 }
0x1cd1   :  { %v3334_v17 = vpop.f32.mrf.mxu0  ;;  %v3342_v18 = vpop.f32.mrf.mxu1 }
0x1cd2   :  { %v2018_v19 = vadd.f32 %v2013_v40, %v4349_v58  ;;  %v2952_v20 = vmul.f32 -1.442695, %v2084_v16 }
0x1cd3   :  { %v2015_v52 = vpop.f32.mrf.mxu0  ;;  %v2081_v21 = vpop.f32.mrf.mxu1 }
0x1cd4   :  { %v2950_v23 = vmul.f32 -1.442695, %v2018_v19  ;;  %3617 = vpow2.f32 %v2952_v20 }
0x1cd5   :  { %v3335_v15 = vpop.f32.mrf.mxu0  ;;  %v3343_v26 = vpop.f32.mrf.mxu1 }
0x1cd6   :  { %3619 = vpow2.f32 %v2950_v23 }
0x1cd7   :  { %3621 = vtanh.f32 %v2084_v16 }
0x1cd8   :  { %3623 = vtanh.f32 %v2018_v19 }
0x1ce1   :  { %v3618_v9 = vpop.eup %3617 }
0x1ce2   :  { %v2089_v30 = vadd.f32 1.0, %v3618_v9 }
0x1ce3   :  { %v3620_v29 = vpop.eup %3619 }
0x1ce4   :  { %v2023_v34 = vadd.f32 1.0, %v3620_v29  ;;  %3625 = vrcp.f32 %v2089_v30  ;;  %v3622_v22 = vpop.eup %3621 }
0x1ce5   :  { %v3624_v35 = vpop.eup %3623 }
0x1ce6   :  { %3627 = vrcp.f32 %v2023_v34 }
0x1cf1   :  { %v3626_v27 = vpop.eup %3625 }
0x1cf2   :  { %v2092_v43 = vsel %vm3790_vm4, %v3622_v22, %v3626_v27 }
0x1cf3   :  { %v3628_v41 = vpop.eup %3627  ;;  %2095 = vrot.lane.b32.xlu1 %v2092_v43, %s3699_s6  ;;  %v2093_v32 = vmul.f32 %v2092_v43, %v4293_v53 }
0x1cf4   :  { %v2026_v44 = vsel %vm3790_vm4, %v3624_v35, %v3628_v41 }
0x1cf5   :  { %2029 = vrot.lane.b32.xlu0 %v2026_v44, %s3699_s6  ;;  %v2027_v59 = vmul.f32 0.0, %v2026_v44 }
0x1d65   :  { %v2096_v48 = vpop.permute.xlu1 %2095 }
0x1d66   :  { %v2098_v49 = vmul.f32 %v2096_v48, %v2092_v43 }
0x1d67   :  { %v2030_v51 = vpop.permute.xlu0 %2029 }
0x1d68   :  { %v2032_v33 = vmul.f32 %v2030_v51, %v2026_v44  ;;  %2100 = vrot.lane.b32.xlu1 %v2098_v49, %s3700_s7 }
0x1d6a   :  { %2034 = vrot.lane.b32.xlu0 %v2032_v33, %s3700_s7 }
0x1dda   :  { %v2101_v54 = vpop.permute.xlu1 %2100 }
0x1ddb   :  { %v4362_v60 = vadd.f32 %v2101_v54, %v2093_v32 }
0x1ddc   :  { %v2035_v24 = vpop.permute.xlu0 %2034 }
0x1ddd   :  { %v4364_v47 = vadd.f32 %v2035_v24, %v2027_v59  ;;  %3629 = vtanh.f32 %v4362_v60 }
0x1ddf   :  { %3631 = vtanh.f32 %v4364_v47 }
0x1dea   :  { %v3630_v2 = vpop.eup %3629 }
0x1deb   :  { %2106 = vrot.lane.b32.xlu1 %v3630_v2, %s3699_s6 }
0x1dec   :  { %v3632_v31 = vpop.eup %3631 }
0x1ded   :  { %2040 = vrot.lane.b32.xlu0 %v3632_v31, %s3699_s6 }
0x1e5d   :  { %v2107_v57 = vpop.permute.xlu1 %2106 }
0x1e5e   :  { %v2109_v4 = vmul.f32 %v2107_v57, %v2092_v43 }
0x1e5f   :  { %v2041_v46 = vpop.permute.xlu0 %2040 }
0x1e60   :  { %v4370_v42 = vmul.f32 %v2041_v46, %v2026_v44  ;;  %v2110_v61 = vpack.c.bf16 %v2109_v4, %v2109_v4 }
0x1e62   :  { %v2111_v1 = vpack.c.bf16 %v4370_v42, %v4370_v42  ;;  %2159 = vrot.lane.b32.xlu1 %v2110_v61, %s3700_s7 }
0x1e64   :  { %2113 = vrot.lane.b32.xlu0 %v2111_v1, %s3700_s7 }
0x1ed4   :  { %v2160_v3 = vpop.permute.xlu1 %2159 }
0x1ed5   :  { %3357 = vmatmul.mubr.msk.bf16.vlgmr.msra.gmra.mxu1 %vm103_vm1, %v2160_v3 }
0x1ed6   :  { %v2114_v37 = vpop.permute.xlu0 %2113  ;;  %3369 = vmatpush3.bf16.msra.mxu1 %v4299_v56  ;;  %3372 = vmatprep.mubr.msk.bf16.mxu1 %vm3697_vm0, %v3696_v0 }
0x1ed7   :  { %3349 = vmatmul.mubr.msk.bf16.vlgmr.msra.gmra.mxu0 %vm103_vm1, %v2114_v37  ;;  %3370 = vmatprep.subr.bf16.mxu1 %v3696_v0 }
0x1ed8   :  { %3361 = vmatpush3.bf16.msra.mxu0 %v4249_v25  ;;  %3364 = vmatprep.mubr.msk.bf16.mxu0 %vm3697_vm0, %v3696_v0 }
0x1ed9   :  { %3362 = vmatprep.subr.bf16.mxu0 %v3696_v0 }
0x1eda   :  { %3371 = vmatpush3.bf16.msra.mxu1 %v4310_v63 }
0x1edb   :  { %3384 = vmatprep.subr.bf16.mxu1 %v3696_v0 }
0x1edc   :  { %3363 = vmatpush3.bf16.msra.mxu0 %v4258_v50 }
0x1edd   :  { %3376 = vmatprep.subr.bf16.mxu0 %v3696_v0 }
0x1edf   :  { %3365 = vmatmul.mubr.msk.bf16.vlgmr.msra.gmra.mxu0 %vm103_vm1, %v2160_v3 }
0x1ee0   :  { %3377 = vmatpush3.bf16.msra.mxu0 %v4304_v36  ;;  %3380 = vmatprep.mubr.msk.bf16.mxu0 %vm3697_vm0, %v3696_v0 }
0x1ee1   :  { %3378 = vmatprep.subr.bf16.mxu0 %v3696_v0 }
0x1ee4   :  { %3379 = vmatpush3.bf16.msra.mxu0 %v4316_v38 }
0x1ee5   :  { %3392 = vmatprep.subr.bf16.mxu0 %v3696_v0 }
0x1f95   :  { %v2198_v53 = vpop.f32.mrf.mxu1 }
0x1f97   :  { %v2152_v62 = vpop.f32.mrf.mxu0  ;;  %v3358_v6 = vpop.f32.mrf.mxu1 }
0x1f98   :  { %v2199_v5 = vadd.f32 %v2198_v53, %v2152_v62 }
0x1f99   :  { %v3350_v8 = vpop.f32.mrf.mxu0  ;;  %v2201_v11 = vpop.f32.mrf.mxu1 }
0x1f9a   :  { %v2204_v10 = vadd.f32 %v2199_v5, %v4349_v58 }
0x1f9b   :  { %v2155_v13 = vpop.f32.mrf.mxu0  ;;  %v3359_v12 = vpop.f32.mrf.mxu1 }
0x1f9c   :  { %v2955_v7 = vmul.f32 -1.442695, %v2204_v10 }
0x1f9d   :  { %v3351_v45 = vpop.f32.mrf.mxu0 }
0x1f9e   :  { %3633 = vpow2.f32 %v2955_v7 }
0x1f9f   :  { %v2264_v39 = vpop.f32.mrf.mxu0 }
0x1fa0   :  { %v2270_v14 = vadd.f32 %v2264_v39, %v4286_v55 }
0x1fa1   :  { %v3366_v40 = vpop.f32.mrf.mxu0 }
0x1fa2   :  { %v2957_v16 = vmul.f32 -1.442695, %v2270_v14 }
0x1fa3   :  { %v2267_v17 = vpop.f32.mrf.mxu0 }
0x1fa4   :  { %3635 = vpow2.f32 %v2957_v16 }
0x1fa5   :  { %v3367_v18 = vpop.f32.mrf.mxu0  ;;  %3637 = vtanh.f32 %v2204_v10 }
0x1fab   :  { %v3634_v19 = vpop.eup %3633 }
0x1fac   :  { %v2209_v20 = vadd.f32 1.0, %v3634_v19 }
0x1fae   :  { %3639 = vrcp.f32 %v2209_v20 }
0x1faf   :  { %3641 = vtanh.f32 %v2270_v14 }
0x1fb1   :  { %v3636_v52 = vpop.eup %3635 }
0x1fb2   :  { %v2275_v21 = vadd.f32 1.0, %v3636_v52  ;;  %v3638_v23 = vpop.eup %3637 }
0x1fb4   :  { %3643 = vrcp.f32 %v2275_v21 }
0x1fbb   :  { %v3640_v15 = vpop.eup %3639 }
0x1fbc   :  { %v2212_v26 = vsel %vm3790_vm4, %v3638_v23, %v3640_v15  ;;  %v3642_v9 = vpop.eup %3641 }
0x1fbd   :  { %2215 = vrot.lane.b32.xlu0 %v2212_v26, %s3699_s6  ;;  %v2213_v41 = vmul.f32 %v2212_v26, %v4364_v47 }
0x1fc1   :  { %v3644_v29 = vpop.eup %3643 }
0x1fc2   :  { %v2278_v30 = vsel %vm3790_vm4, %v3642_v9, %v3644_v29 }
0x1fc3   :  { %2281 = vrot.lane.b32.xlu1 %v2278_v30, %s3699_s6  ;;  %v2279_v48 = vmul.f32 %v2278_v30, %v4362_v60 }
0x202f   :  { %v2216_v34 = vpop.permute.xlu0 %2215 }
0x2030   :  { %v2218_v22 = vmul.f32 %v2216_v34, %v2212_v26 }
0x2032   :  { %2220 = vrot.lane.b32.xlu0 %v2218_v22, %s3700_s7 }
0x2035   :  { %v2282_v35 = vpop.permute.xlu1 %2281 }
0x2036   :  { %v2284_v27 = vmul.f32 %v2282_v35, %v2278_v30 }
0x2038   :  { %2286 = vrot.lane.b32.xlu1 %v2284_v27, %s3700_s7 }
0x20a4   :  { %v2221_v43 = vpop.permute.xlu0 %2220 }
0x20a5   :  { %v4408_v44 = vadd.f32 %v2221_v43, %v2213_v41 }
0x20a7   :  { %3645 = vtanh.f32 %v4408_v44 }
0x20aa   :  { %v2287_v49 = vpop.permute.xlu1 %2286 }
0x20ab   :  { %v4412_v51 = vadd.f32 %v2287_v49, %v2279_v48 }
0x20ad   :  { %3647 = vtanh.f32 %v4412_v51 }
0x20b4   :  { %v3646_v33 = vpop.eup %3645 }
0x20b5   :  { %2226 = vrot.lane.b32.xlu0 %v3646_v33, %s3699_s6 }
0x20ba   :  { %v3648_v32 = vpop.eup %3647 }
0x20bb   :  { %2292 = vrot.lane.b32.xlu1 %v3648_v32, %s3699_s6 }
0x2127   :  { %v2227_v54 = vpop.permute.xlu0 %2226 }
0x2128   :  { %v4417_v59 = vmul.f32 %v2227_v54, %v2212_v26 }
0x212a   :  { %v2297_v24 = vpack.c.bf16 %v4417_v59, %v4417_v59 }
0x212c   :  { %2299 = vrot.lane.b32.xlu0 %v2297_v24, %s3700_s7 }
0x212d   :  { %v2293_v60 = vpop.permute.xlu1 %2292 }
0x212e   :  { %v2295_v47 = vmul.f32 %v2293_v60, %v2278_v30 }
0x2130   :  { %v2296_v2 = vpack.c.bf16 %v2295_v47, %v2295_v47 }
0x2132   :  { %2345 = vrot.lane.b32.xlu1 %v2296_v2, %s3700_s7 }
0x219e   :  { %v2300_v31 = vpop.permute.xlu0 %2299 }
0x219f   :  { %3373 = vmatmul.mubr.msk.bf16.vlgmr.msra.gmra.mxu1 %vm103_vm1, %v2300_v31 }
0x21a0   :  { %3385 = vmatpush3.bf16.msra.mxu1 %v4249_v25  ;;  %3388 = vmatprep.mubr.msk.bf16.mxu1 %vm3697_vm0, %v3696_v0 }
0x21a1   :  { %3386 = vmatprep.subr.bf16.mxu1 %v3696_v0 }
0x21a4   :  { %v2346_v57 = vpop.permute.xlu1 %2345  ;;  %3387 = vmatpush3.bf16.msra.mxu1 %v4258_v50 }
0x21a5   :  { %3381 = vmatmul.mubr.msk.bf16.vlgmr.msra.gmra.mxu0 %vm103_vm1, %v2346_v57  ;;  %3400 = vmatprep.subr.bf16.mxu1 %v3696_v0 }
0x21a6   :  { %3393 = vmatpush3.bf16.msra.mxu0 %v4299_v56  ;;  %3396 = vmatprep.mubr.msk.bf16.mxu0 %vm3697_vm0, %v3696_v0 }
0x21a7   :  { %3389 = vmatmul.mubr.msk.bf16.vlgmr.msra.gmra.mxu1 %vm103_vm1, %v2346_v57  ;;  %3394 = vmatprep.subr.bf16.mxu0 %v3696_v0 }
0x21a8   :  { %3401 = vmatpush3.bf16.msra.mxu1 %v4304_v36  ;;  %3404 = vmatprep.mubr.msk.bf16.mxu1 %vm3697_vm0, %v3696_v0 }
0x21a9   :  { %3402 = vmatprep.subr.bf16.mxu1 %v3696_v0 }
0x21aa   :  { %3395 = vmatpush3.bf16.msra.mxu0 %v4310_v63 }
0x21ab   :  { %3408 = vmatprep.subr.bf16.mxu0 %v3696_v0 }
0x21ac   :  { %3403 = vmatpush3.bf16.msra.mxu1 %v4316_v38 }
0x21ad   :  { %3416 = vmatprep.subr.bf16.mxu1 %v3696_v0 }
0x225f   :  { %v2338_v4 = vpop.f32.mrf.mxu1 }
0x2261   :  { %v3374_v46 = vpop.f32.mrf.mxu1 }
0x2263   :  { %v2341_v61 = vpop.f32.mrf.mxu1 }
0x2265   :  { %v3375_v1 = vpop.f32.mrf.mxu1  ;;  %v2384_v3 = vpop.f32.mrf.mxu0 }
0x2266   :  { %v2385_v37 = vadd.f32 %v2384_v3, %v2338_v4 }
0x2267   :  { %v3382_v53 = vpop.f32.mrf.mxu0  ;;  %v2450_v62 = vpop.f32.mrf.mxu1 }
0x2268   :  { %v2390_v5 = vadd.f32 %v2385_v37, %v4349_v58  ;;  %v2456_v6 = vadd.f32 %v2450_v62, %v4286_v55 }
0x2269   :  { %v2387_v8 = vpop.f32.mrf.mxu0  ;;  %v3390_v10 = vpop.f32.mrf.mxu1 }
0x226a   :  { %v2960_v11 = vmul.f32 -1.442695, %v2390_v5  ;;  %v2962_v13 = vmul.f32 -1.442695, %v2456_v6 }
0x226b   :  { %v3383_v7 = vpop.f32.mrf.mxu0  ;;  %v2453_v12 = vpop.f32.mrf.mxu1 }
0x226c   :  { %3649 = vpow2.f32 %v2960_v11 }
0x226d   :  { %3651 = vpow2.f32 %v2962_v13  ;;  %v3391_v45 = vpop.f32.mrf.mxu1 }
0x226e   :  { %3653 = vtanh.f32 %v2390_v5 }
0x226f   :  { %3655 = vtanh.f32 %v2456_v6 }
0x2279   :  { %v3650_v39 = vpop.eup %3649 }
0x227a   :  { %v3652_v14 = vpop.eup %3651  ;;  %v2395_v40 = vadd.f32 1.0, %v3650_v39 }
0x227b   :  { %v2461_v16 = vadd.f32 1.0, %v3652_v14  ;;  %v3654_v17 = vpop.eup %3653 }
0x227c   :  { %3657 = vrcp.f32 %v2395_v40  ;;  %v3656_v18 = vpop.eup %3655 }
0x227d   :  { %3659 = vrcp.f32 %v2461_v16 }
0x2289   :  { %v3658_v19 = vpop.eup %3657 }
0x228a   :  { %v3660_v20 = vpop.eup %3659  ;;  %v2398_v52 = vsel %vm3790_vm4, %v3654_v17, %v3658_v19 }
0x228b   :  { %2401 = vrot.lane.b32.xlu0 %v2398_v52, %s3699_s6  ;;  %v2464_v21 = vsel %vm3790_vm4, %v3656_v18, %v3660_v20  ;;  %v2399_v29 = vmul.f32 %v2398_v52, %v4408_v44 }
0x228c   :  { %2467 = vrot.lane.b32.xlu1 %v2464_v21, %s3699_s6  ;;  %v2465_v34 = vmul.f32 %v2464_v21, %v4412_v51 }
0x22fd   :  { %v2402_v23 = vpop.permute.xlu0 %2401 }
0x22fe   :  { %v2404_v15 = vmul.f32 %v2402_v23, %v2398_v52  ;;  %v2468_v26 = vpop.permute.xlu1 %2467  ;;  %v2789_v23 = vrot.slane %v4417_v59, 4 }
0x22ff   :  { %v2470_v9 = vmul.f32 %v2468_v26, %v2464_v21 }
0x2300   :  { %2406 = vrot.lane.b32.xlu0 %v2404_v15, %s3700_s7 }
0x2301   :  { %2472 = vrot.lane.b32.xlu1 %v2470_v9, %s3700_s7 }
0x2372   :  { %v2407_v30 = vpop.permute.xlu0 %2406 }
0x2373   :  { %v4456_v22 = vadd.f32 %v2407_v30, %v2399_v29  ;;  %v2473_v35 = vpop.permute.xlu1 %2472  ;;  %v2795_v29 = vsel %vm2794_vm8, %v4370_v42, %v2789_v23 }
0x2374   :  { %v4458_v27 = vadd.f32 %v2473_v35, %v2465_v34 }
0x2375   :  { %3661 = vtanh.f32 %v4456_v22 }
0x2376   :  { %3663 = vtanh.f32 %v4458_v27 }
0x2382   :  { %v3662_v41 = vpop.eup %3661 }
0x2383   :  { %v3664_v43 = vpop.eup %3663  ;;  %2412 = vrot.lane.b32.xlu0 %v3662_v41, %s3699_s6 }
0x2384   :  { %2478 = vrot.lane.b32.xlu1 %v3664_v43, %s3699_s6 }
0x23f5   :  { %v2413_v48 = vpop.permute.xlu0 %2412 }
0x23f6   :  { %v4464_v44 = vmul.f32 %v2413_v48, %v2398_v52  ;;  %v2479_v49 = vpop.permute.xlu1 %2478 }
0x23f7   :  { %v2481_v51 = vmul.f32 %v2479_v49, %v2464_v21 }
0x23f8   :  { %v2483_v33 = vpack.c.bf16 %v4464_v44, %v4464_v44 }
0x23f9   :  { %v2482_v32 = vpack.c.bf16 %v2481_v51, %v2481_v51 }
0x23fa   :  { %2485 = vrot.lane.b32.xlu0 %v2483_v33, %s3700_s7 }
0x23fb   :  { %2531 = vrot.lane.b32.xlu1 %v2482_v32, %s3700_s7 }
0x246c   :  { %v2486_v54 = vpop.permute.xlu0 %2485 }
0x246d   :  { %v2532_v24 = vpop.permute.xlu1 %2531  ;;  %3397 = vmatmul.mubr.msk.bf16.vlgmr.msra.gmra.mxu0 %vm103_vm1, %v2486_v54 }
0x246e   :  { %3405 = vmatmul.mubr.msk.bf16.vlgmr.msra.gmra.mxu1 %vm103_vm1, %v2532_v24  ;;  %3409 = vmatpush3.bf16.msra.mxu0 %v4249_v25 }
0x246f   :  { %3410 = vmatprep.subr.bf16.mxu0 %v3696_v0  ;;  %3412 = vmatprep.mubr.msk.bf16.mxu0 %vm3697_vm0, %v3696_v0 }
0x2470   :  { %3417 = vmatpush3.bf16.msra.mxu1 %v4299_v56  ;;  %3420 = vmatprep.mubr.msk.bf16.mxu1 %vm3697_vm0, %v3696_v0 }
0x2471   :  { %3418 = vmatprep.subr.bf16.mxu1 %v3696_v0 }
0x2472   :  { %3411 = vmatpush3.bf16.msra.mxu0 %v4258_v50 }
0x2473   :  { %3424 = vmatprep.subr.bf16.mxu0 %v3696_v0 }
0x2474   :  { %3419 = vmatpush3.bf16.msra.mxu1 %v4310_v63 }
0x2475   :  { %3413 = vmatmul.mubr.msk.bf16.vlgmr.msra.gmra.mxu0 %vm103_vm1, %v2532_v24  ;;  %3432 = vmatprep.subr.bf16.mxu1 %v3479_v28 }
0x2476   :  { %3425 = vmatpush3.bf16.msra.mxu0 %v4304_v36  ;;  %3428 = vmatprep.mubr.msk.bf16.mxu0 %vm3697_vm0, %v3696_v0 }
0x2477   :  { %3426 = vmatprep.subr.bf16.mxu0 %v3696_v0 }
0x247a   :  { %3427 = vmatpush3.bf16.msra.mxu0 %v4316_v38 }
0x252d   :  { %v2524_v25 = vpop.f32.mrf.mxu0 }
0x252e   :  { %v2570_v56 = vpop.f32.mrf.mxu1 }
0x252f   :  { %v2571_v60 = vadd.f32 %v2570_v56, %v2524_v25  ;;  %v3398_v47 = vpop.f32.mrf.mxu0 }
0x2530   :  { %v3406_v50 = vpop.f32.mrf.mxu1 }
0x2531   :  { %v2576_v2 = vadd.f32 %v2571_v60, %v4349_v58  ;;  %v2527_v31 = vpop.f32.mrf.mxu0 }
0x2532   :  { %v2573_v63 = vpop.f32.mrf.mxu1 }
0x2533   :  { %v2965_v57 = vmul.f32 -1.442695, %v2576_v2  ;;  %v3399_v4 = vpop.f32.mrf.mxu0 }
0x2534   :  { %v3407_v46 = vpop.f32.mrf.mxu1 }
0x2535   :  { %3665 = vpow2.f32 %v2965_v57  ;;  %v2636_v36 = vpop.f32.mrf.mxu0 }
0x2536   :  { %v2642_v61 = vadd.f32 %v2636_v36, %v4286_v55  ;;  %v3480_v36 = vld [vmem:[%s4541_s2] sm:$0xff]  }
0x2537   :  { %v3414_v1 = vpop.f32.mrf.mxu0 }
0x2538   :  { %v2967_v0 = vmul.f32 -1.442695, %v2642_v61 }
0x2539   :  { %v2639_v3 = vpop.f32.mrf.mxu0 }
0x253a   :  { %3667 = vpow2.f32 %v2967_v0 }
0x253b   :  { %v3415_v38 = vpop.f32.mrf.mxu0  ;;  %3669 = vtanh.f32 %v2576_v2 }
0x2542   :  { %v3666_v37 = vpop.eup %3665 }
0x2543   :  { %v2581_v53 = vadd.f32 1.0, %v3666_v37  ;;  %v2971_v37 = vld [vmem:[%s4542_s4] ss:$0 sm:$0xff] }
0x2545   :  { %3671 = vrcp.f32 %v2581_v53 }
0x2546   :  { %3673 = vtanh.f32 %v2642_v61 }
0x2547   :  { %v3668_v62 = vpop.eup %3667 }
0x2548   :  { %v2647_v5 = vadd.f32 1.0, %v3668_v62  ;;  %v3670_v6 = vpop.eup %3669 }
0x254a   :  { %3675 = vrcp.f32 %v2647_v5 }
0x2552   :  { %v3672_v8 = vpop.eup %3671 }
0x2553   :  { %v2584_v10 = vsel %vm3790_vm4, %v3670_v6, %v3672_v8  ;;  %v3674_v55 = vpop.eup %3673 }
0x2554   :  { %2587 = vrot.lane.b32.xlu0 %v2584_v10, %s3699_s6  ;;  %v2585_v14 = vmul.f32 %v2584_v10, %v4456_v22 }
0x2557   :  { %v3676_v11 = vpop.eup %3675 }
0x2558   :  { %v2650_v13 = vsel %vm3790_vm4, %v3674_v55, %v3676_v11 }
0x2559   :  { %2653 = vrot.lane.b32.xlu1 %v2650_v13, %s3699_s6  ;;  %v2651_v17 = vmul.f32 %v2650_v13, %v4458_v27 }
0x25c6   :  { %v2588_v7 = vpop.permute.xlu0 %2587 }
0x25c7   :  { %v2590_v12 = vmul.f32 %v2588_v7, %v2584_v10 }
0x25c9   :  { %2592 = vrot.lane.b32.xlu0 %v2590_v12, %s3700_s7 }
0x25cb   :  { %v2654_v45 = vpop.permute.xlu1 %2653 }
0x25cc   :  { %v2656_v39 = vmul.f32 %v2654_v45, %v2650_v13 }
0x25ce   :  { %2658 = vrot.lane.b32.xlu1 %v2656_v39, %s3700_s7 }
0x263b   :  { %v2593_v40 = vpop.permute.xlu0 %2592 }
0x263c   :  { %v2595_v16 = vadd.f32 %v2593_v40, %v2585_v14 }
0x263e   :  { %3677 = vtanh.f32 %v2595_v16 }
0x2640   :  { %v2659_v18 = vpop.permute.xlu1 %2658 }
0x2641   :  { %v2661_v19 = vadd.f32 %v2659_v18, %v2651_v17 }
0x2643   :  { %3679 = vtanh.f32 %v2661_v19 }
0x264b   :  { %v3678_v20 = vpop.eup %3677 }
0x264c   :  { %2598 = vrot.lane.b32.xlu0 %v3678_v20, %s3699_s6 }
0x2650   :  { %v3680_v52 = vpop.eup %3679 }
0x2651   :  { %2664 = vrot.lane.b32.xlu1 %v3680_v52, %s3699_s6 }
0x26be   :  { %v2599_v21 = vpop.permute.xlu0 %2598 }
0x26bf   :  { %v2601_v15 = vmul.f32 %v2599_v21, %v2584_v10 }
0x26c1   :  { %v2669_v26 = vpack.c.bf16 %v2601_v15, %v2601_v15  ;;  %v2792_v9 = vrot.slane %v2601_v15, 4 }
0x26c3   :  { %v2796_v30 = vsel %vm2794_vm8, %v4464_v44, %v2792_v9  ;;  %2671 = vrot.lane.b32.xlu0 %v2669_v26, %s3700_s7  ;;  %v2665_v34 = vpop.permute.xlu1 %2664 }
0x26c4   :  { %v2667_v22 = vmul.f32 %v2665_v34, %v2650_v13  ;;  %v2801_v35 = vpack.c.bf16 %v2796_v30, %v2795_v29 }
0x26c6   :  { %v2668_v27 = vpack.c.bf16 %v2667_v22, %v2667_v22 }
0x26c8   :  { %2717 = vrot.lane.b32.xlu1 %v2668_v27, %s3700_s7 }
0x2735   :  { %v2672_v41 = vpop.permute.xlu0 %2671 }
0x2736   :  { %3421 = vmatmul.mubr.msk.bf16.vlgmr.msra.gmra.mxu1 %vm103_vm1, %v2672_v41 }
0x2737   :  { %3433 = vmatpush3.bf16.msra.mxu1 %v3479_v28 }
0x2738   :  { %3434 = vmatprep.subr.bf16.mxu1 %v3480_v36 }
0x273a   :  { %v2718_v59 = vpop.permute.xlu1 %2717 }
0x273b   :  { %3429 = vmatmul.mubr.msk.bf16.vlgmr.msra.gmra.mxu0 %vm103_vm1, %v2718_v59  ;;  %3435 = vmatpush3.bf16.msra.mxu1 %v3480_v36 }
0x27f6   :  { %v2710_v43 = vpop.f32.mrf.mxu1 }
0x27f8   :  { %v3422_v48 = vpop.f32.mrf.mxu1 }
0x27fa   :  { %v2713_v49 = vpop.f32.mrf.mxu1 }
0x27fb   :  { %v2756_v42 = vpop.f32.mrf.mxu0 }
0x27fc   :  { %v3423_v51 = vpop.f32.mrf.mxu1  ;;  %v2757_v44 = vadd.f32 %v2756_v42, %v2710_v43 }
0x27fd   :  { %v3430_v33 = vpop.f32.mrf.mxu0 }
0x27fe   :  { %v2762_v32 = vadd.f32 %v2757_v44, %v4349_v58 }
0x27ff   :  { %v2759_v54 = vpop.f32.mrf.mxu0 }
0x2800   :  { %v2970_v24 = vmul.f32 -1.442695, %v2762_v32 }
0x2801   :  { %v3431_v25 = vpop.f32.mrf.mxu0 }
0x2802   :  { %3681 = vpow2.f32 %v2970_v24 }
0x2803   :  { %3683 = vtanh.f32 %v2762_v32 }
0x280f   :  { %v3682_v56 = vpop.eup %3681 }
0x2810   :  { %v2767_v60 = vadd.f32 1.0, %v3682_v56  ;;  %v3684_v47 = vpop.eup %3683 }
0x2812   :  { %3685 = vrcp.f32 %v2767_v60 }
0x281f   :  { %v3686_v50 = vpop.eup %3685 }
0x2820   :  { %v2770_v2 = vsel %vm3790_vm4, %v3684_v47, %v3686_v50 }
0x2821   :  { %2773 = vrot.lane.b32.xlu0 %v2770_v2, %s3699_s6  ;;  %v2771_v58 = vmul.f32 %v2770_v2, %v2595_v16 }
0x2893   :  { %v2774_v31 = vpop.permute.xlu0 %2773 }
0x2894   :  { %v2776_v63 = vmul.f32 %v2774_v31, %v2770_v2 }
0x2896   :  { %2778 = vrot.lane.b32.xlu1 %v2776_v63, %s3700_s7 }
0x289a   :  { %2812 = vrot.lane.b32.xlu1 %v2801_v35, %s3700_s7 }
0x2908   :  { %v2779_v57 = vpop.permute.xlu1 %2778 }
0x2909   :  { %v2781_v4 = vadd.f32 %v2779_v57, %v2771_v58 }
0x290b   :  { %3687 = vtanh.f32 %v2781_v4 }
0x290c   :  { %v2813_v46 = vpop.permute.xlu1 %2812 }
0x290d   :  { %3436 = vmatprep.mubr.msk.bf16.mxu1 %vm103_vm1, %v2813_v46 }
0x2918   :  { %v3688_v61 = vpop.eup %3687 }
0x2919   :  { %2784 = vrot.lane.b32.xlu0 %v3688_v61, %s3699_s6 }
0x298b   :  { %v2785_v1 = vpop.permute.xlu0 %2784 }
0x298c   :  { %v2787_v0 = vmul.f32 %v2785_v1, %v2770_v2 }
0x298e   :  { %v2802_v3 = vpack.c.bf16 %v2787_v0, %v2787_v0 }
0x2990   :  { %2814 = vrot.lane.b32.xlu0 %v2802_v3, %s3700_s7 }
0x2a02   :  { %v2815_v38 = vpop.permute.xlu0 %2814 }
0x2a03   :  { %3437 = vmatmul.mubr.msk.bf16.vlgmr.msra.gmra.mxu1 %vm103_vm1, %v2815_v38 }
0x2ac3   :  { %v3438_v53 = vpop.f32.mrf.mxu1 }
0x2ac4   :  { %v2877_v62 = vadd.f32 %v3438_v53, %v2971_v37 }
0x2ac5   :  { %v2868_v5 = vpop.f32.mrf.mxu1 }
0x2ac6   :  { %2884 = vst [vmem:[%s4543_s5 + $0x10] sm:$0xf] %v2877_v62  ;;  %v2869_v6 = vadd.f32 %v2971_v37, %v2868_v5 }
0x2ac7   :  { %v3439_v8 = vpop.f32.mrf.mxu1 }
0x2ac8   :  { %2882 = vst [vmem:[%s4543_s5] sm:$0xff] %v2869_v6 }
0x2ac9   :  { %v2871_v10 = vpop.f32.mrf.mxu1 }
0x2aca   :  { %v2872_v55 = vadd.f32 %v2971_v37, %v2871_v10 }
0x2acc   :  { %2883 = vst [vmem:[%s4543_s5 + $0x8] sm:$0xff] %v2872_v55 }

</bundles_post_ra>
